<compile_context>
chip_gen: v7x
topology: tpu7x:2x2x1
jax: 0.10.0
libtpu: 0.0.40
codegen_flags: <defaults>
</compile_context>

<pallas_src>
import jax
import jax.numpy as jnp
from jax import lax
from jax.experimental import pallas as pl
from jax.experimental.pallas import tpu as pltpu


def _round_up(x, m):
    return (x + m - 1) // m * m


# ---- packed-output lane layout ------------------------------------------------
_PACK_W = 128
_D1, _D2, _D3 = 0, 30, 60            # decoded_1/2/3, each 30 lanes, contiguous
_E1, _E2, _E3, _OUT = 90, 91, 92, 93  # scalar columns; lanes 94..127 are zero

# ---- parameter slab layout (static; 8-aligned row offsets) --------------------
_PARAM_SHAPES = (
    ("enc_w", (30, 15)), ("enc_b", (1, 15)),     # AE.encoder  Linear(30,15)
    ("enc2_w", (1, 15)), ("enc2_b", (1, 1)),     # AE.encoder2 Linear(15,1)
    ("dec1_w", (1, 15)), ("dec1_b", (1, 15)),    # AE.decoder  Linear(1,15)
    ("dec2_w", (15, 30)), ("dec2_b", (1, 30)),   # AE.decoder  Linear(15,30)
    ("ew1", (5, 64)), ("eb1", (1, 64)),          # Extrader    Linear(5,64)
    ("ew2", (64, 64)), ("eb2", (1, 64)),         # Extrader    Linear(64,64)
    ("ew3", (64, 64)), ("eb3", (1, 64)),         # Extrader    Linear(64,64)
    ("ew4", (1, 64)), ("eb4", (1, 1)),           # Extrader    Linear(64,1)
)
_PARAM_SHAPE = dict(_PARAM_SHAPES)
_PARAM_SLAB_W = 64
_PARAM_ROW = {}
_row = 0
for _name, (_nr, _nc) in _PARAM_SHAPES:
    _PARAM_ROW[_name] = _row
    _row += _round_up(_nr, 8)
_PARAM_SLAB_ROWS = _row


def _pack_param_slab(params):
    """Pack all 16 weight/bias tensors into one (rows, 64) f32 slab."""
    pieces = []
    for name, (nr, nc) in _PARAM_SHAPES:
        a = jnp.asarray(params[name], jnp.float32).reshape(nr, nc)
        pieces.append(jnp.pad(a, ((0, _round_up(nr, 8) - nr),
                                  (0, _PARAM_SLAB_W - nc))))
    return jnp.concatenate(pieces, axis=0)


def _integrated_kernel(m1_ref, m2_ref, m3_ref, qty_ref, pslab_ref, out_ref):
    TB = qty_ref.shape[0]

    def pget(name):
        r0 = _PARAM_ROW[name]
        nr, nc = _PARAM_SHAPE[name]
        return pslab_ref[r0:r0 + nr, 0:nc]

    enc_w, enc_b = pget("enc_w"), pget("enc_b")       # (30,15), (1,15)
    enc2_w, enc2_b = pget("enc2_w"), pget("enc2_b")   # (1,15),  (1,1)
    dec1_w, dec1_b = pget("dec1_w"), pget("dec1_b")   # (1,15),  (1,15)
    dec2_w, dec2_b = pget("dec2_w"), pget("dec2_b")   # (15,30), (1,30)

    def ae(x):
        # encoder Linear(30,15) + Tanh : MXU
        feat = jnp.tanh(
            jnp.dot(x, enc_w, preferred_element_type=jnp.float32) + enc_b)
        # encoder2 Linear(15,1): N==1 -> lane reduction (VPU/XLU), no MXU push
        enc = jnp.sum(feat * enc2_w, axis=-1, keepdims=True) + enc2_b
        # decoder Linear(1,15) + Tanh : K==1 -> rank-1 broadcast MAD on the VPU
        hdec = jnp.tanh(enc * dec1_w + dec1_b)
        # decoder Linear(15,30) : MXU
        dec = jnp.dot(hdec, dec2_w, preferred_element_type=jnp.float32) + dec2_b
        return enc, dec

    e1, d1 = ae(m1_ref[...])
    e2, d2 = ae(m2_ref[...])
    e3, d3 = ae(m3_ref[...])

    # ---- Extrader on concat([e1, e2, e3, quantity]) (width 5) ----
    # Linear(5,64): K<=2 per term -> broadcast MADs on the VPU.
    w1, b1 = pget("ew1"), pget("eb1")
    qty = qty_ref[...]
    h = (e1 * w1[0:1, :] + e2 * w1[1:2, :] + e3 * w1[2:3, :]
         + qty[:, 0:1] * w1[3:4, :] + qty[:, 1:2] * w1[4:5, :] + b1)
    h = jnp.tanh(h)                                   # Dropout -> identity (eval)
    h = jnp.tanh(
        jnp.dot(h, pget("ew2"), preferred_element_type=jnp.float32) + pget("eb2"))
    h = jnp.tanh(
        jnp.dot(h, pget("ew3"), preferred_element_type=jnp.float32) + pget("eb3"))
    # final Linear(64,1): N==1 -> lane reduction
    out = jnp.sum(h * pget("ew4"), axis=-1, keepdims=True) + pget("eb4")

    # ---- lane-dense packed writeback: [d1 | d2 | d3 | e1 e2 e3 out | zeros] ----
    out_ref[:, _D1:_D1 + 30] = d1
    out_ref[:, _D2:_D2 + 30] = d2
    out_ref[:, _D3:_D3 + 30] = d3
    tail_w = _PACK_W - _E1                            # 38 lanes: 4 scalars + zeros
    lane = lax.broadcasted_iota(jnp.int32, (TB, tail_w), 1)
    tail = jnp.where(lane == 0, e1,
           jnp.where(lane == 1, e2,
           jnp.where(lane == 2, e3,
           jnp.where(lane == 3, out, 0.0))))
    out_ref[:, _E1:_PACK_W] = tail


def integrated_model(m1, m2, m3, quantity, params, *, block_rows=1024):
    """Forward pass of IntegratedModel. Returns (e1, e2, e3, d1, d2, d3, out)."""
    B, F = m1.shape
    assert F == 30 and m2.shape == (B, F) and m3.shape == (B, F)
    assert quantity.shape == (B, 2)
    assert block_rows % 8 == 0 and block_rows > 0
    f32 = jnp.float32

    # Tile the batch; cap the tile so the grid has >= 2 steps when possible
    # (lets the "parallel" batch axis shard across v7x's two TensorCores).
    TB = max(8, min(block_rows, _round_up(pl.cdiv(B, 2), 8)))
    nb = pl.cdiv(B, TB)

    pslab = _pack_param_slab(params)

    in_specs = [
        pl.BlockSpec((TB, F), lambda i: (i, 0)),       # m1
        pl.BlockSpec((TB, F), lambda i: (i, 0)),       # m2
        pl.BlockSpec((TB, F), lambda i: (i, 0)),       # m3
        pl.BlockSpec((TB, 2), lambda i: (i, 0)),       # quantity
        # Whole parameter slab, constant index_map -> stays resident in VMEM.
        pl.BlockSpec((_PARAM_SLAB_ROWS, _PARAM_SLAB_W), lambda i: (0, 0)),
    ]
    out_specs = pl.BlockSpec((TB, _PACK_W), lambda i: (i, 0))
    out_shape = jax.ShapeDtypeStruct((B, _PACK_W), f32)

    # Advisory cost estimate so XLA schedules around this small custom call.
    flops = int(B * (3 * (2 * 30 * 15 + 2 * 15 + 2 * 15 + 2 * 15 * 30)
                     + 2 * 5 * 64 + 2 * (2 * 64 * 64) + 2 * 64))
    transcendentals = int(B * (3 * (15 + 15) + 3 * 64))
    bytes_accessed = int(4 * (B * (3 * F + 2 + _PACK_W)
                              + _PARAM_SLAB_ROWS * _PARAM_SLAB_W))

    packed = pl.pallas_call(
        _integrated_kernel,
        out_shape=out_shape,
        grid=(nb,),
        in_specs=in_specs,
        out_specs=out_specs,
        compiler_params=pltpu.CompilerParams(
            dimension_semantics=("parallel",)),
        cost_estimate=pl.CostEstimate(
            flops=flops, transcendentals=transcendentals,
            bytes_accessed=bytes_accessed),
    )(m1, m2, m3, quantity, pslab)

    e1 = packed[:, _E1:_E1 + 1]
    e2 = packed[:, _E2:_E2 + 1]
    e3 = packed[:, _E3:_E3 + 1]
    d1 = packed[:, _D1:_D1 + F]
    d2 = packed[:, _D2:_D2 + F]
    d3 = packed[:, _D3:_D3 + F]
    out = packed[:, _OUT:_OUT + 1]
    return e1, e2, e3, d1, d2, d3, out


def init_params(key):
    """Deterministic parameter init matching the PyTorch module's shapes."""
    f32 = jnp.float32
    ks = jax.random.split(key, 16)

    def lin(kw, kb, n_in, n_out):
        w = jax.random.normal(kw, (n_in, n_out), f32) * 0.1
        b = jax.random.normal(kb, (1, n_out), f32) * 0.1
        return w, b

    p = {}
    p["enc_w"], p["enc_b"] = lin(ks[0], ks[1], 30, 15)    # AE.encoder Linear(30,15)
    p["enc2_w"], p["enc2_b"] = lin(ks[2], ks[3], 15, 1)   # AE.encoder2 Linear(15,1)
    p["dec1_w"], p["dec1_b"] = lin(ks[4], ks[5], 1, 15)   # AE.decoder Linear(1,15)
    p["dec2_w"], p["dec2_b"] = lin(ks[6], ks[7], 15, 30)  # AE.decoder Linear(15,30)
    p["ew1"], p["eb1"] = lin(ks[8], ks[9], 5, 64)         # Extrader Linear(5,64)
    p["ew2"], p["eb2"] = lin(ks[10], ks[11], 64, 64)
    p["ew3"], p["eb3"] = lin(ks[12], ks[13], 64, 64)
    p["ew4"], p["eb4"] = lin(ks[14], ks[15], 64, 1)
    return p


def reference(m1, m2, m3, quantity, p):
    """Plain-JAX reference of the PyTorch forward (dropout in eval mode)."""
    with jax.default_matmul_precision("highest"):
        def ae(x):
            feat = jnp.tanh(x @ p["enc_w"] + p["enc_b"])
            enc = feat @ p["enc2_w"] + p["enc2_b"]
            dec = jnp.tanh(enc @ p["dec1_w"] + p["dec1_b"]) @ p["dec2_w"] + p["dec2_b"]
            return enc, dec

        e1, d1 = ae(m1)
        e2, d2 = ae(m2)
        e3, d3 = ae(m3)
        iv = jnp.concatenate([e1, e2, e3, quantity], axis=1)
        h = jnp.tanh(iv @ p["ew1"] + p["eb1"])
        h = jnp.tanh(h @ p["ew2"] + p["eb2"])
        h = jnp.tanh(h @ p["ew3"] + p["eb3"])
        out = h @ p["ew4"] + p["eb4"]
        return e1, e2, e3, d1, d2, d3, out


if __name__ == "__main__":
    key = jax.random.PRNGKey(0)
    k_p, k1, k2, k3, kq = jax.random.split(key, 5)

    # B=500: non-multiple of the tile -> exercises the ragged last block,
    # and the tile cap gives a 2-step grid (both v7x TensorCores get work).
    B = 500
    params = init_params(k_p)
    m1 = jax.random.normal(k1, (B, 30), jnp.float32)
    m2 = jax.random.normal(k2, (B, 30), jnp.float32)
    m3 = jax.random.normal(k3, (B, 30), jnp.float32)
    quantity = jax.random.normal(kq, (B, 2), jnp.float32)

    outs = integrated_model(m1, m2, m3, quantity, params)
    outs = jax.block_until_ready(outs)

    refs = reference(m1, m2, m3, quantity, params)
    names = ("e1", "e2", "e3", "decoded_1", "decoded_2", "decoded_3", "out")
    for name, o, r in zip(names, outs, refs):
        assert o.shape == r.shape, (name, o.shape, r.shape)
        err = float(jnp.max(jnp.abs(o - r)))
        assert jnp.allclose(o, r, atol=1e-4, rtol=1e-4), (name, err)

    print("KERNEL_OK")
</pallas_src>

<mosaic_0001>
module attributes {stable_mosaic.version = 11 : i64} {
  func.func @_integrated_kernel(%arg0: i32, %arg1: memref<256x30xf32, #tpu.memory_space<vmem>>, %arg2: memref<256x30xf32, #tpu.memory_space<vmem>>, %arg3: memref<256x30xf32, #tpu.memory_space<vmem>>, %arg4: memref<256x2xf32, #tpu.memory_space<vmem>>, %arg5: memref<272x64xf32, #tpu.memory_space<vmem>>, %arg6: memref<256x128xf32, #tpu.memory_space<vmem>>) attributes {dimension_semantics = [#tpu.dimension_semantics<parallel>], iteration_bounds = array<i64: 2>, scalar_prefetch = 0 : i64, scratch_operands = 0 : i64, tpu.core_type = #tpu.core_type<tc>, window_params = [{transform_indices = @transform_0, window_bounds = array<i64: 256, 30>}, {transform_indices = @transform_1, window_bounds = array<i64: 256, 30>}, {transform_indices = @transform_2, window_bounds = array<i64: 256, 30>}, {transform_indices = @transform_3, window_bounds = array<i64: 256, 2>}, {pipeline_mode = #tpu.pipeline_mode<synchronous>, transform_indices = @transform_4, window_bounds = array<i64: 272, 64>}, {transform_indices = @transform_5, window_bounds = array<i64: 256, 128>}]} {
    %c0 = arith.constant 0 : index
    %c0_0 = arith.constant 0 : index
    %0 = vector.load %arg5[%c0, %c0_0] : memref<272x64xf32, #tpu.memory_space<vmem>>, vector<30x15xf32>
    %c32 = arith.constant 32 : index
    %c0_1 = arith.constant 0 : index
    %1 = vector.load %arg5[%c32, %c0_1] : memref<272x64xf32, #tpu.memory_space<vmem>>, vector<1x15xf32>
    %c40 = arith.constant 40 : index
    %c0_2 = arith.constant 0 : index
    %2 = vector.load %arg5[%c40, %c0_2] : memref<272x64xf32, #tpu.memory_space<vmem>>, vector<1x15xf32>
    %c48 = arith.constant 48 : index
    %c0_3 = arith.constant 0 : index
    %3 = vector.load %arg5[%c48, %c0_3] : memref<272x64xf32, #tpu.memory_space<vmem>>, vector<1x1xf32>
    %c56 = arith.constant 56 : index
    %c0_4 = arith.constant 0 : index
    %4 = vector.load %arg5[%c56, %c0_4] : memref<272x64xf32, #tpu.memory_space<vmem>>, vector<1x15xf32>
    %c64 = arith.constant 64 : index
    %c0_5 = arith.constant 0 : index
    %5 = vector.load %arg5[%c64, %c0_5] : memref<272x64xf32, #tpu.memory_space<vmem>>, vector<1x15xf32>
    %c72 = arith.constant 72 : index
    %c0_6 = arith.constant 0 : index
    %6 = vector.load %arg5[%c72, %c0_6] : memref<272x64xf32, #tpu.memory_space<vmem>>, vector<15x30xf32>
    %c88 = arith.constant 88 : index
    %c0_7 = arith.constant 0 : index
    %7 = vector.load %arg5[%c88, %c0_7] : memref<272x64xf32, #tpu.memory_space<vmem>>, vector<1x30xf32>
    %c0_8 = arith.constant 0 : index
    %c0_9 = arith.constant 0 : index
    %8 = vector.load %arg1[%c0_8, %c0_9] : memref<256x30xf32, #tpu.memory_space<vmem>>, vector<256x30xf32>
    %cst = arith.constant dense<0.000000e+00> : vector<256x15xf32>
    %9 = tpu.matmul %8, %0, %cst {dimension_numbers = #tpu.dot_dimension_numbers<[1], [0], [0], [1], [0, 0, 1, 1], [], []>} : vector<256x30xf32>, vector<30x15xf32>, vector<256x15xf32> -> vector<256x15xf32>
    %10 = vector.broadcast %1 : vector<1x15xf32> to vector<256x15xf32>
    %11 = arith.addf %9, %10 : vector<256x15xf32>
    %12 = math.tanh %11 : vector<256x15xf32>
    %13 = vector.broadcast %2 : vector<1x15xf32> to vector<256x15xf32>
    %14 = arith.mulf %12, %13 : vector<256x15xf32>
    %cst_10 = arith.constant dense<0.000000e+00> : vector<256xf32>
    %15 = vector.multi_reduction <add>, %14, %cst_10 [1] : vector<256x15xf32> to vector<256xf32>
    %16 = vector.shape_cast %15 : vector<256xf32> to vector<256x1xf32>
    %17 = vector.broadcast %3 : vector<1x1xf32> to vector<256x1xf32>
    %18 = arith.addf %16, %17 : vector<256x1xf32>
    %19 = vector.broadcast %18 : vector<256x1xf32> to vector<256x15xf32>
    %20 = vector.broadcast %4 : vector<1x15xf32> to vector<256x15xf32>
    %21 = arith.mulf %19, %20 : vector<256x15xf32>
    %22 = vector.broadcast %5 : vector<1x15xf32> to vector<256x15xf32>
    %23 = arith.addf %21, %22 : vector<256x15xf32>
    %24 = math.tanh %23 : vector<256x15xf32>
    %cst_11 = arith.constant dense<0.000000e+00> : vector<256x30xf32>
    %25 = tpu.matmul %24, %6, %cst_11 {dimension_numbers = #tpu.dot_dimension_numbers<[1], [0], [0], [1], [0, 0, 1, 1], [], []>} : vector<256x15xf32>, vector<15x30xf32>, vector<256x30xf32> -> vector<256x30xf32>
    %26 = vector.broadcast %7 : vector<1x30xf32> to vector<256x30xf32>
    %27 = arith.addf %25, %26 : vector<256x30xf32>
    %c0_12 = arith.constant 0 : index
    %c0_13 = arith.constant 0 : index
    %28 = vector.load %arg2[%c0_12, %c0_13] : memref<256x30xf32, #tpu.memory_space<vmem>>, vector<256x30xf32>
    %cst_14 = arith.constant dense<0.000000e+00> : vector<256x15xf32>
    %29 = tpu.matmul %28, %0, %cst_14 {dimension_numbers = #tpu.dot_dimension_numbers<[1], [0], [0], [1], [0, 0, 1, 1], [], []>} : vector<256x30xf32>, vector<30x15xf32>, vector<256x15xf32> -> vector<256x15xf32>
    %30 = vector.broadcast %1 : vector<1x15xf32> to vector<256x15xf32>
    %31 = arith.addf %29, %30 : vector<256x15xf32>
    %32 = math.tanh %31 : vector<256x15xf32>
    %33 = vector.broadcast %2 : vector<1x15xf32> to vector<256x15xf32>
    %34 = arith.mulf %32, %33 : vector<256x15xf32>
    %cst_15 = arith.constant dense<0.000000e+00> : vector<256xf32>
    %35 = vector.multi_reduction <add>, %34, %cst_15 [1] : vector<256x15xf32> to vector<256xf32>
    %36 = vector.shape_cast %35 : vector<256xf32> to vector<256x1xf32>
    %37 = vector.broadcast %3 : vector<1x1xf32> to vector<256x1xf32>
    %38 = arith.addf %36, %37 : vector<256x1xf32>
    %39 = vector.broadcast %38 : vector<256x1xf32> to vector<256x15xf32>
    %40 = vector.broadcast %4 : vector<1x15xf32> to vector<256x15xf32>
    %41 = arith.mulf %39, %40 : vector<256x15xf32>
    %42 = vector.broadcast %5 : vector<1x15xf32> to vector<256x15xf32>
    %43 = arith.addf %41, %42 : vector<256x15xf32>
    %44 = math.tanh %43 : vector<256x15xf32>
    %cst_16 = arith.constant dense<0.000000e+00> : vector<256x30xf32>
    %45 = tpu.matmul %44, %6, %cst_16 {dimension_numbers = #tpu.dot_dimension_numbers<[1], [0], [0], [1], [0, 0, 1, 1], [], []>} : vector<256x15xf32>, vector<15x30xf32>, vector<256x30xf32> -> vector<256x30xf32>
    %46 = vector.broadcast %7 : vector<1x30xf32> to vector<256x30xf32>
    %47 = arith.addf %45, %46 : vector<256x30xf32>
    %c0_17 = arith.constant 0 : index
    %c0_18 = arith.constant 0 : index
    %48 = vector.load %arg3[%c0_17, %c0_18] : memref<256x30xf32, #tpu.memory_space<vmem>>, vector<256x30xf32>
    %cst_19 = arith.constant dense<0.000000e+00> : vector<256x15xf32>
    %49 = tpu.matmul %48, %0, %cst_19 {dimension_numbers = #tpu.dot_dimension_numbers<[1], [0], [0], [1], [0, 0, 1, 1], [], []>} : vector<256x30xf32>, vector<30x15xf32>, vector<256x15xf32> -> vector<256x15xf32>
    %50 = vector.broadcast %1 : vector<1x15xf32> to vector<256x15xf32>
    %51 = arith.addf %49, %50 : vector<256x15xf32>
    %52 = math.tanh %51 : vector<256x15xf32>
    %53 = vector.broadcast %2 : vector<1x15xf32> to vector<256x15xf32>
    %54 = arith.mulf %52, %53 : vector<256x15xf32>
    %cst_20 = arith.constant dense<0.000000e+00> : vector<256xf32>
    %55 = vector.multi_reduction <add>, %54, %cst_20 [1] : vector<256x15xf32> to vector<256xf32>
    %56 = vector.shape_cast %55 : vector<256xf32> to vector<256x1xf32>
    %57 = vector.broadcast %3 : vector<1x1xf32> to vector<256x1xf32>
    %58 = arith.addf %56, %57 : vector<256x1xf32>
    %59 = vector.broadcast %58 : vector<256x1xf32> to vector<256x15xf32>
    %60 = vector.broadcast %4 : vector<1x15xf32> to vector<256x15xf32>
    %61 = arith.mulf %59, %60 : vector<256x15xf32>
    %62 = vector.broadcast %5 : vector<1x15xf32> to vector<256x15xf32>
    %63 = arith.addf %61, %62 : vector<256x15xf32>
    %64 = math.tanh %63 : vector<256x15xf32>
    %cst_21 = arith.constant dense<0.000000e+00> : vector<256x30xf32>
    %65 = tpu.matmul %64, %6, %cst_21 {dimension_numbers = #tpu.dot_dimension_numbers<[1], [0], [0], [1], [0, 0, 1, 1], [], []>} : vector<256x15xf32>, vector<15x30xf32>, vector<256x30xf32> -> vector<256x30xf32>
    %66 = vector.broadcast %7 : vector<1x30xf32> to vector<256x30xf32>
    %67 = arith.addf %65, %66 : vector<256x30xf32>
    %c96 = arith.constant 96 : index
    %c0_22 = arith.constant 0 : index
    %68 = vector.load %arg5[%c96, %c0_22] : memref<272x64xf32, #tpu.memory_space<vmem>>, vector<5x64xf32>
    %c104 = arith.constant 104 : index
    %c0_23 = arith.constant 0 : index
    %69 = vector.load %arg5[%c104, %c0_23] : memref<272x64xf32, #tpu.memory_space<vmem>>, vector<1x64xf32>
    %c0_24 = arith.constant 0 : index
    %c0_25 = arith.constant 0 : index
    %70 = vector.load %arg4[%c0_24, %c0_25] : memref<256x2xf32, #tpu.memory_space<vmem>>, vector<256x2xf32>
    %71 = vector.extract_strided_slice %68 {offsets = [0, 0], sizes = [1, 64], strides = [1, 1]} : vector<5x64xf32> to vector<1x64xf32>
    %72 = vector.broadcast %18 : vector<256x1xf32> to vector<256x64xf32>
    %73 = vector.broadcast %71 : vector<1x64xf32> to vector<256x64xf32>
    %74 = arith.mulf %72, %73 : vector<256x64xf32>
    %75 = vector.extract_strided_slice %68 {offsets = [1, 0], sizes = [1, 64], strides = [1, 1]} : vector<5x64xf32> to vector<1x64xf32>
    %76 = vector.broadcast %38 : vector<256x1xf32> to vector<256x64xf32>
    %77 = vector.broadcast %75 : vector<1x64xf32> to vector<256x64xf32>
    %78 = arith.mulf %76, %77 : vector<256x64xf32>
    %79 = arith.addf %74, %78 : vector<256x64xf32>
    %80 = vector.extract_strided_slice %68 {offsets = [2, 0], sizes = [1, 64], strides = [1, 1]} : vector<5x64xf32> to vector<1x64xf32>
    %81 = vector.broadcast %58 : vector<256x1xf32> to vector<256x64xf32>
    %82 = vector.broadcast %80 : vector<1x64xf32> to vector<256x64xf32>
    %83 = arith.mulf %81, %82 : vector<256x64xf32>
    %84 = arith.addf %79, %83 : vector<256x64xf32>
    %85 = vector.extract_strided_slice %70 {offsets = [0, 0], sizes = [256, 1], strides = [1, 1]} : vector<256x2xf32> to vector<256x1xf32>
    %86 = vector.extract_strided_slice %68 {offsets = [3, 0], sizes = [1, 64], strides = [1, 1]} : vector<5x64xf32> to vector<1x64xf32>
    %87 = vector.broadcast %85 : vector<256x1xf32> to vector<256x64xf32>
    %88 = vector.broadcast %86 : vector<1x64xf32> to vector<256x64xf32>
    %89 = arith.mulf %87, %88 : vector<256x64xf32>
    %90 = arith.addf %84, %89 : vector<256x64xf32>
    %91 = vector.extract_strided_slice %70 {offsets = [0, 1], sizes = [256, 1], strides = [1, 1]} : vector<256x2xf32> to vector<256x1xf32>
    %92 = vector.extract_strided_slice %68 {offsets = [4, 0], sizes = [1, 64], strides = [1, 1]} : vector<5x64xf32> to vector<1x64xf32>
    %93 = vector.broadcast %91 : vector<256x1xf32> to vector<256x64xf32>
    %94 = vector.broadcast %92 : vector<1x64xf32> to vector<256x64xf32>
    %95 = arith.mulf %93, %94 : vector<256x64xf32>
    %96 = arith.addf %90, %95 : vector<256x64xf32>
    %97 = vector.broadcast %69 : vector<1x64xf32> to vector<256x64xf32>
    %98 = arith.addf %96, %97 : vector<256x64xf32>
    %99 = math.tanh %98 : vector<256x64xf32>
    %c112 = arith.constant 112 : index
    %c0_26 = arith.constant 0 : index
    %100 = vector.load %arg5[%c112, %c0_26] : memref<272x64xf32, #tpu.memory_space<vmem>>, vector<64x64xf32>
    %cst_27 = arith.constant dense<0.000000e+00> : vector<256x64xf32>
    %101 = tpu.matmul %99, %100, %cst_27 {dimension_numbers = #tpu.dot_dimension_numbers<[1], [0], [0], [1], [0, 0, 1, 1], [], []>} : vector<256x64xf32>, vector<64x64xf32>, vector<256x64xf32> -> vector<256x64xf32>
    %c176 = arith.constant 176 : index
    %c0_28 = arith.constant 0 : index
    %102 = vector.load %arg5[%c176, %c0_28] : memref<272x64xf32, #tpu.memory_space<vmem>>, vector<1x64xf32>
    %103 = vector.broadcast %102 : vector<1x64xf32> to vector<256x64xf32>
    %104 = arith.addf %101, %103 : vector<256x64xf32>
    %105 = math.tanh %104 : vector<256x64xf32>
    %c184 = arith.constant 184 : index
    %c0_29 = arith.constant 0 : index
    %106 = vector.load %arg5[%c184, %c0_29] : memref<272x64xf32, #tpu.memory_space<vmem>>, vector<64x64xf32>
    %cst_30 = arith.constant dense<0.000000e+00> : vector<256x64xf32>
    %107 = tpu.matmul %105, %106, %cst_30 {dimension_numbers = #tpu.dot_dimension_numbers<[1], [0], [0], [1], [0, 0, 1, 1], [], []>} : vector<256x64xf32>, vector<64x64xf32>, vector<256x64xf32> -> vector<256x64xf32>
    %c248 = arith.constant 248 : index
    %c0_31 = arith.constant 0 : index
    %108 = vector.load %arg5[%c248, %c0_31] : memref<272x64xf32, #tpu.memory_space<vmem>>, vector<1x64xf32>
    %109 = vector.broadcast %108 : vector<1x64xf32> to vector<256x64xf32>
    %110 = arith.addf %107, %109 : vector<256x64xf32>
    %111 = math.tanh %110 : vector<256x64xf32>
    %c256 = arith.constant 256 : index
    %c0_32 = arith.constant 0 : index
    %112 = vector.load %arg5[%c256, %c0_32] : memref<272x64xf32, #tpu.memory_space<vmem>>, vector<1x64xf32>
    %113 = vector.broadcast %112 : vector<1x64xf32> to vector<256x64xf32>
    %114 = arith.mulf %111, %113 : vector<256x64xf32>
    %cst_33 = arith.constant dense<0.000000e+00> : vector<256xf32>
    %115 = vector.multi_reduction <add>, %114, %cst_33 [1] : vector<256x64xf32> to vector<256xf32>
    %116 = vector.shape_cast %115 : vector<256xf32> to vector<256x1xf32>
    %c264 = arith.constant 264 : index
    %c0_34 = arith.constant 0 : index
    %117 = vector.load %arg5[%c264, %c0_34] : memref<272x64xf32, #tpu.memory_space<vmem>>, vector<1x1xf32>
    %118 = vector.broadcast %117 : vector<1x1xf32> to vector<256x1xf32>
    %119 = arith.addf %116, %118 : vector<256x1xf32>
    %c0_35 = arith.constant 0 : index
    %c0_36 = arith.constant 0 : index
    %120 = vector.load %arg6[%c0_35, %c0_36] : memref<256x128xf32, #tpu.memory_space<vmem>>, vector<256x30xf32>
    tpu.vector_store %arg6[%c0_35, %c0_36], %27 {strides = array<i32>} : memref<256x128xf32, #tpu.memory_space<vmem>>, vector<256x30xf32>,
    %c0_37 = arith.constant 0 : index
    %c30 = arith.constant 30 : index
    %121 = vector.load %arg6[%c0_37, %c30] : memref<256x128xf32, #tpu.memory_space<vmem>>, vector<256x30xf32>
    tpu.vector_store %arg6[%c0_37, %c30], %47 {strides = array<i32>} : memref<256x128xf32, #tpu.memory_space<vmem>>, vector<256x30xf32>,
    %c0_38 = arith.constant 0 : index
    %c60 = arith.constant 60 : index
    %122 = vector.load %arg6[%c0_38, %c60] : memref<256x128xf32, #tpu.memory_space<vmem>>, vector<256x30xf32>
    tpu.vector_store %arg6[%c0_38, %c60], %67 {strides = array<i32>} : memref<256x128xf32, #tpu.memory_space<vmem>>, vector<256x30xf32>,
    %123 = tpu.iota {dimensions = array<i32: 1>} : vector<256x38xi32>
    %c0_i32 = arith.constant 0 : i32
    %124 = vector.broadcast %c0_i32 : i32 to vector<256x38xi32>
    %125 = arith.cmpi eq, %123, %124 : vector<256x38xi32>
    %c1_i32 = arith.constant 1 : i32
    %126 = vector.broadcast %c1_i32 : i32 to vector<256x38xi32>
    %127 = arith.cmpi eq, %123, %126 : vector<256x38xi32>
    %c2_i32 = arith.constant 2 : i32
    %128 = vector.broadcast %c2_i32 : i32 to vector<256x38xi32>
    %129 = arith.cmpi eq, %123, %128 : vector<256x38xi32>
    %c3_i32 = arith.constant 3 : i32
    %130 = vector.broadcast %c3_i32 : i32 to vector<256x38xi32>
    %131 = arith.cmpi eq, %123, %130 : vector<256x38xi32>
    %cst_39 = arith.constant 0.000000e+00 : f32
    %132 = vector.shape_cast %119 : vector<256x1xf32> to vector<256x1xf32>
    %133 = vector.broadcast %132 : vector<256x1xf32> to vector<256x38xf32>
    %134 = vector.broadcast %cst_39 : f32 to vector<256x38xf32>
    %135 = arith.select %131, %133, %134 : vector<256x38xi1>, vector<256x38xf32>
    %136 = vector.shape_cast %58 : vector<256x1xf32> to vector<256x1xf32>
    %137 = vector.broadcast %136 : vector<256x1xf32> to vector<256x38xf32>
    %138 = arith.select %129, %137, %135 : vector<256x38xi1>, vector<256x38xf32>
    %139 = vector.shape_cast %38 : vector<256x1xf32> to vector<256x1xf32>
    %140 = vector.broadcast %139 : vector<256x1xf32> to vector<256x38xf32>
    %141 = arith.select %127, %140, %138 : vector<256x38xi1>, vector<256x38xf32>
    %142 = vector.shape_cast %18 : vector<256x1xf32> to vector<256x1xf32>
    %143 = vector.broadcast %142 : vector<256x1xf32> to vector<256x38xf32>
    %144 = arith.select %125, %143, %141 : vector<256x38xi1>, vector<256x38xf32>
    %c0_40 = arith.constant 0 : index
    %c90 = arith.constant 90 : index
    %145 = vector.load %arg6[%c0_40, %c90] : memref<256x128xf32, #tpu.memory_space<vmem>>, vector<256x38xf32>
    tpu.vector_store %arg6[%c0_40, %c90], %144 {strides = array<i32>} : memref<256x128xf32, #tpu.memory_space<vmem>>, vector<256x38xf32>,
    return
  }
  func.func @transform_0(%arg0: i32) -> (i32, i32) {
    %c0_i32 = arith.constant 0 : i32
    %c0_i32_0 = arith.constant 0 : i32
    return %arg0, %c0_i32 : i32, i32
  }
  func.func @transform_1(%arg0: i32) -> (i32, i32) {
    %c0_i32 = arith.constant 0 : i32
    %c0_i32_0 = arith.constant 0 : i32
    return %arg0, %c0_i32 : i32, i32
  }
  func.func @transform_2(%arg0: i32) -> (i32, i32) {
    %c0_i32 = arith.constant 0 : i32
    %c0_i32_0 = arith.constant 0 : i32
    return %arg0, %c0_i32 : i32, i32
  }
  func.func @transform_3(%arg0: i32) -> (i32, i32) {
    %c0_i32 = arith.constant 0 : i32
    %c0_i32_0 = arith.constant 0 : i32
    return %arg0, %c0_i32 : i32, i32
  }
  func.func @transform_4(%arg0: i32) -> (i32, i32) {
    %c0_i32 = arith.constant 0 : i32
    %c0_i32_0 = arith.constant 0 : i32
    %c0_i32_1 = arith.constant 0 : i32
    return %c0_i32, %c0_i32_0 : i32, i32
  }
  func.func @transform_5(%arg0: i32) -> (i32, i32) {
    %c0_i32 = arith.constant 0 : i32
    %c0_i32_0 = arith.constant 0 : i32
    return %arg0, %c0_i32 : i32, i32
  }
}

</mosaic_0001>

<bundles_post_ra>
// kernel: tpu_custom_call.1
= control target key start
LH: loop header
LB: loop body
LE: loop exit
PB: predicated region body
PF: predicated region fallthrough
CT: control target
= control target key end

     0   :  { %10 = vsyncpa [#allocation3], 0  ;;  %s11370_s0 = inlined_call_operand.vmem [shape: f32[500,30], index: 0, kind: input, shape index: {}]   ;;  %s11371_s1 = inlined_call_operand.vmem [shape: f32[500,30], index: 1, kind: input, shape index: {}]   ;;  %s11372_s2 = inlined_call_operand.vmem [shape: f32[500,30], index: 2, kind: input, shape index: {}]   ;;  %s11373_s3 = inlined_call_operand.vmem [shape: f32[500,2], index: 3, kind: input, shape index: {}]   ;;  %s11374_s4 = inlined_call_operand.vmem [shape: f32[272,64], index: 4, kind: input, shape index: {}]   ;;  %s11375_s5 = inlined_call_operand.hbm [shape: f32[500,128], index: 5, kind: output, shape index: {}]  }
   0x1   :  { %12 = vsyncpa [#allocation3 + $0x1], 0  ;;  %s8221_s18 = smov 0   ;;  %s8223_s19 = smov 0  }
   0x2   :  { %s8225_s20 = smov 0   ;;  %s8227_s21 = smov 0  }
   0x3 LB: > { %s8242_s22 = sadd.s32 4294967295, %s8180_s21   ;;  %s6316_s23 = sadd.s32 4294967294, %s8180_s21   ;;  %s8180_s21 = sphi %s8227_s21, %s11725_s21   ;;  %s8176_s20 = sphi %s8225_s20, %s11724_s20   ;;  %s8172_s19 = sphi %s8223_s19, %s11723_s19   ;;  %s8168_s18 = sphi %s8221_s18, %s11722_s18  }
   0x4   : > { %s8246_s24 = sadd.s32 1, %s8180_s21   ;;  %s150_s25 = sadd.s32 1, %s8176_s20 }
   0x5   : > { %s147_s26 = ssub.s32 %s8180_s21, %s8246_s24  ;;  %p160_p0 = scmp.ne.s32.totalorder %s8176_s20, %s8172_s19 }
   0x6   : > { %p148_p1 = scmp.eq.s32.totalorder %s147_s26, 0  ;;  %p161_p2 = scmp.eq.s32.totalorder %s8242_s22, 1 }
   0x7   : > { %p166_p3 = scmp.ne.s32.totalorder %s8172_s19, %s8168_s18  ;;  %p167_p4 = scmp.eq.s32.totalorder %s6316_s23, 1 }
   0x8   : > { %s8257_s27 = scalar_select %p148_p1, %s8176_s20, %s150_s25  }
   0x9   : > { %p8259_p5 = por %p161_p2, %p160_p0  ;;  %p8263_p6 = por %p167_p4, %p166_p3 }
   0xa   : > { %p6319_p7 = scmp.ge.s32.totalorder %s8180_s21, 1  ;;  %p256_p8 = scmp.lt.s32.totalorder %s8180_s21, 3 }
   0xc   : > { %p257_p9 = pnand %p6319_p7, %p256_p8 }
   0xe   : > { %260 = sbr.rel (%p257_p9) target bundleno = 2218 (0x8aa), region = 40 }
  0x15   : > { %v376_v0 = vld [vmem:[%s11374_s4] sm:$0xff]  ;;  %v377_v1 = vld [vmem:[%s11374_s4 + $0x8] sm:$0xff]  ;;  %v378_v2 = vld [vmem:[%s11374_s4 + $0x10] sm:$0xff]  ;;  %vm521_vm0 = vcmask 1045504   ;;  %s8279_s11 = sshll.u32 %s8242_s22, 5  ;;  %vm8182_vm1 = vmmov 1  }
  0x16   : > { %v8281_v3 = vpack.c.bf16 %v377_v1, %v376_v0  ;;  %v379_v4 = vld [vmem:[%s11374_s4 + $0x18] sm:$0x3f]  ;;  %p320_p10 = scmp.lt.s32.totalorder %s8279_s11, 62  ;;  %vm8290_vm2 = vmpackc.low %vm521_vm0, %vm8182_vm1  ;;  %vm424_vm3 = vcmask 244736   ;;  %v8378_v39 = vld [vmem:[%s11374_s4 + $0x20] ss:$0 sm:$0xff] }
  0x17   : > { %v8287_v5 = vpack.c.bf16 %v379_v4, %v378_v2  ;;  %v8389_v52 = vld [vmem:[%s11374_s4 + $0x28] ss:$0 sm:$0xff]  ;;  %vm818_vm4 = vcmask 121856   ;;  %vm1315_vm5 = vcmask 1046528   ;;  %vm4499_vm7 = vcmask 523264   ;;  %s8185_s6 = smov 30  }
  0x18   : > { %7355 = vmatprep.subr.bf16.mxu0 %v8281_v3  ;;  %s321_s14 = scalar_select %p320_p10, %s8279_s11, 62  ;;  %vm8504_vm6 = vmpackc.low %vm1315_vm5, %vm8182_vm1  ;;  %vm5549_vm8 = vcmask 490736   ;;  %vm5710_vm9 = vcmask 736736   ;;  %vm6165_vm14 = vcmask 1048272  }
  0x19   : > { %7357 = vmatpush3.bf16.msra.mxu0 %v8281_v3  ;;  %s8186_s7 = smov 60   ;;  %s8187_s25 = smov 90  }
  0x1a   : > { %7360 = vmatprep.subr.msk.bf16.mxu0 %vm8290_vm2, %v8287_v5  ;;  %s8300_s15 = sshll.u32 %s321_s14, 3  ;;  %s6207_s30 = ssub.s32 (%p8259_p5), 63, %s8279_s11 }
  0x1b   : > { %s8306_s23 = scalar_lea.vmem %s11370_s0, %s8300_s15  ;;  %s8553_s17 = scalar_lea.vmem %s11373_s3, %s8300_s15 }
  0x1c   : > { %v388_v7 = vld [vmem:[%s8306_s23] sm:$0xff]  ;;  %v389_v8 = vld [vmem:[%s8306_s23 + $0x8] sm:$0xff]  ;;  %v390_v9 = vld [vmem:[%s8306_s23 + $0x10] sm:$0xff]  ;;  %s8799_s8 = scalar_lea.vmem %s11371_s1, %s8300_s15  ;;  %s8901_s12 = scalar_lea.vmem %s11372_s2, %s8300_s15 }
  0x1d   : > { %7363 = vmatpush3.bf16.msk.msra.mxu0 %vm8290_vm2, %v8287_v5  ;;  %6910 = vmatprep.mubr.msk.f32.mxu0 %vm424_vm3, %v388_v7  ;;  %v391_v10 = vld [vmem:[%s8306_s23 + $0x18] sm:$0xff]  ;;  %v392_v11 = vld [vmem:[%s8306_s23 + $0x20] sm:$0xff]  ;;  %v393_v12 = vld [vmem:[%s8306_s23 + $0x28] sm:$0xff]  ;;  %s312_s15 = sand.u32 1, %s8172_s19   ;;  %p6208_p11 = scmp.lt.s32.totalorder (%p8259_p5), %s6207_s30, 32 }
  0x1e   : > { %v394_v13 = vld [vmem:[%s8306_s23 + $0x30] sm:$0xff]  ;;  %v395_v14 = vld [vmem:[%s8306_s23 + $0x38] sm:$0xff]  ;;  %v396_v15 = vld [vmem:[%s8306_s23 + $0x40] sm:$0xff]  ;;  %s6320_s13 = sshll.u32 %s312_s15, 8  ;;  %s11309_s26 = scalar_lea.sflag [#allocation3], %s312_s15 }
  0x1f   : > { %v397_v16 = vld [vmem:[%s8306_s23 + $0x48] sm:$0xff]  ;;  %v398_v17 = vld [vmem:[%s8306_s23 + $0x50] sm:$0xff]  ;;  %v399_v18 = vld [vmem:[%s8306_s23 + $0x58] sm:$0xff] }
  0x20   : > { %6911 = vmatmul.mubr.msk.f32.vlgmr.msra.gmra.mrb[0].mxu0 %vm424_vm3, %v389_v8  ;;  %v400_v19 = vld [vmem:[%s8306_s23 + $0x60] sm:$0xff]  ;;  %v401_v20 = vld [vmem:[%s8306_s23 + $0x68] sm:$0xff]  ;;  %v402_v21 = vld [vmem:[%s8306_s23 + $0x70] sm:$0xff] }
  0x21   : > { %6913 = vmatprep.mubr.msk.f32.mxu0 %vm424_vm3, %v390_v9  ;;  %v403_v22 = vld [vmem:[%s8306_s23 + $0x78] sm:$0xff]  ;;  %v404_v23 = vld [vmem:[%s8306_s23 + $0x80] sm:$0xff]  ;;  %v405_v24 = vld [vmem:[%s8306_s23 + $0x88] sm:$0xff] }
  0x22   : > { %v406_v25 = vld [vmem:[%s8306_s23 + $0x90] sm:$0xff]  ;;  %v407_v26 = vld [vmem:[%s8306_s23 + $0x98] sm:$0xff]  ;;  %v408_v27 = vld [vmem:[%s8306_s23 + $0xa0] sm:$0xff] }
  0x23   : > { %v409_v28 = vld [vmem:[%s8306_s23 + $0xa8] sm:$0xff]  ;;  %v410_v29 = vld [vmem:[%s8306_s23 + $0xb0] sm:$0xff]  ;;  %v411_v30 = vld [vmem:[%s8306_s23 + $0xb8] sm:$0xff] }
  0x24   : > { %6914 = vmatmul.mubr.msk.f32.gmra.mrb[2].mxu0 %vm424_vm3, %v391_v10  ;;  %v412_v31 = vld [vmem:[%s8306_s23 + $0xc0] sm:$0xff]  ;;  %v413_v32 = vld [vmem:[%s8306_s23 + $0xc8] sm:$0xff]  ;;  %v414_v33 = vld [vmem:[%s8306_s23 + $0xd0] sm:$0xff] }
  0x25   : > { %6916 = vmatprep.mubr.msk.f32.mxu0 %vm424_vm3, %v392_v11  ;;  %v415_v34 = vld [vmem:[%s8306_s23 + $0xd8] sm:$0xff]  ;;  %v416_v35 = vld [vmem:[%s8306_s23 + $0xe0] sm:$0xff]  ;;  %v417_v36 = vld [vmem:[%s8306_s23 + $0xe8] sm:$0xff] }
  0x26   : > { %v418_v37 = vld [vmem:[%s8306_s23 + $0xf0] sm:$0xff]  ;;  %v419_v38 = vld [vmem:[%s8306_s23 + $0xf8] sm:$0xff]  ;;  %s8986_s23 = scalar_lea.vmem [#allocation2], %s6320_s13 }
  0x27   : > { %v1554_v6 = vld [vmem:[%s8799_s8 + $0x50] sm:$0xff] }
  0x28   : > { %6917 = vmatmul.mubr.msk.f32.gmra.mrb[4].mxu0 %vm424_vm3, %v393_v12 }
  0x29   : > { %6919 = vmatprep.mubr.msk.f32.mxu0 %vm424_vm3, %v394_v13 }
  0x2c   : > { %6920 = vmatmul.mubr.msk.f32.gmra.mrb[6].mxu0 %vm424_vm3, %v395_v14 }
  0x2d   : > { %6922 = vmatprep.mubr.msk.f32.mxu0 %vm424_vm3, %v396_v15 }
  0x30   : > { %6923 = vmatmul.mubr.msk.f32.gmra.mrb[8].mxu0 %vm424_vm3, %v397_v16 }
  0x31   : > { %6925 = vmatprep.mubr.msk.f32.mxu0 %vm424_vm3, %v398_v17 }
  0x34   : > { %6926 = vmatmul.mubr.msk.f32.gmra.mrb[10].mxu0 %vm424_vm3, %v399_v18 }
  0x35   : > { %6928 = vmatprep.mubr.msk.f32.mxu0 %vm424_vm3, %v400_v19 }
  0x38   : > { %6929 = vmatmul.mubr.msk.f32.gmra.mrb[12].mxu0 %vm424_vm3, %v401_v20 }
  0x39   : > { %6931 = vmatprep.mubr.msk.f32.mxu0 %vm424_vm3, %v402_v21 }
  0x3c   : > { %6932 = vmatmul.mubr.msk.f32.gmra.mrb[14].mxu0 %vm424_vm3, %v403_v22 }
  0x3d   : > { %6934 = vmatprep.mubr.msk.f32.mxu0 %vm424_vm3, %v404_v23 }
  0x40   : > { %6935 = vmatmul.mubr.msk.f32.gmra.mrb[16].mxu0 %vm424_vm3, %v405_v24 }
  0x41   : > { %6937 = vmatprep.mubr.msk.f32.mxu0 %vm424_vm3, %v406_v25 }
  0x44   : > { %6938 = vmatmul.mubr.msk.f32.gmra.mrb[18].mxu0 %vm424_vm3, %v407_v26 }
  0x45   : > { %6940 = vmatprep.mubr.msk.f32.mxu0 %vm424_vm3, %v408_v27 }
  0x48   : > { %6941 = vmatmul.mubr.msk.f32.gmra.mrb[20].mxu0 %vm424_vm3, %v409_v28 }
  0x49   : > { %6943 = vmatprep.mubr.msk.f32.mxu0 %vm424_vm3, %v410_v29 }
  0x4c   : > { %6944 = vmatmul.mubr.msk.f32.gmra.mrb[22].mxu0 %vm424_vm3, %v411_v30 }
  0x4d   : > { %6946 = vmatprep.mubr.msk.f32.mxu0 %vm424_vm3, %v412_v31 }
  0x50   : > { %6947 = vmatmul.mubr.msk.f32.gmra.mrb[24].mxu0 %vm424_vm3, %v413_v32 }
  0x51   : > { %6949 = vmatprep.mubr.msk.f32.mxu0 %vm424_vm3, %v414_v33 }
  0x54   : > { %6950 = vmatmul.mubr.msk.f32.gmra.mrb[26].mxu0 %vm424_vm3, %v415_v34 }
  0x55   : > { %6952 = vmatprep.mubr.msk.f32.mxu0 %vm424_vm3, %v416_v35 }
  0x58   : > { %6953 = vmatmul.mubr.msk.f32.gmra.mrb[28].mxu0 %vm424_vm3, %v417_v36 }
  0x59   : > { %6955 = vmatprep.mubr.msk.f32.mxu0 %vm424_vm3, %v418_v37 }
  0x5c   : > { %6956 = vmatmul.mubr.msk.f32.gmra.mrb[30].mxu0 %vm424_vm3, %v419_v38 }
  0xf3   : > { %v6912_v40 = vpop.f32.mrb[0].mxu0 }
  0xf4   : > { %v597_v41 = vadd.f32 %v6912_v40, %v8378_v39  ;;  %v591_v42 = vpop.f32.mrb[1].mxu0 }
  0xf5   : > { %v592_v43 = vadd.f32 %v8378_v39, %v591_v42  ;;  %v11376_v42 = vmov 0  }
  0xf6   : > { %7518 = vtanh.f32 %v597_v41  ;;  %7481 = vset.pattern.permute.xlu1 %v11376_v42  ;;  %7480 = vset.pattern.permute.xlu0 %v11376_v42 }
  0xf7   : > { %7520 = vtanh.f32 %v592_v43  ;;  %v6915_v44 = vpop.f32.mrb[2].mxu0 }
  0xf8   : > { %v607_v45 = vadd.f32 %v6915_v44, %v8378_v39  ;;  %v601_v46 = vpop.f32.mrb[3].mxu0 }
  0xf9   : > { %v602_v47 = vadd.f32 %v8378_v39, %v601_v46 }
  0xfa   : > { %7522 = vtanh.f32 %v607_v45 }
  0xfb   : > { %7524 = vtanh.f32 %v602_v47  ;;  %v6918_v48 = vpop.f32.mrb[4].mxu0 }
  0xfc   : > { %v617_v49 = vadd.f32 %v6918_v48, %v8378_v39  ;;  %v611_v50 = vpop.f32.mrb[5].mxu0 }
  0xfd   : > { %v612_v51 = vadd.f32 %v8378_v39, %v611_v50 }
  0xfe   : > { %7526 = vtanh.f32 %v617_v49 }
  0xff   : > { %7528 = vtanh.f32 %v612_v51  ;;  %v6921_v53 = vpop.f32.mrb[6].mxu0 }
 0x100   : > { %v7519_v54 = vpop.eup %7518  ;;  %v627_v55 = vadd.f32 %v6921_v53, %v8378_v39  ;;  %v621_v56 = vpop.f32.mrb[7].mxu0 }
 0x101   : > { %v7521_v57 = vpop.eup %7520  ;;  %v787_v58 = vmul.f32 %v7519_v54, %v8389_v52  ;;  %v622_v59 = vadd.f32 %v8378_v39, %v621_v56 }
 0x102   : > { %7530 = vtanh.f32 %v627_v55  ;;  %v786_v62 = vmul.f32 %v7521_v57, %v8389_v52 }
 0x103   : > { %v822_v60 = vsel %vm818_vm4, %v787_v58, 0.0  ;;  %7532 = vtanh.f32 %v622_v59  ;;  %v6924_v61 = vpop.f32.mrb[8].mxu0 }
 0x104   : > { %v7523_v63 = vpop.eup %7522  ;;  %823 = vadd.xlane.f32.xlu0 %v822_v60  ;;  %v637_v0 = vadd.f32 %v6924_v61, %v8378_v39  ;;  %v631_v1 = vpop.f32.mrb[9].mxu0  ;;  %v819_v9 = vsel %vm818_vm4, %v786_v62, 0.0 }
 0x105   : > { %v7525_v2 = vpop.eup %7524  ;;  %v789_v4 = vmul.f32 %v7523_v63, %v8389_v52  ;;  %v632_v7 = vadd.f32 %v8378_v39, %v631_v1 }
 0x106   : > { %7534 = vtanh.f32 %v637_v0  ;;  %v788_v11 = vmul.f32 %v7525_v2, %v8389_v52 }
 0x107   : > { %v828_v8 = vsel %vm818_vm4, %v789_v4, 0.0  ;;  %7536 = vtanh.f32 %v632_v7  ;;  %v6927_v10 = vpop.f32.mrb[10].mxu0 }
 0x108   : > { %v7527_v12 = vpop.eup %7526  ;;  %829 = vadd.xlane.f32.xlu1 %v828_v8  ;;  %820 = vadd.xlane.f32.xlu0 %v819_v9  ;;  %v647_v13 = vadd.f32 %v6927_v10, %v8378_v39  ;;  %v641_v14 = vpop.f32.mrb[11].mxu0  ;;  %v825_v19 = vsel %vm818_vm4, %v788_v11, 0.0 }
 0x109   : > { %v7529_v15 = vpop.eup %7528  ;;  %v642_v16 = vadd.f32 %v8378_v39, %v641_v14  ;;  %v791_v17 = vmul.f32 %v7527_v12, %v8389_v52 }
 0x10a   : > { %7538 = vtanh.f32 %v647_v13  ;;  %v790_v18 = vmul.f32 %v7529_v15, %v8389_v52 }
 0x10b   : > { %7540 = vtanh.f32 %v642_v16  ;;  %v6930_v20 = vpop.f32.mrb[12].mxu0  ;;  %v834_v26 = vsel %vm818_vm4, %v791_v17, 0.0 }
 0x10c   : > { %v7531_v21 = vpop.eup %7530  ;;  %826 = vadd.xlane.f32.xlu1 %v825_v19  ;;  %v657_v22 = vadd.f32 %v6930_v20, %v8378_v39  ;;  %v831_v23 = vsel %vm818_vm4, %v790_v18, 0.0  ;;  %v651_v24 = vpop.f32.mrb[13].mxu0 }
 0x10d   : > { %v7533_v25 = vpop.eup %7532  ;;  %832 = vadd.xlane.f32.xlu0 %v831_v23  ;;  %v652_v27 = vadd.f32 %v8378_v39, %v651_v24  ;;  %v793_v28 = vmul.f32 %v7531_v21, %v8389_v52 }
 0x10e   : > { %7542 = vtanh.f32 %v657_v22  ;;  %v792_v29 = vmul.f32 %v7533_v25, %v8389_v52 }
 0x10f   : > { %7544 = vtanh.f32 %v652_v27  ;;  %v6933_v30 = vpop.f32.mrb[14].mxu0  ;;  %v840_v36 = vsel %vm818_vm4, %v793_v28, 0.0 }
 0x110   : > { %v7535_v31 = vpop.eup %7534  ;;  %835 = vadd.xlane.f32.xlu1 %v834_v26  ;;  %v667_v32 = vadd.f32 %v6933_v30, %v8378_v39  ;;  %v661_v33 = vpop.f32.mrb[15].mxu0  ;;  %v837_v34 = vsel %vm818_vm4, %v792_v29, 0.0 }
 0x111   : > { %v7537_v35 = vpop.eup %7536  ;;  %v662_v37 = vadd.f32 %v8378_v39, %v661_v33  ;;  %v795_v38 = vmul.f32 %v7535_v31, %v8389_v52  ;;  %838 = vadd.xlane.f32.xlu0 %v837_v34 }
 0x112   : > { %7546 = vtanh.f32 %v667_v32  ;;  %v794_v40 = vmul.f32 %v7537_v35, %v8389_v52 }
 0x113   : > { %7548 = vtanh.f32 %v662_v37  ;;  %v6936_v41 = vpop.f32.mrb[16].mxu0  ;;  %v846_v48 = vsel %vm818_vm4, %v795_v38, 0.0 }
 0x114   : > { %v7539_v43 = vpop.eup %7538  ;;  %841 = vadd.xlane.f32.xlu1 %v840_v36  ;;  %v677_v44 = vadd.f32 %v6936_v41, %v8378_v39  ;;  %v671_v45 = vpop.f32.mrb[17].mxu0  ;;  %v843_v46 = vsel %vm818_vm4, %v794_v40, 0.0 }
 0x115   : > { %v7541_v47 = vpop.eup %7540  ;;  %v672_v49 = vadd.f32 %v8378_v39, %v671_v45  ;;  %v797_v50 = vmul.f32 %v7539_v43, %v8389_v52  ;;  %844 = vadd.xlane.f32.xlu0 %v843_v46 }
 0x116   : > { %7550 = vtanh.f32 %v677_v44  ;;  %v796_v51 = vmul.f32 %v7541_v47, %v8389_v52 }
 0x117   : > { %7552 = vtanh.f32 %v672_v49  ;;  %v6939_v53 = vpop.f32.mrb[18].mxu0  ;;  %v852_v59 = vsel %vm818_vm4, %v797_v50, 0.0 }
 0x118   : > { %v7543_v54 = vpop.eup %7542  ;;  %847 = vadd.xlane.f32.xlu1 %v846_v48  ;;  %v687_v55 = vadd.f32 %v6939_v53, %v8378_v39  ;;  %v681_v56 = vpop.f32.mrb[19].mxu0  ;;  %v849_v57 = vsel %vm818_vm4, %v796_v51, 0.0 }
 0x119   : > { %v7545_v58 = vpop.eup %7544  ;;  %v682_v60 = vadd.f32 %v8378_v39, %v681_v56  ;;  %v799_v61 = vmul.f32 %v7543_v54, %v8389_v52  ;;  %850 = vadd.xlane.f32.xlu0 %v849_v57 }
 0x11a   : > { %7554 = vtanh.f32 %v687_v55  ;;  %v798_v62 = vmul.f32 %v7545_v58, %v8389_v52 }
 0x11b   : > { %7556 = vtanh.f32 %v682_v60  ;;  %v6942_v63 = vpop.f32.mrb[20].mxu0  ;;  %v858_v8 = vsel %vm818_vm4, %v799_v61, 0.0 }
 0x11c   : > { %v7547_v0 = vpop.eup %7546  ;;  %853 = vadd.xlane.f32.xlu1 %v852_v59  ;;  %v697_v1 = vadd.f32 %v6942_v63, %v8378_v39  ;;  %v691_v2 = vpop.f32.mrb[21].mxu0  ;;  %v855_v4 = vsel %vm818_vm4, %v798_v62, 0.0 }
 0x11d   : > { %v7549_v7 = vpop.eup %7548  ;;  %v692_v9 = vadd.f32 %v8378_v39, %v691_v2  ;;  %v801_v10 = vmul.f32 %v7547_v0, %v8389_v52  ;;  %856 = vadd.xlane.f32.xlu0 %v855_v4 }
 0x11e   : > { %7558 = vtanh.f32 %v697_v1  ;;  %v800_v11 = vmul.f32 %v7549_v7, %v8389_v52 }
 0x11f   : > { %7560 = vtanh.f32 %v692_v9  ;;  %v6945_v12 = vpop.f32.mrb[22].mxu0  ;;  %v864_v18 = vsel %vm818_vm4, %v801_v10, 0.0 }
 0x120   : > { %v7551_v13 = vpop.eup %7550  ;;  %859 = vadd.xlane.f32.xlu1 %v858_v8  ;;  %v707_v14 = vadd.f32 %v6945_v12, %v8378_v39  ;;  %v701_v15 = vpop.f32.mrb[23].mxu0  ;;  %v861_v16 = vsel %vm818_vm4, %v800_v11, 0.0 }
 0x121   : > { %v7553_v17 = vpop.eup %7552  ;;  %v702_v19 = vadd.f32 %v8378_v39, %v701_v15  ;;  %v803_v20 = vmul.f32 %v7551_v13, %v8389_v52  ;;  %862 = vadd.xlane.f32.xlu0 %v861_v16 }
 0x122   : > { %7562 = vtanh.f32 %v707_v14  ;;  %v802_v21 = vmul.f32 %v7553_v17, %v8389_v52 }
 0x123   : > { %7564 = vtanh.f32 %v702_v19  ;;  %v6948_v22 = vpop.f32.mrb[24].mxu0  ;;  %v870_v28 = vsel %vm818_vm4, %v803_v20, 0.0 }
 0x124   : > { %v7555_v23 = vpop.eup %7554  ;;  %865 = vadd.xlane.f32.xlu1 %v864_v18  ;;  %v717_v24 = vadd.f32 %v6948_v22, %v8378_v39  ;;  %v711_v25 = vpop.f32.mrb[25].mxu0  ;;  %v867_v26 = vsel %vm818_vm4, %v802_v21, 0.0 }
 0x125   : > { %v7557_v27 = vpop.eup %7556  ;;  %v712_v29 = vadd.f32 %v8378_v39, %v711_v25  ;;  %v805_v30 = vmul.f32 %v7555_v23, %v8389_v52  ;;  %868 = vadd.xlane.f32.xlu0 %v867_v26  ;;  %v8486_v23 = vld [vmem:[%s11374_s4 + $0x30] ss:$0 sm:$0xff] }
 0x126   : > { %7566 = vtanh.f32 %v717_v24  ;;  %v804_v31 = vmul.f32 %v7557_v27, %v8389_v52 }
 0x127   : > { %7568 = vtanh.f32 %v712_v29  ;;  %v6951_v32 = vpop.f32.mrb[26].mxu0  ;;  %v876_v38 = vsel %vm818_vm4, %v805_v30, 0.0 }
 0x128   : > { %v7559_v33 = vpop.eup %7558  ;;  %871 = vadd.xlane.f32.xlu1 %v870_v28  ;;  %v727_v34 = vadd.f32 %v6951_v32, %v8378_v39  ;;  %v721_v35 = vpop.f32.mrb[27].mxu0  ;;  %v873_v36 = vsel %vm818_vm4, %v804_v31, 0.0 }
 0x129   : > { %v7561_v37 = vpop.eup %7560  ;;  %v722_v40 = vadd.f32 %v8378_v39, %v721_v35  ;;  %v807_v41 = vmul.f32 %v7559_v33, %v8389_v52  ;;  %874 = vadd.xlane.f32.xlu0 %v873_v36 }
 0x12a   : > { %7570 = vtanh.f32 %v727_v34  ;;  %v806_v43 = vmul.f32 %v7561_v37, %v8389_v52 }
 0x12b   : > { %7572 = vtanh.f32 %v722_v40  ;;  %v6954_v44 = vpop.f32.mrb[28].mxu0  ;;  %v882_v50 = vsel %vm818_vm4, %v807_v41, 0.0  ;;  %v386_v40 = vld [vmem:[%s11374_s4 + $0x50] sm:$0x7f] }
 0x12c   : > { %v7563_v45 = vpop.eup %7562  ;;  %877 = vadd.xlane.f32.xlu1 %v876_v38  ;;  %v737_v46 = vadd.f32 %v6954_v44, %v8378_v39  ;;  %v731_v47 = vpop.f32.mrb[29].mxu0  ;;  %v879_v48 = vsel %vm818_vm4, %v806_v43, 0.0  ;;  %v385_v38 = vld [vmem:[%s11374_s4 + $0x48] sm:$0xff] }
 0x12d   : > { %v7565_v49 = vpop.eup %7564  ;;  %v732_v51 = vadd.f32 %v8378_v39, %v731_v47  ;;  %v809_v53 = vmul.f32 %v7563_v45, %v8389_v52  ;;  %880 = vadd.xlane.f32.xlu0 %v879_v48  ;;  %v8500_v41 = vpack.c.bf16 %v386_v40, %v385_v38 }
 0x12e   : > { %7574 = vtanh.f32 %v737_v46  ;;  %v808_v54 = vmul.f32 %v7565_v49, %v8389_v52 }
 0x12f   : > { %7576 = vtanh.f32 %v732_v51  ;;  %v6957_v55 = vpop.f32.mrb[30].mxu0  ;;  %v888_v61 = vsel %vm818_vm4, %v809_v53, 0.0  ;;  %7366 = vmatprep.subr.msk.bf16.mxu1 %vm8504_vm6, %v8500_v41  ;;  %7382 = vmatprep.subr.msk.bf16.mxu0 %vm8504_vm6, %v8500_v41 }
 0x130   : > { %v7567_v56 = vpop.eup %7566  ;;  %883 = vadd.xlane.f32.xlu1 %v882_v50  ;;  %v747_v57 = vadd.f32 %v6957_v55, %v8378_v39  ;;  %v741_v58 = vpop.f32.mrb[31].mxu0  ;;  %v885_v59 = vsel %vm818_vm4, %v808_v54, 0.0  ;;  %7369 = vmatpush3.bf16.msk.msra.mxu1 %vm8504_vm6, %v8500_v41 }
 0x131   : > { %v7569_v60 = vpop.eup %7568  ;;  %v811_v62 = vmul.f32 %v7567_v56, %v8389_v52  ;;  %v742_v63 = vadd.f32 %v8378_v39, %v741_v58  ;;  %886 = vadd.xlane.f32.xlu0 %v885_v59  ;;  %7385 = vmatpush3.bf16.msk.msra.mxu0 %vm8504_vm6, %v8500_v41 }
 0x132   : > { %7578 = vtanh.f32 %v747_v57  ;;  %v810_v0 = vmul.f32 %v7569_v60, %v8389_v52  ;;  %7371 = vmatprep.subr.bf16.mxu1 %v8281_v3  ;;  %7398 = vmatprep.subr.msk.bf16.mxu0 %vm8504_vm6, %v8500_v41 }
 0x133   : > { %7580 = vtanh.f32 %v742_v63  ;;  %v894_v7 = vsel %vm818_vm4, %v811_v62, 0.0 }
 0x134   : > { %v7571_v1 = vpop.eup %7570  ;;  %889 = vadd.xlane.f32.xlu1 %v888_v61  ;;  %v891_v2 = vsel %vm818_vm4, %v810_v0, 0.0 }
 0x135   : > { %v7573_v4 = vpop.eup %7572  ;;  %v813_v8 = vmul.f32 %v7571_v1, %v8389_v52  ;;  %892 = vadd.xlane.f32.xlu0 %v891_v2 }
 0x136   : > { %v812_v9 = vmul.f32 %v7573_v4, %v8389_v52 }
 0x137   : > { %v900_v12 = vsel %vm818_vm4, %v813_v8, 0.0 }
 0x138   : > { %v7575_v10 = vpop.eup %7574  ;;  %895 = vadd.xlane.f32.xlu1 %v894_v7  ;;  %v897_v39 = vsel %vm818_vm4, %v812_v9, 0.0 }
 0x139   : > { %v7577_v11 = vpop.eup %7576  ;;  %v815_v13 = vmul.f32 %v7575_v10, %v8389_v52  ;;  %898 = vadd.xlane.f32.xlu0 %v897_v39 }
 0x13a   : > { %v814_v14 = vmul.f32 %v7577_v11, %v8389_v52 }
 0x13b   : > { %v906_v18 = vsel %vm818_vm4, %v815_v13, 0.0 }
 0x13c   : > { %v7579_v15 = vpop.eup %7578  ;;  %901 = vadd.xlane.f32.xlu1 %v900_v12  ;;  %v903_v16 = vsel %vm818_vm4, %v814_v14, 0.0 }
 0x13d   : > { %v7581_v17 = vpop.eup %7580  ;;  %v817_v19 = vmul.f32 %v7579_v15, %v8389_v52  ;;  %904 = vadd.xlane.f32.xlu0 %v903_v16 }
 0x13e   : > { %v816_v20 = vmul.f32 %v7581_v17, %v8389_v52 }
 0x13f   : > { %v912_v22 = vsel %vm818_vm4, %v817_v19, 0.0 }
 0x140   : > { %907 = vadd.xlane.f32.xlu1 %v906_v18  ;;  %v909_v21 = vsel %vm818_vm4, %v816_v20, 0.0 }
 0x141   : > { %910 = vadd.xlane.f32.xlu0 %v909_v21 }
 0x144   : > { %913 = vadd.xlane.f32.xlu1 %v912_v22 }
 0x191   : > { %v824_v24 = vpop.xlane.xlu0 %823 }
 0x192   : > { %v920_v25 = vadd.f32 %v8486_v23, %v824_v24 }
 0x194   : > { %958 = vperm.xlu1 %7481, %v920_v25  }
 0x195   : > { %v830_v26 = vpop.xlane.xlu1 %829  ;;  %v821_v27 = vpop.xlane.xlu0 %820 }
 0x196   : > { %v922_v52 = vadd.f32 %v8486_v23, %v830_v26  ;;  %v919_v28 = vadd.f32 %v8486_v23, %v821_v27 }
 0x198   : > { %968 = vperm.xlu1 %7481, %v922_v52   ;;  %953 = vperm.xlu0 %7480, %v919_v28  }
 0x199   : > { %v827_v29 = vpop.xlane.xlu1 %826 }
 0x19a   : > { %v921_v30 = vadd.f32 %v8486_v23, %v827_v29  ;;  %v833_v31 = vpop.xlane.xlu0 %832 }
 0x19b   : > { %v923_v36 = vadd.f32 %v8486_v23, %v833_v31 }
 0x19c   : > { %963 = vperm.xlu1 %7481, %v921_v30  }
 0x19d   : > { %v836_v32 = vpop.xlane.xlu1 %835 }
 0x19e   : > { %v924_v33 = vadd.f32 %v8486_v23, %v836_v32  ;;  %v839_v34 = vpop.xlane.xlu0 %838  ;;  %v3790_v32 = vld [vmem:[%s8553_s17] sm:$0xff] }
 0x19f   : > { %v925_v49 = vadd.f32 %v8486_v23, %v839_v34 }
 0x1a0   : > { %978 = vperm.xlu1 %7481, %v924_v33   ;;  %v8559_v33 = vld [vmem:[%s11374_s4 + $0x38] ss:$0 sm:$0xff] }
 0x1a1   : > { %v842_v35 = vpop.xlane.xlu1 %841 }
 0x1a2   : > { %v845_v37 = vpop.xlane.xlu0 %844  ;;  %v926_v43 = vadd.f32 %v8486_v23, %v842_v35 }
 0x1a3   : > { %v927_v53 = vadd.f32 %v8486_v23, %v845_v37 }
 0x1a4   : > { %973 = vperm.xlu1 %7481, %v923_v36  }
 0x1a5   : > { %v848_v45 = vpop.xlane.xlu1 %847 }
 0x1a6   : > { %v928_v46 = vadd.f32 %v8486_v23, %v848_v45  ;;  %v851_v47 = vpop.xlane.xlu0 %850 }
 0x1a7   : > { %v929_v57 = vadd.f32 %v8486_v23, %v851_v47 }
 0x1a8   : > { %998 = vperm.xlu0 %7480, %v928_v46   ;;  %988 = vperm.xlu1 %7481, %v926_v43  }
 0x1a9   : > { %v854_v48 = vpop.xlane.xlu1 %853 }
 0x1aa   : > { %v930_v50 = vadd.f32 %v8486_v23, %v854_v48  ;;  %v857_v51 = vpop.xlane.xlu0 %856 }
 0x1ab   : > { %v931_v61 = vadd.f32 %v8486_v23, %v857_v51 }
 0x1ac   : > { %1008 = vperm.xlu0 %7480, %v930_v50   ;;  %983 = vperm.xlu1 %7481, %v925_v49  }
 0x1ad   : > { %v860_v54 = vpop.xlane.xlu1 %859 }
 0x1ae   : > { %v932_v55 = vadd.f32 %v8486_v23, %v860_v54  ;;  %v863_v56 = vpop.xlane.xlu0 %862 }
 0x1af   : > { %v933_v1 = vadd.f32 %v8486_v23, %v863_v56 }
 0x1b0   : > { %1018 = vperm.xlu0 %7480, %v932_v55   ;;  %993 = vperm.xlu1 %7481, %v927_v53  }
 0x1b1   : > { %v866_v58 = vpop.xlane.xlu1 %865 }
 0x1b2   : > { %v934_v59 = vadd.f32 %v8486_v23, %v866_v58  ;;  %v869_v60 = vpop.xlane.xlu0 %868 }
 0x1b3   : > { %v935_v8 = vadd.f32 %v8486_v23, %v869_v60 }
 0x1b4   : > { %1028 = vperm.xlu0 %7480, %v934_v59   ;;  %1003 = vperm.xlu1 %7481, %v929_v57  }
 0x1b5   : > { %v872_v62 = vpop.xlane.xlu1 %871 }
 0x1b6   : > { %v936_v63 = vadd.f32 %v8486_v23, %v872_v62  ;;  %v875_v0 = vpop.xlane.xlu0 %874  ;;  %v8605_v62 = vld [vmem:[%s8553_s17 + $0x8] sm:$0xff] }
 0x1b7   : > { %v937_v11 = vadd.f32 %v8486_v23, %v875_v0  ;;  %v11378_v0 = vmov 1  }
 0x1b8   : > { %1038 = vperm.xlu0 %7480, %v936_v63   ;;  %1013 = vperm.xlu1 %7481, %v931_v61  }
 0x1b9   : > { %v878_v2 = vpop.xlane.xlu1 %877 }
 0x1ba   : > { %v938_v4 = vadd.f32 %v8486_v23, %v878_v2  ;;  %v881_v7 = vpop.xlane.xlu0 %880 }
 0x1bb   : > { %v939_v15 = vadd.f32 %v8486_v23, %v881_v7 }
 0x1bc   : > { %1048 = vperm.xlu0 %7480, %v938_v4   ;;  %1023 = vperm.xlu1 %7481, %v933_v1  }
 0x1bd   : > { %v884_v9 = vpop.xlane.xlu1 %883 }
 0x1be   : > { %v940_v10 = vadd.f32 %v8486_v23, %v884_v9  ;;  %v887_v39 = vpop.xlane.xlu0 %886 }
 0x1bf   : > { %v941_v18 = vadd.f32 %v8486_v23, %v887_v39  ;;  %v3793_v39 = vld [vmem:[%s8553_s17 + $0x18] sm:$0xff] }
 0x1c0   : > { %1058 = vperm.xlu0 %7480, %v940_v10   ;;  %1033 = vperm.xlu1 %7481, %v935_v8  }
 0x1c1   : > { %v890_v12 = vpop.xlane.xlu1 %889 }
 0x1c2   : > { %v942_v13 = vadd.f32 %v8486_v23, %v890_v12  ;;  %v893_v14 = vpop.xlane.xlu0 %892 }
 0x1c3   : > { %v943_v22 = vadd.f32 %v8486_v23, %v893_v14 }
 0x1c4   : > { %1068 = vperm.xlu0 %7480, %v942_v13   ;;  %1043 = vperm.xlu1 %7481, %v937_v11  }
 0x1c5   : > { %v896_v16 = vpop.xlane.xlu1 %895 }
 0x1c6   : > { %v944_v17 = vadd.f32 %v8486_v23, %v896_v16  ;;  %v899_v20 = vpop.xlane.xlu0 %898 }
 0x1c7   : > { %v945_v27 = vadd.f32 %v8486_v23, %v899_v20 }
 0x1c8   : > { %1078 = vperm.xlu0 %7480, %v944_v17   ;;  %1053 = vperm.xlu1 %7481, %v939_v15  }
 0x1c9   : > { %v902_v19 = vpop.xlane.xlu1 %901 }
 0x1ca   : > { %v946_v21 = vadd.f32 %v8486_v23, %v902_v19  ;;  %v905_v26 = vpop.xlane.xlu0 %904 }
 0x1cb   : > { %v947_v29 = vadd.f32 %v8486_v23, %v905_v26 }
 0x1cc   : > { %1088 = vperm.xlu0 %7480, %v946_v21   ;;  %1063 = vperm.xlu1 %7481, %v941_v18  }
 0x1cd   : > { %v908_v24 = vpop.xlane.xlu1 %907 }
 0x1ce   : > { %v948_v25 = vadd.f32 %v8486_v23, %v908_v24  ;;  %v911_v30 = vpop.xlane.xlu0 %910 }
 0x1cf   : > { %v949_v31 = vadd.f32 %v8486_v23, %v911_v30 }
 0x1d0   : > { %1098 = vperm.xlu0 %7480, %v948_v25   ;;  %1073 = vperm.xlu1 %7481, %v943_v22  }
 0x1d1   : > { %v914_v52 = vpop.xlane.xlu1 %913 }
 0x1d2   : > { %v950_v28 = vadd.f32 %v8486_v23, %v914_v52  ;;  %v8568_v23 = vld [vmem:[%s11374_s4 + $0x40] ss:$0 sm:$0xff] }
 0x1d4   : > { %1108 = vperm.xlu0 %7480, %v950_v28   ;;  %1083 = vperm.xlu1 %7481, %v945_v27   ;;  %v3795_v28 = vld [vmem:[%s8553_s17 + $0x28] sm:$0xff] }
 0x1d8   : > { %1093 = vperm.xlu1 %7481, %v947_v29   ;;  %7482 = vset.pattern.permute.xlu0 %v11378_v0 }
 0x1d9   : > { %4223 = vperm.xlu0 %7482, %v3790_v32  }
 0x1dc   : > { %1103 = vperm.xlu1 %7481, %v949_v31  }
 0x1e0   : > { %3996 = vperm.xlu1 %7481, %v3790_v32  }
 0x1e4   : > { %7483 = vset.pattern.permute.xlu1 %v11378_v0 }
 0x1e5   : > { %4227 = vperm.xlu1 %7483, %v8605_v62  }
 0x1e9   : > { %7484 = vset.pattern.permute.xlu1 %v11376_v42 }
 0x1ea   : > { %4011 = vperm.xlu1 %7484, %v3793_v39  }
 0x1ee   : > { %7485 = vset.pattern.permute.xlu1 %v11378_v0 }
 0x1ef   : > { %4235 = vperm.xlu1 %7485, %v3793_v39   ;;  %v3792_v39 = vld [vmem:[%s8553_s17 + $0x10] sm:$0xff] }
 0x1f0   : > { %4231 = vperm.xlu0 %7482, %v3792_v39  }
 0x1f3   : > { %7486 = vset.pattern.permute.xlu1 %v11376_v42 }
 0x1f4   : > { %4021 = vperm.xlu1 %7486, %v3795_v28  }
 0x1f8   : > { %7487 = vset.pattern.permute.xlu1 %v11378_v0 }
 0x1f9   : > { %4243 = vperm.xlu1 %7487, %v3795_v28  }
 0x1fd   : > { %7488 = vset.pattern.permute.xlu1 %v11376_v42 }
 0x213   : > { %v8561_v34 = vpop.permute.xlu1 %958 }
 0x214   : > { %11489 = vst [vmem:[#allocation5_spill] sm:$0xff] %v8561_v34  ;;  %v1116_v35 = vmul.f32 %v8559_v33, %v8561_v34 }
 0x216   : > { %v1152_v40 = vadd.f32 %v8568_v23, %v1116_v35 }
 0x217   : > { %v8570_v36 = vpop.permute.xlu1 %968  ;;  %v8572_v37 = vpop.permute.xlu0 %953 }
 0x218   : > { %11490 = vst [vmem:[#allocation6_spill] sm:$0xff] %v8572_v37  ;;  %v1115_v38 = vmul.f32 %v8559_v33, %v8572_v37  ;;  %v1118_v43 = vmul.f32 %v8559_v33, %v8570_v36 }
 0x21a   : > { %v1151_v45 = vadd.f32 %v8568_v23, %v1115_v38  ;;  %v1154_v48 = vadd.f32 %v8568_v23, %v1118_v43 }
 0x21b   : > { %v8580_v46 = vpop.permute.xlu1 %963 }
 0x21c   : > { %v1117_v47 = vmul.f32 %v8559_v33, %v8580_v46  ;;  %7582 = vtanh.f32 %v1151_v45 }
 0x21d   : > { %7584 = vtanh.f32 %v1152_v40 }
 0x21e   : > { %v1153_v49 = vadd.f32 %v8568_v23, %v1117_v47 }
 0x21f   : > { %v8586_v50 = vpop.permute.xlu1 %978 }
 0x220   : > { %7586 = vtanh.f32 %v1153_v49  ;;  %v1120_v51 = vmul.f32 %v8559_v33, %v8586_v50 }
 0x221   : > { %7588 = vtanh.f32 %v1154_v48 }
 0x222   : > { %v1156_v55 = vadd.f32 %v8568_v23, %v1120_v51 }
 0x223   : > { %v8590_v53 = vpop.permute.xlu1 %973 }
 0x224   : > { %v1119_v54 = vmul.f32 %v8559_v33, %v8590_v53 }
 0x226   : > { %v1155_v56 = vadd.f32 %v8568_v23, %v1119_v54  ;;  %v7583_v57 = vpop.eup %7582 }
 0x227   : > { %v8596_v58 = vpop.permute.xlu1 %988  ;;  %v8598_v59 = vpop.permute.xlu0 %998  ;;  %6962 = vmatprep.mubr.msk.f32.mxu1 %vm818_vm4, %v7583_v57 }
 0x228   : > { %11491 = vst [vmem:[#allocation7_spill] sm:$0xff] %v8596_v58  ;;  %v7585_v60 = vpop.eup %7584  ;;  %7590 = vtanh.f32 %v1155_v56  ;;  %v1122_v61 = vmul.f32 %v8559_v33, %v8596_v58  ;;  %v1124_v9 = vmul.f32 %v8559_v33, %v8598_v59 }
 0x229   : > { %7592 = vtanh.f32 %v1156_v55  ;;  %6963 = vmatmul.mubr.msk.f32.vlgmr.msra.gmra.mrb[0].mxu1 %vm818_vm4, %v7585_v60 }
 0x22a   : > { %v7587_v63 = vpop.eup %7586  ;;  %7373 = vmatpush3.bf16.msra.mxu1 %v8281_v3  ;;  %v1158_v8 = vadd.f32 %v8568_v23, %v1122_v61  ;;  %v1160_v14 = vadd.f32 %v8568_v23, %v1124_v9 }
 0x22b   : > { %v8609_v1 = vpop.permute.xlu1 %983  ;;  %6965 = vmatprep.mubr.msk.f32.mxu1 %vm818_vm4, %v7587_v63  ;;  %v8612_v2 = vpop.permute.xlu0 %1008  ;;  %7376 = vmatprep.subr.msk.bf16.mxu1 %vm8290_vm2, %v8287_v5 }
 0x22c   : > { %11492 = vst [vmem:[#allocation8_spill] sm:$0xff] %v8612_v2  ;;  %v7589_v4 = vpop.eup %7588  ;;  %v1121_v7 = vmul.f32 %v8559_v33, %v8609_v1  ;;  %v1126_v15 = vmul.f32 %v8559_v33, %v8612_v2 }
 0x22d   : > { %6966 = vmatmul.mubr.msk.f32.gmra.mrb[2].mxu1 %vm818_vm4, %v7589_v4  ;;  %v3797_v4 = vld [vmem:[%s8553_s17 + $0x38] sm:$0xff] }
 0x22e   : > { %v1157_v10 = vadd.f32 %v8568_v23, %v1121_v7  ;;  %7379 = vmatpush3.bf16.msk.msra.mxu1 %vm8290_vm2, %v8287_v5  ;;  %v1162_v22 = vadd.f32 %v8568_v23, %v1126_v15  ;;  %4031 = vperm.xlu1 %7488, %v3797_v4  }
 0x22f   : > { %v8630_v11 = vpop.permute.xlu1 %993  ;;  %v8632_v12 = vpop.permute.xlu0 %1018  ;;  %7387 = vmatprep.subr.bf16.mxu1 %v8281_v3 }
 0x230   : > { %11493 = vst [vmem:[#allocation9_spill] sm:$0xff] %v8632_v12  ;;  %7594 = vtanh.f32 %v1157_v10  ;;  %v1123_v13 = vmul.f32 %v8559_v33, %v8630_v11  ;;  %v1128_v24 = vmul.f32 %v8559_v33, %v8632_v12 }
 0x231   : > { %7596 = vtanh.f32 %v1158_v8 }
 0x232   : > { %v7591_v16 = vpop.eup %7590  ;;  %v1159_v17 = vadd.f32 %v8568_v23, %v1123_v13  ;;  %v1164_v29 = vadd.f32 %v8568_v23, %v1128_v24  ;;  %v3794_v24 = vld [vmem:[%s8553_s17 + $0x20] sm:$0xff]  ;;  %7489 = vset.pattern.permute.xlu1 %v11378_v0 }
 0x233   : > { %v7593_v18 = vpop.eup %7592  ;;  %v8642_v19 = vpop.permute.xlu1 %1003  ;;  %6968 = vmatprep.mubr.msk.f32.mxu1 %vm818_vm4, %v7591_v16  ;;  %4239 = vperm.xlu0 %7482, %v3794_v24  }
 0x234   : > { %11494 = vst [vmem:[#allocation10_spill] sm:$0xff] %v8642_v19  ;;  %v8645_v20 = vpop.permute.xlu0 %1028  ;;  %7598 = vtanh.f32 %v1159_v17  ;;  %v1125_v21 = vmul.f32 %v8559_v33, %v8642_v19  ;;  %6969 = vmatmul.mubr.msk.f32.gmra.mrb[4].mxu1 %vm818_vm4, %v7593_v18  ;;  %4251 = vperm.xlu1 %7489, %v3797_v4  }
 0x235   : > { %11495 = vst [vmem:[#allocation11_spill] sm:$0xff] %v8645_v20  ;;  %7600 = vtanh.f32 %v1160_v14  ;;  %v1130_v30 = vmul.f32 %v8559_v33, %v8645_v20  ;;  %v8108_v20 = vld [vmem:[%s8553_s17 + $0xb0] sm:$0xff] }
 0x236   : > { %v1161_v25 = vadd.f32 %v8568_v23, %v1125_v21 }
 0x237   : > { %v8655_v26 = vpop.permute.xlu1 %1013  ;;  %v1166_v45 = vadd.f32 %v8568_v23, %v1130_v30 }
 0x238   : > { %11496 = vst [vmem:[#allocation12_spill] sm:$0xff] %v8655_v26  ;;  %v8657_v27 = vpop.permute.xlu0 %1038  ;;  %7602 = vtanh.f32 %v1161_v25  ;;  %v1127_v52 = vmul.f32 %v8559_v33, %v8655_v26  ;;  %7490 = vset.pattern.permute.xlu1 %v11376_v42  ;;  %v8110_v26 = vld [vmem:[%s8553_s17 + $0xd0] sm:$0xff] }
 0x239   : > { %11497 = vst [vmem:[#allocation13_spill] sm:$0xff] %v8657_v27  ;;  %7604 = vtanh.f32 %v1162_v22  ;;  %v1132_v47 = vmul.f32 %v8559_v33, %v8657_v27  ;;  %v8102_v27 = vld [vmem:[%s8553_s17 + $0x50] sm:$0xff] }
 0x23a   : > { %v7595_v31 = vpop.eup %7594  ;;  %v1163_v32 = vadd.f32 %v8568_v23, %v1127_v52 }
 0x23b   : > { %v7597_v35 = vpop.eup %7596  ;;  %v8667_v38 = vpop.permute.xlu1 %1023  ;;  %6971 = vmatprep.mubr.msk.f32.mxu1 %vm818_vm4, %v7595_v31  ;;  %v1168_v57 = vadd.f32 %v8568_v23, %v1132_v47 }
 0x23c   : > { %11498 = vst [vmem:[#allocation14_spill] sm:$0xff] %v8667_v38  ;;  %v8670_v40 = vpop.permute.xlu0 %1048  ;;  %7606 = vtanh.f32 %v1163_v32  ;;  %v1129_v43 = vmul.f32 %v8559_v33, %v8667_v38  ;;  %6972 = vmatmul.mubr.msk.f32.gmra.mrb[6].mxu1 %vm818_vm4, %v7597_v35  ;;  %v8106_v38 = vld [vmem:[%s8553_s17 + $0x90] sm:$0xff] }
 0x23d   : > { %11499 = vst [vmem:[#allocation15_spill] sm:$0xff] %v8670_v40  ;;  %7608 = vtanh.f32 %v1164_v29  ;;  %v1134_v60 = vmul.f32 %v8559_v33, %v8670_v40 }
 0x23e   : > { %v7599_v48 = vpop.eup %7598  ;;  %v1165_v49 = vadd.f32 %v8568_v23, %v1129_v43  ;;  %v3796_v43 = vld [vmem:[%s8553_s17 + $0x30] sm:$0xff] }
 0x23f   : > { %v7601_v51 = vpop.eup %7600  ;;  %v8679_v54 = vpop.permute.xlu1 %1033  ;;  %6974 = vmatprep.mubr.msk.f32.mxu1 %vm818_vm4, %v7599_v48  ;;  %v1170_v13 = vadd.f32 %v8568_v23, %v1134_v60  ;;  %4247 = vperm.xlu0 %7482, %v3796_v43   ;;  %v3802_v43 = vld [vmem:[%s8553_s17 + $0x60] sm:$0xff] }
 0x240   : > { %11500 = vst [vmem:[#allocation16_spill] sm:$0xff] %v8679_v54  ;;  %v8682_v55 = vpop.permute.xlu0 %1058  ;;  %7610 = vtanh.f32 %v1165_v49  ;;  %v1131_v56 = vmul.f32 %v8559_v33, %v8679_v54  ;;  %6975 = vmatmul.mubr.msk.f32.gmra.mrb[8].mxu1 %vm818_vm4, %v7601_v51  ;;  %v8101_v54 = vld [vmem:[%s8553_s17 + $0x40] sm:$0xff] }
 0x241   : > { %11501 = vst [vmem:[#allocation17_spill] sm:$0xff] %v8682_v55  ;;  %7612 = vtanh.f32 %v1166_v45  ;;  %v1136_v14 = vmul.f32 %v8559_v33, %v8682_v55  ;;  %v3799_v45 = vld [vmem:[%s8553_s17 + $0x48] sm:$0xff] }
 0x242   : > { %v7603_v61 = vpop.eup %7602  ;;  %v1167_v63 = vadd.f32 %v8568_v23, %v1131_v56  ;;  %4041 = vperm.xlu1 %7490, %v3799_v45  }
 0x243   : > { %v7605_v7 = vpop.eup %7604  ;;  %v8693_v8 = vpop.permute.xlu1 %1043  ;;  %6977 = vmatprep.mubr.msk.f32.mxu1 %vm818_vm4, %v7603_v61  ;;  %v1172_v25 = vadd.f32 %v8568_v23, %v1136_v14 }
 0x244   : > { %11502 = vst [vmem:[#allocation18_spill] sm:$0xff] %v8693_v8  ;;  %v8696_v9 = vpop.permute.xlu0 %1068  ;;  %7614 = vtanh.f32 %v1167_v63  ;;  %v1133_v10 = vmul.f32 %v8559_v33, %v8693_v8  ;;  %6978 = vmatmul.mubr.msk.f32.gmra.mrb[10].mxu1 %vm818_vm4, %v7605_v7  ;;  %v3798_v63 = vld [vmem:[%s8553_s17 + $0x40] sm:$0xff] }
 0x245   : > { %11503 = vst [vmem:[#allocation19_spill] sm:$0xff] %v8696_v9  ;;  %7616 = vtanh.f32 %v1168_v57  ;;  %v1138_v52 = vmul.f32 %v8559_v33, %v8696_v9  ;;  %4255 = vperm.xlu0 %7482, %v3798_v63   ;;  %v3804_v63 = vld [vmem:[%s8553_s17 + $0x70] sm:$0xff] }
 0x246   : > { %v7607_v15 = vpop.eup %7606  ;;  %v1169_v16 = vadd.f32 %v8568_v23, %v1133_v10  ;;  %7491 = vset.pattern.permute.xlu1 %v11378_v0 }
 0x247   : > { %v7609_v17 = vpop.eup %7608  ;;  %v8707_v18 = vpop.permute.xlu1 %1053  ;;  %6980 = vmatprep.mubr.msk.f32.mxu1 %vm818_vm4, %v7607_v15  ;;  %v1174_v47 = vadd.f32 %v8568_v23, %v1138_v52  ;;  %4259 = vperm.xlu1 %7491, %v3799_v45  }
 0x248   : > { %11504 = vst [vmem:[#allocation20_spill] sm:$0xff] %v8707_v18  ;;  %v8710_v21 = vpop.permute.xlu0 %1078  ;;  %7618 = vtanh.f32 %v1169_v16  ;;  %v1135_v22 = vmul.f32 %v8559_v33, %v8707_v18  ;;  %6981 = vmatmul.mubr.msk.f32.gmra.mrb[12].mxu1 %vm818_vm4, %v7609_v17  ;;  %v3800_v16 = vld [vmem:[%s8553_s17 + $0x50] sm:$0xff] }
 0x249   : > { %11505 = vst [vmem:[#allocation21_spill] sm:$0xff] %v8710_v21  ;;  %7620 = vtanh.f32 %v1170_v13  ;;  %v1140_v48 = vmul.f32 %v8559_v33, %v8710_v21  ;;  %4263 = vperm.xlu0 %7482, %v3800_v16  }
 0x24a   : > { %v7611_v28 = vpop.eup %7610  ;;  %v1171_v29 = vadd.f32 %v8568_v23, %v1135_v22 }
 0x24b   : > { %v7613_v30 = vpop.eup %7612  ;;  %v8721_v31 = vpop.permute.xlu1 %1063  ;;  %6983 = vmatprep.mubr.msk.f32.mxu1 %vm818_vm4, %v7611_v28  ;;  %v1176_v4 = vadd.f32 %v8568_v23, %v1140_v48  ;;  %v3801_v28 = vld [vmem:[%s8553_s17 + $0x58] sm:$0xff]  ;;  %7492 = vset.pattern.permute.xlu1 %v11376_v42 }
 0x24c   : > { %11506 = vst [vmem:[#allocation22_spill] sm:$0xff] %v8721_v31  ;;  %v8724_v32 = vpop.permute.xlu0 %1088  ;;  %7622 = vtanh.f32 %v1171_v29  ;;  %v1137_v35 = vmul.f32 %v8559_v33, %v8721_v31  ;;  %6984 = vmatmul.mubr.msk.f32.gmra.mrb[14].mxu1 %vm818_vm4, %v7613_v30  ;;  %4051 = vperm.xlu1 %7492, %v3801_v28  }
 0x24d   : > { %11507 = vst [vmem:[#allocation23_spill] sm:$0xff] %v8724_v32  ;;  %7624 = vtanh.f32 %v1172_v25  ;;  %v1142_v7 = vmul.f32 %v8559_v33, %v8724_v32  ;;  %4271 = vperm.xlu0 %7482, %v3802_v43   ;;  %v3812_v43 = vld [vmem:[%s8553_s17 + $0xb0] sm:$0xff] }
 0x24e   : > { %v7615_v49 = vpop.eup %7614  ;;  %v1173_v51 = vadd.f32 %v8568_v23, %v1137_v35 }
 0x24f   : > { %v7617_v56 = vpop.eup %7616  ;;  %v8736_v57 = vpop.permute.xlu1 %1073  ;;  %6986 = vmatprep.mubr.msk.f32.mxu1 %vm818_vm4, %v7615_v49  ;;  %v1178_v17 = vadd.f32 %v8568_v23, %v1142_v7 }
 0x250   : > { %11508 = vst [vmem:[#allocation24_spill] sm:$0xff] %v8736_v57  ;;  %7626 = vtanh.f32 %v1173_v51  ;;  %v1139_v60 = vmul.f32 %v8559_v33, %v8736_v57  ;;  %v8741_v61 = vpop.permute.xlu0 %1098  ;;  %6987 = vmatmul.mubr.msk.f32.gmra.mrb[16].mxu1 %vm818_vm4, %v7617_v56  ;;  %7493 = vset.pattern.permute.xlu1 %v11378_v0 }
 0x251   : > { %11509 = vst [vmem:[#allocation25_spill] sm:$0xff] %v8741_v61  ;;  %7628 = vtanh.f32 %v1174_v47  ;;  %v1144_v22 = vmul.f32 %v8559_v33, %v8741_v61  ;;  %4279 = vperm.xlu0 %7482, %v3804_v63   ;;  %4267 = vperm.xlu1 %7493, %v3801_v28   ;;  %v1544_v28 = vld [vmem:[%s8799_s8] sm:$0xff]  ;;  %v3807_v63 = vld [vmem:[%s8553_s17 + $0x88] sm:$0xff] }
 0x252   : > { %v7619_v10 = vpop.eup %7618  ;;  %v1175_v39 = vadd.f32 %v8568_v23, %v1139_v60 }
 0x253   : > { %v7621_v13 = vpop.eup %7620  ;;  %v8749_v14 = vpop.permute.xlu1 %1083  ;;  %6989 = vmatprep.mubr.msk.f32.mxu1 %vm818_vm4, %v7619_v10  ;;  %v1180_v45 = vadd.f32 %v8568_v23, %v1144_v22 }
 0x254   : > { %11510 = vst [vmem:[#allocation26_spill] sm:$0xff] %v8749_v14  ;;  %7630 = vtanh.f32 %v1175_v39  ;;  %v1141_v15 = vmul.f32 %v8559_v33, %v8749_v14  ;;  %6990 = vmatmul.mubr.msk.f32.gmra.mrb[18].mxu1 %vm818_vm4, %v7621_v13  ;;  %v8761_v52 = vpop.permute.xlu0 %1108  ;;  %v3803_v13 = vld [vmem:[%s8553_s17 + $0x68] sm:$0xff] }
 0x255   : > { %7632 = vtanh.f32 %v1176_v4  ;;  %11511 = vst [vmem:[#allocation27_spill] sm:$0xff] %v8761_v52  ;;  %v1146_v47 = vmul.f32 %v8559_v33, %v8761_v52  ;;  %7494 = vset.pattern.permute.xlu1 %v11376_v42 }
 0x256   : > { %v7623_v24 = vpop.eup %7622  ;;  %v1177_v25 = vadd.f32 %v8568_v23, %v1141_v15  ;;  %4061 = vperm.xlu1 %7494, %v3803_v13  }
 0x257   : > { %v7625_v29 = vpop.eup %7624  ;;  %v8764_v30 = vpop.permute.xlu1 %1093  ;;  %6992 = vmatprep.mubr.msk.f32.mxu1 %vm818_vm4, %v7623_v24  ;;  %v1182_v4 = vadd.f32 %v8568_v23, %v1146_v47  ;;  %v3810_v24 = vld [vmem:[%s8553_s17 + $0xa0] sm:$0xff]  ;;  %v1546_v47 = vld [vmem:[%s8799_s8 + $0x10] sm:$0xff] }
 0x258   : > { %11512 = vst [vmem:[#allocation28_spill] sm:$0xff] %v8764_v30  ;;  %7634 = vtanh.f32 %v1177_v25  ;;  %v1143_v35 = vmul.f32 %v8559_v33, %v8764_v30  ;;  %6993 = vmatmul.mubr.msk.f32.gmra.mrb[20].mxu1 %vm818_vm4, %v7625_v29  ;;  %v3805_v29 = vld [vmem:[%s8553_s17 + $0x78] sm:$0xff] }
 0x259   : > { %7636 = vtanh.f32 %v1178_v17 }
 0x25a   : > { %v7627_v48 = vpop.eup %7626  ;;  %v1179_v49 = vadd.f32 %v8568_v23, %v1143_v35  ;;  %7495 = vset.pattern.permute.xlu1 %v11378_v0 }
 0x25b   : > { %v7629_v51 = vpop.eup %7628  ;;  %v8776_v56 = vpop.permute.xlu1 %1103  ;;  %6995 = vmatprep.mubr.msk.f32.mxu1 %vm818_vm4, %v7627_v48  ;;  %4275 = vperm.xlu1 %7495, %v3803_v13   ;;  %v3814_v48 = vld [vmem:[%s8553_s17 + $0xc0] sm:$0xff]  ;;  %v1555_v13 = vld [vmem:[%s8799_s8 + $0x58] sm:$0xff] }
 0x25c   : > { %11513 = vst [vmem:[#allocation29_spill] sm:$0xff] %v8776_v56  ;;  %7638 = vtanh.f32 %v1179_v49  ;;  %v1145_v60 = vmul.f32 %v8559_v33, %v8776_v56  ;;  %6996 = vmatmul.mubr.msk.f32.gmra.mrb[22].mxu1 %vm818_vm4, %v7629_v51  ;;  %v3806_v33 = vld [vmem:[%s8553_s17 + $0x80] sm:$0xff]  ;;  %v1547_v49 = vld [vmem:[%s8799_s8 + $0x18] sm:$0xff] }
 0x25d   : > { %7640 = vtanh.f32 %v1180_v45  ;;  %4287 = vperm.xlu0 %7482, %v3806_v33   ;;  %v1545_v45 = vld [vmem:[%s8799_s8 + $0x8] sm:$0xff]  ;;  %v1548_v51 = vld [vmem:[%s8799_s8 + $0x20] sm:$0xff]  ;;  %v3809_v33 = vld [vmem:[%s8553_s17 + $0x98] sm:$0xff] }
 0x25e   : > { %v7631_v7 = vpop.eup %7630  ;;  %v1181_v10 = vadd.f32 %v8568_v23, %v1145_v60  ;;  %v3808_v23 = vld [vmem:[%s8553_s17 + $0x90] sm:$0xff] }
 0x25f   : > { %v7633_v39 = vpop.eup %7632  ;;  %6998 = vmatprep.mubr.msk.f32.mxu1 %vm818_vm4, %v7631_v7  ;;  %7496 = vset.pattern.permute.xlu1 %v11376_v42  ;;  %v3816_v60 = vld [vmem:[%s8553_s17 + $0xd0] sm:$0xff]  ;;  %v3818_v7 = vld [vmem:[%s8553_s17 + $0xe0] sm:$0xff] }
 0x260   : > { %7642 = vtanh.f32 %v1181_v10  ;;  %6999 = vmatmul.mubr.msk.f32.gmra.mrb[24].mxu1 %vm818_vm4, %v7633_v39  ;;  %4071 = vperm.xlu1 %7496, %v3805_v29   ;;  %v1551_v10 = vld [vmem:[%s8799_s8 + $0x38] sm:$0xff]  ;;  %v1552_v39 = vld [vmem:[%s8799_s8 + $0x40] sm:$0xff] }
 0x261   : > { %7644 = vtanh.f32 %v1182_v4  ;;  %4295 = vperm.xlu0 %7482, %v3808_v23   ;;  %v1550_v4 = vld [vmem:[%s8799_s8 + $0x30] sm:$0xff] }
 0x262   : > { %v7635_v15 = vpop.eup %7634  ;;  %v1558_v23 = vld [vmem:[%s8799_s8 + $0x70] sm:$0xff] }
 0x263   : > { %v7637_v16 = vpop.eup %7636  ;;  %7001 = vmatprep.mubr.msk.f32.mxu1 %vm818_vm4, %v7635_v15  ;;  %v1556_v15 = vld [vmem:[%s8799_s8 + $0x60] sm:$0xff] }
 0x264   : > { %7002 = vmatmul.mubr.msk.f32.gmra.mrb[26].mxu1 %vm818_vm4, %v7637_v16  ;;  %7497 = vset.pattern.permute.xlu1 %v11378_v0  ;;  %v1557_v16 = vld [vmem:[%s8799_s8 + $0x68] sm:$0xff] }
 0x265   : > { %4303 = vperm.xlu0 %7482, %v3810_v24   ;;  %4283 = vperm.xlu1 %7497, %v3805_v29   ;;  %v1561_v24 = vld [vmem:[%s8799_s8 + $0x88] sm:$0xff]  ;;  %v1564_v29 = vld [vmem:[%s8799_s8 + $0xa0] sm:$0xff] }
 0x266   : > { %v7639_v17 = vpop.eup %7638 }
 0x267   : > { %v7641_v22 = vpop.eup %7640  ;;  %7004 = vmatprep.mubr.msk.f32.mxu1 %vm818_vm4, %v7639_v17  ;;  %v3811_v17 = vld [vmem:[%s8553_s17 + $0xa8] sm:$0xff] }
 0x268   : > { %7005 = vmatmul.mubr.msk.f32.gmra.mrb[28].mxu1 %vm818_vm4, %v7641_v22  ;;  %v1560_v22 = vld [vmem:[%s8799_s8 + $0x80] sm:$0xff] }
 0x269   : > { %4311 = vperm.xlu0 %7482, %v3812_v43   ;;  %7498 = vset.pattern.permute.xlu1 %v11376_v42  ;;  %v1565_v43 = vld [vmem:[%s8799_s8 + $0xa8] sm:$0xff] }
 0x26a   : > { %v7643_v25 = vpop.eup %7642  ;;  %4081 = vperm.xlu1 %7498, %v3807_v63  }
 0x26b   : > { %v7645_v35 = vpop.eup %7644  ;;  %7007 = vmatprep.mubr.msk.f32.mxu1 %vm818_vm4, %v7643_v25  ;;  %v1562_v25 = vld [vmem:[%s8799_s8 + $0x90] sm:$0xff] }
 0x26c   : > { %7008 = vmatmul.mubr.msk.f32.gmra.mrb[30].mxu1 %vm818_vm4, %v7645_v35  ;;  %v3813_v35 = vld [vmem:[%s8553_s17 + $0xb8] sm:$0xff] }
 0x26d   : > { %7018 = vmatprep.mubr.msk.f32.mxu1 %vm424_vm3, %v1544_v28  ;;  %4319 = vperm.xlu0 %7482, %v3814_v48   ;;  %v1563_v28 = vld [vmem:[%s8799_s8 + $0x98] sm:$0xff]  ;;  %v1568_v48 = vld [vmem:[%s8799_s8 + $0xc0] sm:$0xff] }
 0x26e   : > { %7499 = vset.pattern.permute.xlu1 %v11378_v0 }
 0x26f   : > { %4291 = vperm.xlu1 %7499, %v3807_v63   ;;  %v1572_v63 = vld [vmem:[%s8799_s8 + $0xe0] sm:$0xff] }
 0x270   : > { %7019 = vmatmul.mubr.msk.f32.vlgmr.msra.gmra.mrb[32].mxu1 %vm424_vm3, %v1545_v45  ;;  %v1566_v45 = vld [vmem:[%s8799_s8 + $0xb0] sm:$0xff] }
 0x271   : > { %7389 = vmatpush3.bf16.msra.mxu1 %v8281_v3  ;;  %7021 = vmatprep.mubr.msk.f32.mxu1 %vm424_vm3, %v1546_v47  ;;  %v1549_v3 = vld [vmem:[%s8799_s8 + $0x28] sm:$0xff]  ;;  %v1567_v47 = vld [vmem:[%s8799_s8 + $0xb8] sm:$0xff] }
 0x272   : > { %7392 = vmatprep.subr.msk.bf16.mxu1 %vm8290_vm2, %v8287_v5  ;;  %4327 = vperm.xlu0 %7482, %v3816_v60   ;;  %v1570_v60 = vld [vmem:[%s8799_s8 + $0xd0] sm:$0xff] }
 0x273   : > { %7500 = vset.pattern.permute.xlu1 %v11376_v42 }
 0x274   : > { %7022 = vmatmul.mubr.msk.f32.gmra.mrb[34].mxu1 %vm424_vm3, %v1547_v49  ;;  %4091 = vperm.xlu1 %7500, %v3809_v33   ;;  %v1569_v49 = vld [vmem:[%s8799_s8 + $0xc8] sm:$0xff] }
 0x275   : > { %7024 = vmatprep.mubr.msk.f32.mxu1 %vm424_vm3, %v1548_v51  ;;  %7395 = vmatpush3.bf16.msk.msra.mxu1 %vm8290_vm2, %v8287_v5  ;;  %v1553_v5 = vld [vmem:[%s8799_s8 + $0x48] sm:$0xff] }
 0x276   : > { %4335 = vperm.xlu0 %7482, %v3818_v7   ;;  %v3815_v51 = vld [vmem:[%s8553_s17 + $0xc8] sm:$0xff]  ;;  %v1574_v7 = vld [vmem:[%s8799_s8 + $0xf0] sm:$0xff] }
 0x278   : > { %7025 = vmatmul.mubr.msk.f32.gmra.mrb[36].mxu1 %vm424_vm3, %v1549_v3  ;;  %7501 = vset.pattern.permute.xlu1 %v11378_v0  ;;  %v1571_v3 = vld [vmem:[%s8799_s8 + $0xd8] sm:$0xff] }
 0x279   : > { %7027 = vmatprep.mubr.msk.f32.mxu1 %vm424_vm3, %v1550_v4  ;;  %4299 = vperm.xlu1 %7501, %v3809_v33   ;;  %v1573_v4 = vld [vmem:[%s8799_s8 + $0xe8] sm:$0xff]  ;;  %v2668_v33 = vld [vmem:[%s8901_s12 + $0x10] sm:$0xff] }
 0x27a   : > { %7511 = vset.pattern.permute.xlu0 %v11376_v42 }
 0x27b   : > { %4001 = vperm.xlu0 %7511, %v8605_v62   ;;  %v1559_v62 = vld [vmem:[%s8799_s8 + $0x78] sm:$0xff] }
 0x27c   : > { %7028 = vmatmul.mubr.msk.f32.gmra.mrb[38].mxu1 %vm424_vm3, %v1551_v10  ;;  %v3817_v10 = vld [vmem:[%s8553_s17 + $0xd8] sm:$0xff] }
 0x27d   : > { %7030 = vmatprep.mubr.msk.f32.mxu1 %vm424_vm3, %v1552_v39  ;;  %7502 = vset.pattern.permute.xlu1 %v11376_v42  ;;  %v1575_v39 = vld [vmem:[%s8799_s8 + $0xf8] sm:$0xff] }
 0x27e   : > { %4101 = vperm.xlu1 %7502, %v3811_v17  }
 0x280   : > { %7031 = vmatmul.mubr.msk.f32.gmra.mrb[40].mxu1 %vm424_vm3, %v1553_v5  ;;  %v2666_v5 = vld [vmem:[%s8901_s12] sm:$0xff] }
 0x281   : > { %7033 = vmatprep.mubr.msk.f32.mxu1 %vm424_vm3, %v1554_v6  ;;  %v2667_v6 = vld [vmem:[%s8901_s12 + $0x8] sm:$0xff] }
 0x282   : > { %7503 = vset.pattern.permute.xlu1 %v11378_v0 }
 0x283   : > { %4307 = vperm.xlu1 %7503, %v3811_v17   ;;  %v2673_v17 = vld [vmem:[%s8901_s12 + $0x38] sm:$0xff] }
 0x284   : > { %7034 = vmatmul.mubr.msk.f32.gmra.mrb[42].mxu1 %vm424_vm3, %v1555_v13  ;;  %v2669_v13 = vld [vmem:[%s8901_s12 + $0x18] sm:$0xff] }
 0x285   : > { %7036 = vmatprep.mubr.msk.f32.mxu1 %vm424_vm3, %v1556_v15  ;;  %v3819_v15 = vld [vmem:[%s8553_s17 + $0xe8] sm:$0xff] }
 0x287   : > { %7504 = vset.pattern.permute.xlu1 %v11376_v42 }
 0x288   : > { %7037 = vmatmul.mubr.msk.f32.gmra.mrb[44].mxu1 %vm424_vm3, %v1557_v16  ;;  %4111 = vperm.xlu1 %7504, %v3813_v35   ;;  %v2670_v16 = vld [vmem:[%s8901_s12 + $0x20] sm:$0xff] }
 0x289   : > { %7039 = vmatprep.mubr.msk.f32.mxu1 %vm424_vm3, %v1558_v23  ;;  %v2671_v23 = vld [vmem:[%s8901_s12 + $0x28] sm:$0xff] }
 0x28c   : > { %7040 = vmatmul.mubr.msk.f32.gmra.mrb[46].mxu1 %vm424_vm3, %v1559_v62  ;;  %7505 = vset.pattern.permute.xlu1 %v11378_v0  ;;  %v2672_v62 = vld [vmem:[%s8901_s12 + $0x30] sm:$0xff] }
 0x28d   : > { %7042 = vmatprep.mubr.msk.f32.mxu1 %vm424_vm3, %v1560_v22  ;;  %4315 = vperm.xlu1 %7505, %v3813_v35   ;;  %v2674_v22 = vld [vmem:[%s8901_s12 + $0x40] sm:$0xff]  ;;  %v2679_v35 = vld [vmem:[%s8901_s12 + $0x68] sm:$0xff] }
 0x290   : > { %7043 = vmatmul.mubr.msk.f32.gmra.mrb[48].mxu1 %vm424_vm3, %v1561_v24  ;;  %v2675_v24 = vld [vmem:[%s8901_s12 + $0x48] sm:$0xff] }
 0x291   : > { %7045 = vmatprep.mubr.msk.f32.mxu1 %vm424_vm3, %v1562_v25  ;;  %7506 = vset.pattern.permute.xlu1 %v11376_v42  ;;  %v2676_v25 = vld [vmem:[%s8901_s12 + $0x50] sm:$0xff] }
 0x292   : > { %4121 = vperm.xlu1 %7506, %v3815_v51  }
 0x294   : > { %7046 = vmatmul.mubr.msk.f32.gmra.mrb[50].mxu1 %vm424_vm3, %v1563_v28  ;;  %v2677_v28 = vld [vmem:[%s8901_s12 + $0x58] sm:$0xff] }
 0x295   : > { %7048 = vmatprep.mubr.msk.f32.mxu1 %vm424_vm3, %v1564_v29  ;;  %v2678_v29 = vld [vmem:[%s8901_s12 + $0x60] sm:$0xff] }
 0x296   : > { %7507 = vset.pattern.permute.xlu1 %v11378_v0 }
 0x297   : > { %4323 = vperm.xlu1 %7507, %v3815_v51   ;;  %v2685_v51 = vld [vmem:[%s8901_s12 + $0x98] sm:$0xff] }
 0x298   : > { %7049 = vmatmul.mubr.msk.f32.gmra.mrb[52].mxu1 %vm424_vm3, %v1565_v43  ;;  %v2680_v43 = vld [vmem:[%s8901_s12 + $0x70] sm:$0xff] }
 0x299   : > { %7051 = vmatprep.mubr.msk.f32.mxu1 %vm424_vm3, %v1566_v45  ;;  %v2681_v45 = vld [vmem:[%s8901_s12 + $0x78] sm:$0xff] }
 0x29b   : > { %7508 = vset.pattern.permute.xlu1 %v11376_v42 }
 0x29c   : > { %7052 = vmatmul.mubr.msk.f32.gmra.mrb[54].mxu1 %vm424_vm3, %v1567_v47  ;;  %4131 = vperm.xlu1 %7508, %v3817_v10   ;;  %v2682_v47 = vld [vmem:[%s8901_s12 + $0x80] sm:$0xff] }
 0x29d   : > { %7054 = vmatprep.mubr.msk.f32.mxu1 %vm424_vm3, %v1568_v48  ;;  %v2683_v48 = vld [vmem:[%s8901_s12 + $0x88] sm:$0xff] }
 0x2a0   : > { %7055 = vmatmul.mubr.msk.f32.gmra.mrb[56].mxu1 %vm424_vm3, %v1569_v49  ;;  %7509 = vset.pattern.permute.xlu1 %v11378_v0  ;;  %v2684_v49 = vld [vmem:[%s8901_s12 + $0x90] sm:$0xff] }
 0x2a1   : > { %7057 = vmatprep.mubr.msk.f32.mxu1 %vm424_vm3, %v1570_v60  ;;  %4331 = vperm.xlu1 %7509, %v3817_v10   ;;  %v2686_v60 = vld [vmem:[%s8901_s12 + $0xa0] sm:$0xff]  ;;  %v2691_v10 = vld [vmem:[%s8901_s12 + $0xc8] sm:$0xff] }
 0x2a4   : > { %7058 = vmatmul.mubr.msk.f32.gmra.mrb[58].mxu1 %vm424_vm3, %v1571_v3  ;;  %v2687_v3 = vld [vmem:[%s8901_s12 + $0xa8] sm:$0xff] }
 0x2a5   : > { %7060 = vmatprep.mubr.msk.f32.mxu1 %vm424_vm3, %v1572_v63  ;;  %7510 = vset.pattern.permute.xlu1 %v11376_v42  ;;  %v2688_v63 = vld [vmem:[%s8901_s12 + $0xb0] sm:$0xff] }
 0x2a6   : > { %4141 = vperm.xlu1 %7510, %v3819_v15   ;;  %v2697_v15 = vld [vmem:[%s8901_s12 + $0xf8] sm:$0xff] }
 0x2a8   : > { %7061 = vmatmul.mubr.msk.f32.gmra.mrb[60].mxu1 %vm424_vm3, %v1573_v4  ;;  %v2689_v4 = vld [vmem:[%s8901_s12 + $0xb8] sm:$0xff] }
 0x2a9   : > { %7063 = vmatprep.mubr.msk.f32.mxu1 %vm424_vm3, %v1574_v7  ;;  %v2690_v7 = vld [vmem:[%s8901_s12 + $0xc0] sm:$0xff] }
 0x2ac   : > { %7064 = vmatmul.mubr.msk.f32.gmra.mrb[62].mxu1 %vm424_vm3, %v1575_v39  ;;  %v2692_v39 = vld [vmem:[%s8901_s12 + $0xd0] sm:$0xff] }
 0x2ad   : > { %7126 = vmatprep.mubr.msk.f32.mxu1 %vm424_vm3, %v2666_v5  ;;  %v2693_v5 = vld [vmem:[%s8901_s12 + $0xd8] sm:$0xff] }
 0x2b0   : > { %7127 = vmatmul.mubr.msk.f32.vlgmr.msra.gmra.mrb[64].mxu1 %vm424_vm3, %v2667_v6  ;;  %v2694_v6 = vld [vmem:[%s8901_s12 + $0xe0] sm:$0xff] }
 0x2b1   : > { %7129 = vmatprep.mubr.msk.f32.mxu1 %vm424_vm3, %v2668_v33  ;;  %v2695_v33 = vld [vmem:[%s8901_s12 + $0xe8] sm:$0xff] }
 0x2b4   : > { %7130 = vmatmul.mubr.msk.f32.gmra.mrb[66].mxu1 %vm424_vm3, %v2669_v13  ;;  %v2696_v13 = vld [vmem:[%s8901_s12 + $0xf0] sm:$0xff] }
 0x2b5   : > { %7132 = vmatprep.mubr.msk.f32.mxu1 %vm424_vm3, %v2670_v16  ;;  %v8982_v16 = vld [vmem:[%s11374_s4 + $0x58] ss:$0 sm:$0xff] }
 0x2b8   : > { %7133 = vmatmul.mubr.msk.f32.gmra.mrb[68].mxu1 %vm424_vm3, %v2671_v23 }
 0x2b9   : > { %7135 = vmatprep.mubr.msk.f32.mxu1 %vm424_vm3, %v2672_v62 }
 0x2bc   : > { %7136 = vmatmul.mubr.msk.f32.gmra.mrb[70].mxu1 %vm424_vm3, %v2673_v17 }
 0x2bd   : > { %7138 = vmatprep.mubr.msk.f32.mxu1 %vm424_vm3, %v2674_v22 }
 0x2c0   : > { %7139 = vmatmul.mubr.msk.f32.gmra.mrb[72].mxu1 %vm424_vm3, %v2675_v24 }
 0x2c1   : > { %7141 = vmatprep.mubr.msk.f32.mxu1 %vm424_vm3, %v2676_v25 }
 0x2c4   : > { %7142 = vmatmul.mubr.msk.f32.gmra.mrb[74].mxu1 %vm424_vm3, %v2677_v28 }
 0x2c5   : > { %7144 = vmatprep.mubr.msk.f32.mxu1 %vm424_vm3, %v2678_v29 }
 0x2c8   : > { %7145 = vmatmul.mubr.msk.f32.gmra.mrb[76].mxu1 %vm424_vm3, %v2679_v35 }
 0x2c9   : > { %7147 = vmatprep.mubr.msk.f32.mxu1 %vm424_vm3, %v2680_v43 }
 0x2cc   : > { %7148 = vmatmul.mubr.msk.f32.gmra.mrb[78].mxu1 %vm424_vm3, %v2681_v45 }
 0x2cd   : > { %7150 = vmatprep.mubr.msk.f32.mxu1 %vm424_vm3, %v2682_v47 }
 0x2d0   : > { %7151 = vmatmul.mubr.msk.f32.gmra.mrb[80].mxu1 %vm424_vm3, %v2683_v48 }
 0x2d1   : > { %7153 = vmatprep.mubr.msk.f32.mxu1 %vm424_vm3, %v2684_v49 }
 0x2d4   : > { %7154 = vmatmul.mubr.msk.f32.gmra.mrb[82].mxu1 %vm424_vm3, %v2685_v51 }
 0x2d5   : > { %7156 = vmatprep.mubr.msk.f32.mxu1 %vm424_vm3, %v2686_v60 }
 0x2d8   : > { %7157 = vmatmul.mubr.msk.f32.gmra.mrb[84].mxu1 %vm424_vm3, %v2687_v3 }
 0x2d9   : > { %7159 = vmatprep.mubr.msk.f32.mxu1 %vm424_vm3, %v2688_v63 }
 0x2dc   : > { %7160 = vmatmul.mubr.msk.f32.gmra.mrb[86].mxu1 %vm424_vm3, %v2689_v4 }
 0x2dd   : > { %7162 = vmatprep.mubr.msk.f32.mxu1 %vm424_vm3, %v2690_v7 }
 0x2e0   : > { %7163 = vmatmul.mubr.msk.f32.gmra.mrb[88].mxu1 %vm424_vm3, %v2691_v10 }
 0x2e1   : > { %7165 = vmatprep.mubr.msk.f32.mxu1 %vm424_vm3, %v2692_v39 }
 0x2e4   : > { %7166 = vmatmul.mubr.msk.f32.gmra.mrb[90].mxu1 %vm424_vm3, %v2693_v5 }
 0x2e5   : > { %7168 = vmatprep.mubr.msk.f32.mxu1 %vm424_vm3, %v2694_v6 }
 0x2e8   : > { %7169 = vmatmul.mubr.msk.f32.gmra.mrb[92].mxu1 %vm424_vm3, %v2695_v33 }
 0x2e9   : > { %7171 = vmatprep.mubr.msk.f32.mxu1 %vm424_vm3, %v2696_v13 }
 0x2ec   : > { %7172 = vmatmul.mubr.msk.f32.gmra.mrb[94].mxu1 %vm424_vm3, %v2697_v15 }
 0x2fc   : > { %v6964_v23 = vpop.f32.mrb[0].mxu1 }
 0x2fd   : > { %v1391_v62 = vadd.f32 %v6964_v23, %v8982_v16  ;;  %v1385_v17 = vpop.f32.mrb[1].mxu1 }
 0x2fe   : > { %v1386_v22 = vadd.f32 %v8982_v16, %v1385_v17 }
 0x2ff   : > { %5390 = vst.msk [vmem:[%s8986_s23 + $0x8] sm:$0xff] %vm424_vm3, %v1391_v62 }
 0x300   : > { %5389 = vst.msk [vmem:[%s8986_s23] sm:$0xff] %vm424_vm3, %v1386_v22  ;;  %v6967_v24 = vpop.f32.mrb[2].mxu1 }
 0x301   : > { %v1401_v25 = vadd.f32 %v6967_v24, %v8982_v16  ;;  %v1395_v28 = vpop.f32.mrb[3].mxu1 }
 0x302   : > { %v1396_v29 = vadd.f32 %v8982_v16, %v1395_v28 }
 0x303   : > { %5392 = vst.msk [vmem:[%s8986_s23 + $0x18] sm:$0xff] %vm424_vm3, %v1401_v25 }
 0x304   : > { %5391 = vst.msk [vmem:[%s8986_s23 + $0x10] sm:$0xff] %vm424_vm3, %v1396_v29 }
 0x307   : > { %v6970_v35 = vpop.f32.mrb[4].mxu1 }
 0x308   : > { %v1411_v43 = vadd.f32 %v6970_v35, %v8982_v16  ;;  %v1405_v45 = vpop.f32.mrb[5].mxu1 }
 0x309   : > { %v1406_v47 = vadd.f32 %v8982_v16, %v1405_v45 }
 0x30a   : > { %5394 = vst.msk [vmem:[%s8986_s23 + $0x28] sm:$0xff] %vm424_vm3, %v1411_v43 }
 0x30b   : > { %5393 = vst.msk [vmem:[%s8986_s23 + $0x20] sm:$0xff] %vm424_vm3, %v1406_v47 }
 0x30f   : > { %v6973_v48 = vpop.f32.mrb[6].mxu1 }
 0x310   : > { %v1421_v49 = vadd.f32 %v6973_v48, %v8982_v16  ;;  %v1415_v51 = vpop.f32.mrb[7].mxu1 }
 0x311   : > { %v1416_v60 = vadd.f32 %v8982_v16, %v1415_v51 }
 0x312   : > { %5396 = vst.msk [vmem:[%s8986_s23 + $0x38] sm:$0xff] %vm424_vm3, %v1421_v49 }
 0x313   : > { %5395 = vst.msk [vmem:[%s8986_s23 + $0x30] sm:$0xff] %vm424_vm3, %v1416_v60  ;;  %v6976_v3 = vpop.f32.mrb[8].mxu1 }
 0x314   : > { %v1431_v63 = vadd.f32 %v6976_v3, %v8982_v16  ;;  %v1425_v4 = vpop.f32.mrb[9].mxu1 }
 0x315   : > { %v1426_v7 = vadd.f32 %v8982_v16, %v1425_v4 }
 0x316   : > { %5398 = vst.msk [vmem:[%s8986_s23 + $0x48] sm:$0xff] %vm424_vm3, %v1431_v63 }
 0x317   : > { %5397 = vst.msk [vmem:[%s8986_s23 + $0x40] sm:$0xff] %vm424_vm3, %v1426_v7  ;;  %v6979_v10 = vpop.f32.mrb[10].mxu1 }
 0x318   : > { %v1441_v39 = vadd.f32 %v6979_v10, %v8982_v16  ;;  %v1435_v5 = vpop.f32.mrb[11].mxu1 }
 0x319   : > { %v1436_v6 = vadd.f32 %v8982_v16, %v1435_v5 }
 0x31a   : > { %5400 = vst.msk [vmem:[%s8986_s23 + $0x58] sm:$0xff] %vm424_vm3, %v1441_v39 }
 0x31b   : > { %5399 = vst.msk [vmem:[%s8986_s23 + $0x50] sm:$0xff] %vm424_vm3, %v1436_v6  ;;  %v6982_v33 = vpop.f32.mrb[12].mxu1 }
 0x31c   : > { %v1451_v13 = vadd.f32 %v6982_v33, %v8982_v16  ;;  %v1445_v15 = vpop.f32.mrb[13].mxu1 }
 0x31d   : > { %v1446_v23 = vadd.f32 %v8982_v16, %v1445_v15  ;;  %v9064_v15 = vpop.permute.xlu1 %3996 }
 0x31e   : > { %5402 = vst.msk [vmem:[%s8986_s23 + $0x68] sm:$0xff] %vm424_vm3, %v1451_v13 }
 0x31f   : > { %5401 = vst.msk [vmem:[%s8986_s23 + $0x60] sm:$0xff] %vm424_vm3, %v1446_v23  ;;  %v6985_v62 = vpop.f32.mrb[14].mxu1 }
 0x320   : > { %v1461_v17 = vadd.f32 %v6985_v62, %v8982_v16  ;;  %v1455_v22 = vpop.f32.mrb[15].mxu1 }
 0x321   : > { %v1456_v24 = vadd.f32 %v8982_v16, %v1455_v22 }
 0x322   : > { %5404 = vst.msk [vmem:[%s8986_s23 + $0x78] sm:$0xff] %vm424_vm3, %v1461_v17 }
 0x323   : > { %5403 = vst.msk [vmem:[%s8986_s23 + $0x70] sm:$0xff] %vm424_vm3, %v1456_v24  ;;  %v6988_v25 = vpop.f32.mrb[16].mxu1  ;;  %v9072_v24 = vpop.permute.xlu1 %4227 }
 0x324   : > { %v1471_v28 = vadd.f32 %v6988_v25, %v8982_v16  ;;  %v1465_v29 = vpop.f32.mrb[17].mxu1 }
 0x325   : > { %v1466_v35 = vadd.f32 %v8982_v16, %v1465_v29 }
 0x326   : > { %5406 = vst.msk [vmem:[%s8986_s23 + $0x88] sm:$0xff] %vm424_vm3, %v1471_v28 }
 0x327   : > { %5405 = vst.msk [vmem:[%s8986_s23 + $0x80] sm:$0xff] %vm424_vm3, %v1466_v35  ;;  %v6991_v43 = vpop.f32.mrb[18].mxu1 }
 0x328   : > { %v1481_v45 = vadd.f32 %v6991_v43, %v8982_v16  ;;  %v1475_v47 = vpop.f32.mrb[19].mxu1 }
 0x329   : > { %v1476_v48 = vadd.f32 %v8982_v16, %v1475_v47 }
 0x32a   : > { %5408 = vst.msk [vmem:[%s8986_s23 + $0x98] sm:$0xff] %vm424_vm3, %v1481_v45 }
 0x32b   : > { %5407 = vst.msk [vmem:[%s8986_s23 + $0x90] sm:$0xff] %vm424_vm3, %v1476_v48  ;;  %v6994_v49 = vpop.f32.mrb[20].mxu1  ;;  %v9082_v48 = vpop.permute.xlu1 %4011 }
 0x32c   : > { %v1491_v51 = vadd.f32 %v6994_v49, %v8982_v16  ;;  %v1485_v60 = vpop.f32.mrb[21].mxu1 }
 0x32d   : > { %v1486_v3 = vadd.f32 %v8982_v16, %v1485_v60 }
 0x32e   : > { %5410 = vst.msk [vmem:[%s8986_s23 + $0xa8] sm:$0xff] %vm424_vm3, %v1491_v51  ;;  %v9091_v51 = vld [vmem:[%s11374_s4 + $0x20] ss:$0 sm:$0xff] }
 0x32f   : > { %5409 = vst.msk [vmem:[%s8986_s23 + $0xa0] sm:$0xff] %vm424_vm3, %v1486_v3  ;;  %v6997_v63 = vpop.f32.mrb[22].mxu1 }
 0x330   : > { %v1501_v4 = vadd.f32 %v6997_v63, %v8982_v16  ;;  %v1495_v7 = vpop.f32.mrb[23].mxu1 }
 0x331   : > { %v1496_v10 = vadd.f32 %v8982_v16, %v1495_v7 }
 0x332   : > { %5412 = vst.msk [vmem:[%s8986_s23 + $0xb8] sm:$0xff] %vm424_vm3, %v1501_v4  ;;  %v9095_v4 = vpop.permute.xlu1 %4235 }
 0x333   : > { %5411 = vst.msk [vmem:[%s8986_s23 + $0xb0] sm:$0xff] %vm424_vm3, %v1496_v10  ;;  %v7000_v39 = vpop.f32.mrb[24].mxu1 }
 0x334   : > { %v1511_v5 = vadd.f32 %v7000_v39, %v8982_v16  ;;  %v1505_v6 = vpop.f32.mrb[25].mxu1 }
 0x335   : > { %v1506_v33 = vadd.f32 %v8982_v16, %v1505_v6 }
 0x336   : > { %5414 = vst.msk [vmem:[%s8986_s23 + $0xc8] sm:$0xff] %vm424_vm3, %v1511_v5 }
 0x337   : > { %5413 = vst.msk [vmem:[%s8986_s23 + $0xc0] sm:$0xff] %vm424_vm3, %v1506_v33  ;;  %v7003_v13 = vpop.f32.mrb[26].mxu1 }
 0x338   : > { %v1521_v23 = vadd.f32 %v7003_v13, %v8982_v16  ;;  %v1515_v62 = vpop.f32.mrb[27].mxu1 }
 0x339   : > { %v1516_v17 = vadd.f32 %v8982_v16, %v1515_v62 }
 0x33a   : > { %5416 = vst.msk [vmem:[%s8986_s23 + $0xd8] sm:$0xff] %vm424_vm3, %v1521_v23  ;;  %v9101_v23 = vpop.permute.xlu1 %4021 }
 0x33b   : > { %5415 = vst.msk [vmem:[%s8986_s23 + $0xd0] sm:$0xff] %vm424_vm3, %v1516_v17  ;;  %v7006_v22 = vpop.f32.mrb[28].mxu1 }
 0x33c   : > { %v1531_v25 = vadd.f32 %v7006_v22, %v8982_v16  ;;  %v1525_v28 = vpop.f32.mrb[29].mxu1 }
 0x33d   : > { %v1526_v29 = vadd.f32 %v8982_v16, %v1525_v28 }
 0x33e   : > { %5418 = vst.msk [vmem:[%s8986_s23 + $0xe8] sm:$0xff] %vm424_vm3, %v1531_v25 }
 0x33f   : > { %5417 = vst.msk [vmem:[%s8986_s23 + $0xe0] sm:$0xff] %vm424_vm3, %v1526_v29  ;;  %v7009_v35 = vpop.f32.mrb[30].mxu1 }
 0x340   : > { %v1541_v43 = vadd.f32 %v7009_v35, %v8982_v16  ;;  %v1535_v45 = vpop.f32.mrb[31].mxu1  ;;  %v9108_v35 = vld [vmem:[%s11374_s4 + $0x28] ss:$0 sm:$0xff] }
 0x341   : > { %v1536_v47 = vadd.f32 %v8982_v16, %v1535_v45 }
 0x342   : > { %5420 = vst.msk [vmem:[%s8986_s23 + $0xf8] sm:$0xff] %vm424_vm3, %v1541_v43 }
 0x343   : > { %5419 = vst.msk [vmem:[%s8986_s23 + $0xf0] sm:$0xff] %vm424_vm3, %v1536_v47  ;;  %v7020_v49 = vpop.f32.mrb[32].mxu1 }
 0x344   : > { %v1744_v60 = vadd.f32 %v9091_v51, %v7020_v49  ;;  %v1738_v3 = vpop.f32.mrb[33].mxu1 }
 0x345   : > { %v1739_v63 = vadd.f32 %v9091_v51, %v1738_v3  ;;  %v9113_v3 = vpop.permute.xlu1 %4243 }
 0x346   : > { %7646 = vtanh.f32 %v1744_v60 }
 0x347   : > { %7648 = vtanh.f32 %v1739_v63  ;;  %v7023_v16 = vpop.f32.mrb[34].mxu1 }
 0x348   : > { %v1754_v7 = vadd.f32 %v9091_v51, %v7023_v16  ;;  %v1748_v10 = vpop.f32.mrb[35].mxu1 }
 0x349   : > { %v1749_v39 = vadd.f32 %v9091_v51, %v1748_v10 }
 0x34a   : > { %7650 = vtanh.f32 %v1754_v7 }
 0x34b   : > { %7652 = vtanh.f32 %v1749_v39  ;;  %v7026_v5 = vpop.f32.mrb[36].mxu1 }
 0x34c   : > { %v1764_v6 = vadd.f32 %v9091_v51, %v7026_v5  ;;  %v1758_v33 = vpop.f32.mrb[37].mxu1 }
 0x34d   : > { %v1759_v13 = vadd.f32 %v9091_v51, %v1758_v33 }
 0x34e   : > { %7654 = vtanh.f32 %v1764_v6 }
 0x34f   : > { %7656 = vtanh.f32 %v1759_v13  ;;  %v7029_v62 = vpop.f32.mrb[38].mxu1 }
 0x350   : > { %v7647_v17 = vpop.eup %7646  ;;  %v1774_v22 = vadd.f32 %v9091_v51, %v7029_v62  ;;  %v1768_v25 = vpop.f32.mrb[39].mxu1 }
 0x351   : > { %v7649_v28 = vpop.eup %7648  ;;  %v1769_v29 = vadd.f32 %v9091_v51, %v1768_v25  ;;  %v1930_v43 = vmul.f32 %v9108_v35, %v7647_v17 }
 0x352   : > { %7658 = vtanh.f32 %v1774_v22  ;;  %v1929_v45 = vmul.f32 %v9108_v35, %v7649_v28 }
 0x353   : > { %7660 = vtanh.f32 %v1769_v29  ;;  %v7032_v47 = vpop.f32.mrb[40].mxu1  ;;  %v1964_v49 = vsel %vm818_vm4, %v1930_v43, 0.0 }
 0x354   : > { %v7651_v60 = vpop.eup %7650  ;;  %v1784_v63 = vadd.f32 %v9091_v51, %v7032_v47  ;;  %1965 = vadd.xlane.f32.xlu0 %v1964_v49  ;;  %v1778_v16 = vpop.f32.mrb[41].mxu1  ;;  %v1961_v7 = vsel %vm818_vm4, %v1929_v45, 0.0 }
 0x355   : > { %v7653_v10 = vpop.eup %7652  ;;  %v1779_v39 = vadd.f32 %v9091_v51, %v1778_v16  ;;  %1962 = vadd.xlane.f32.xlu1 %v1961_v7  ;;  %v1932_v5 = vmul.f32 %v9108_v35, %v7651_v60  ;;  %v9125_v45 = vpop.permute.xlu1 %4031 }
 0x356   : > { %7662 = vtanh.f32 %v1784_v63  ;;  %v1931_v6 = vmul.f32 %v9108_v35, %v7653_v10 }
 0x357   : > { %7664 = vtanh.f32 %v1779_v39  ;;  %v7035_v33 = vpop.f32.mrb[42].mxu1  ;;  %v1970_v13 = vsel %vm818_vm4, %v1932_v5, 0.0 }
 0x358   : > { %v7655_v62 = vpop.eup %7654  ;;  %v1794_v17 = vadd.f32 %v9091_v51, %v7035_v33  ;;  %v1788_v22 = vpop.f32.mrb[43].mxu1  ;;  %v1967_v25 = vsel %vm818_vm4, %v1931_v6, 0.0 }
 0x359   : > { %v7657_v28 = vpop.eup %7656  ;;  %v1789_v29 = vadd.f32 %v9091_v51, %v1788_v22  ;;  %1968 = vadd.xlane.f32.xlu0 %v1967_v25  ;;  %1971 = vadd.xlane.f32.xlu1 %v1970_v13  ;;  %v1934_v43 = vmul.f32 %v9108_v35, %v7655_v62  ;;  %v9135_v22 = vpop.permute.xlu1 %4251 }
 0x35a   : > { %7666 = vtanh.f32 %v1794_v17  ;;  %v1933_v47 = vmul.f32 %v9108_v35, %v7657_v28 }
 0x35b   : > { %7668 = vtanh.f32 %v1789_v29  ;;  %v7038_v49 = vpop.f32.mrb[44].mxu1  ;;  %v1976_v60 = vsel %vm818_vm4, %v1934_v43, 0.0 }
 0x35c   : > { %v7659_v63 = vpop.eup %7658  ;;  %v1804_v16 = vadd.f32 %v9091_v51, %v7038_v49  ;;  %v1798_v7 = vpop.f32.mrb[45].mxu1  ;;  %v1973_v10 = vsel %vm818_vm4, %v1933_v47, 0.0 }
 0x35d   : > { %v7661_v39 = vpop.eup %7660  ;;  %v1799_v5 = vadd.f32 %v9091_v51, %v1798_v7  ;;  %1974 = vadd.xlane.f32.xlu0 %v1973_v10  ;;  %1977 = vadd.xlane.f32.xlu1 %v1976_v60  ;;  %v1936_v6 = vmul.f32 %v9108_v35, %v7659_v63 }
 0x35e   : > { %7670 = vtanh.f32 %v1804_v16  ;;  %v1935_v33 = vmul.f32 %v9108_v35, %v7661_v39 }
 0x35f   : > { %7672 = vtanh.f32 %v1799_v5  ;;  %v7041_v13 = vpop.f32.mrb[46].mxu1  ;;  %v1982_v62 = vsel %vm818_vm4, %v1936_v6, 0.0 }
 0x360   : > { %v7663_v17 = vpop.eup %7662  ;;  %v1814_v25 = vadd.f32 %v9091_v51, %v7041_v13  ;;  %v1808_v28 = vpop.f32.mrb[47].mxu1  ;;  %v1979_v29 = vsel %vm818_vm4, %v1935_v33, 0.0 }
 0x361   : > { %v7665_v43 = vpop.eup %7664  ;;  %v1809_v47 = vadd.f32 %v9091_v51, %v1808_v28  ;;  %1980 = vadd.xlane.f32.xlu0 %v1979_v29  ;;  %1983 = vadd.xlane.f32.xlu1 %v1982_v62  ;;  %v1938_v49 = vmul.f32 %v9108_v35, %v7663_v17  ;;  %v9147_v62 = vpop.permute.xlu1 %4041 }
 0x362   : > { %7674 = vtanh.f32 %v1814_v25  ;;  %v1937_v60 = vmul.f32 %v9108_v35, %v7665_v43  ;;  %11514 = vst [vmem:[#allocation30_spill] sm:$0xff] %v9147_v62 }
 0x363   : > { %7676 = vtanh.f32 %v1809_v47  ;;  %v7044_v63 = vpop.f32.mrb[48].mxu1  ;;  %v1988_v16 = vsel %vm818_vm4, %v1938_v49, 0.0 }
 0x364   : > { %v7667_v7 = vpop.eup %7666  ;;  %v1824_v10 = vadd.f32 %v9091_v51, %v7044_v63  ;;  %v1818_v39 = vpop.f32.mrb[49].mxu1  ;;  %v1985_v5 = vsel %vm818_vm4, %v1937_v60, 0.0 }
 0x365   : > { %v7669_v6 = vpop.eup %7668  ;;  %v1819_v33 = vadd.f32 %v9091_v51, %v1818_v39  ;;  %1986 = vadd.xlane.f32.xlu0 %v1985_v5  ;;  %1989 = vadd.xlane.f32.xlu1 %v1988_v16  ;;  %v1940_v13 = vmul.f32 %v9108_v35, %v7667_v7 }
 0x366   : > { %7678 = vtanh.f32 %v1824_v10  ;;  %v1939_v17 = vmul.f32 %v9108_v35, %v7669_v6  ;;  %v9157_v6 = vpop.permute.xlu1 %4259 }
 0x367   : > { %7680 = vtanh.f32 %v1819_v33  ;;  %v7047_v25 = vpop.f32.mrb[50].mxu1  ;;  %v1994_v28 = vsel %vm818_vm4, %v1940_v13, 0.0  ;;  %11515 = vst [vmem:[#allocation31_spill] sm:$0xff] %v9157_v6 }
 0x368   : > { %v7671_v29 = vpop.eup %7670  ;;  %v1834_v43 = vadd.f32 %v9091_v51, %v7047_v25  ;;  %v1828_v47 = vpop.f32.mrb[51].mxu1  ;;  %v1991_v49 = vsel %vm818_vm4, %v1939_v17, 0.0 }
 0x369   : > { %v7673_v60 = vpop.eup %7672  ;;  %v1829_v63 = vadd.f32 %v9091_v51, %v1828_v47  ;;  %1992 = vadd.xlane.f32.xlu0 %v1991_v49  ;;  %1995 = vadd.xlane.f32.xlu1 %v1994_v28  ;;  %v1942_v16 = vmul.f32 %v9108_v35, %v7671_v29 }
 0x36a   : > { %7682 = vtanh.f32 %v1834_v43  ;;  %v1941_v7 = vmul.f32 %v9108_v35, %v7673_v60 }
 0x36b   : > { %7684 = vtanh.f32 %v1829_v63  ;;  %v7050_v10 = vpop.f32.mrb[52].mxu1  ;;  %v2000_v39 = vsel %vm818_vm4, %v1942_v16, 0.0 }
 0x36c   : > { %v7675_v5 = vpop.eup %7674  ;;  %v1844_v33 = vadd.f32 %v9091_v51, %v7050_v10  ;;  %v1838_v13 = vpop.f32.mrb[53].mxu1  ;;  %v1997_v17 = vsel %vm818_vm4, %v1941_v7, 0.0 }
 0x36d   : > { %v7677_v25 = vpop.eup %7676  ;;  %v1839_v28 = vadd.f32 %v9091_v51, %v1838_v13  ;;  %1998 = vadd.xlane.f32.xlu0 %v1997_v17  ;;  %2001 = vadd.xlane.f32.xlu1 %v2000_v39  ;;  %v1944_v29 = vmul.f32 %v9108_v35, %v7675_v5  ;;  %v9169_v5 = vpop.permute.xlu1 %4051 }
 0x36e   : > { %7686 = vtanh.f32 %v1844_v33  ;;  %v1943_v43 = vmul.f32 %v9108_v35, %v7677_v25  ;;  %11516 = vst [vmem:[#allocation32_spill] sm:$0xff] %v9169_v5 }
 0x36f   : > { %7688 = vtanh.f32 %v1839_v28  ;;  %v7053_v47 = vpop.f32.mrb[54].mxu1  ;;  %v2006_v49 = vsel %vm818_vm4, %v1944_v29, 0.0 }
 0x370   : > { %v7679_v60 = vpop.eup %7678  ;;  %v1854_v63 = vadd.f32 %v9091_v51, %v7053_v47  ;;  %v1848_v16 = vpop.f32.mrb[55].mxu1  ;;  %v2003_v7 = vsel %vm818_vm4, %v1943_v43, 0.0 }
 0x371   : > { %v7681_v10 = vpop.eup %7680  ;;  %v1849_v13 = vadd.f32 %v9091_v51, %v1848_v16  ;;  %2004 = vadd.xlane.f32.xlu0 %v2003_v7  ;;  %2007 = vadd.xlane.f32.xlu1 %v2006_v49  ;;  %v1946_v39 = vmul.f32 %v9108_v35, %v7679_v60 }
 0x372   : > { %7690 = vtanh.f32 %v1854_v63  ;;  %v1945_v33 = vmul.f32 %v9108_v35, %v7681_v10 }
 0x373   : > { %7692 = vtanh.f32 %v1849_v13  ;;  %v7056_v17 = vpop.f32.mrb[56].mxu1  ;;  %v2012_v25 = vsel %vm818_vm4, %v1946_v39, 0.0  ;;  %v9179_v39 = vpop.permute.xlu1 %4267 }
 0x374   : > { %v7683_v28 = vpop.eup %7682  ;;  %v1864_v29 = vadd.f32 %v9091_v51, %v7056_v17  ;;  %v1858_v43 = vpop.f32.mrb[57].mxu1  ;;  %v2009_v47 = vsel %vm818_vm4, %v1945_v33, 0.0  ;;  %11517 = vst [vmem:[#allocation33_spill] sm:$0xff] %v9179_v39 }
 0x375   : > { %v7685_v16 = vpop.eup %7684  ;;  %v1859_v49 = vadd.f32 %v9091_v51, %v1858_v43  ;;  %2010 = vadd.xlane.f32.xlu0 %v2009_v47  ;;  %2013 = vadd.xlane.f32.xlu1 %v2012_v25  ;;  %v1948_v60 = vmul.f32 %v9108_v35, %v7683_v28 }
 0x376   : > { %7694 = vtanh.f32 %v1864_v29  ;;  %v1947_v63 = vmul.f32 %v9108_v35, %v7685_v16 }
 0x377   : > { %7696 = vtanh.f32 %v1859_v49  ;;  %v7059_v7 = vpop.f32.mrb[58].mxu1  ;;  %v2018_v10 = vsel %vm818_vm4, %v1948_v60, 0.0 }
 0x378   : > { %v7687_v13 = vpop.eup %7686  ;;  %v1874_v17 = vadd.f32 %v9091_v51, %v7059_v7  ;;  %v1868_v33 = vpop.f32.mrb[59].mxu1  ;;  %v2015_v42 = vsel %vm818_vm4, %v1947_v63, 0.0 }
 0x379   : > { %v7689_v43 = vpop.eup %7688  ;;  %v1869_v25 = vadd.f32 %v9091_v51, %v1868_v33  ;;  %2016 = vadd.xlane.f32.xlu0 %v2015_v42  ;;  %2019 = vadd.xlane.f32.xlu1 %v2018_v10  ;;  %v1950_v28 = vmul.f32 %v9108_v35, %v7687_v13  ;;  %v9191_v10 = vpop.permute.xlu1 %4061 }
 0x37a   : > { %7698 = vtanh.f32 %v1874_v17  ;;  %v1949_v29 = vmul.f32 %v9108_v35, %v7689_v43  ;;  %11518 = vst [vmem:[#allocation34_spill] sm:$0xff] %v9191_v10 }
 0x37b   : > { %7700 = vtanh.f32 %v1869_v25  ;;  %v7062_v47 = vpop.f32.mrb[60].mxu1  ;;  %v2024_v16 = vsel %vm818_vm4, %v1950_v28, 0.0 }
 0x37c   : > { %v7691_v49 = vpop.eup %7690  ;;  %v1884_v60 = vadd.f32 %v9091_v51, %v7062_v47  ;;  %v1878_v7 = vpop.f32.mrb[61].mxu1  ;;  %v2021_v63 = vsel %vm818_vm4, %v1949_v29, 0.0 }
 0x37d   : > { %v7693_v0 = vpop.eup %7692  ;;  %v1879_v33 = vadd.f32 %v9091_v51, %v1878_v7  ;;  %2022 = vadd.xlane.f32.xlu0 %v2021_v63  ;;  %2025 = vadd.xlane.f32.xlu1 %v2024_v16  ;;  %v1952_v42 = vmul.f32 %v9108_v35, %v7691_v49 }
 0x37e   : > { %7702 = vtanh.f32 %v1884_v60  ;;  %v1951_v13 = vmul.f32 %v9108_v35, %v7693_v0 }
 0x37f   : > { %7704 = vtanh.f32 %v1879_v33  ;;  %v7065_v17 = vpop.f32.mrb[62].mxu1  ;;  %v2030_v43 = vsel %vm818_vm4, %v1952_v42, 0.0  ;;  %v9201_v42 = vpop.permute.xlu1 %4275 }
 0x380   : > { %v7695_v25 = vpop.eup %7694  ;;  %v1894_v28 = vadd.f32 %v9091_v51, %v7065_v17  ;;  %v1888_v29 = vpop.f32.mrb[63].mxu1  ;;  %v2027_v47 = vsel %vm818_vm4, %v1951_v13, 0.0  ;;  %11519 = vst [vmem:[#allocation35_spill] sm:$0xff] %v9201_v42 }
 0x381   : > { %v7697_v7 = vpop.eup %7696  ;;  %v1889_v16 = vadd.f32 %v9091_v51, %v1888_v29  ;;  %2028 = vadd.xlane.f32.xlu0 %v2027_v47  ;;  %2031 = vadd.xlane.f32.xlu1 %v2030_v43  ;;  %v1954_v49 = vmul.f32 %v9108_v35, %v7695_v25  ;;  %v9205_v47 = vpop.permute.xlu0 %4223 }
 0x382   : > { %7706 = vtanh.f32 %v1894_v28  ;;  %v1953_v0 = vmul.f32 %v9108_v35, %v7697_v7 }
 0x383   : > { %7708 = vtanh.f32 %v1889_v16  ;;  %v7128_v60 = vpop.f32.mrb[64].mxu1  ;;  %v2036_v63 = vsel %vm818_vm4, %v1954_v49, 0.0 }
 0x384   : > { %v7699_v33 = vpop.eup %7698  ;;  %v2866_v17 = vadd.f32 %v9091_v51, %v7128_v60  ;;  %v2860_v13 = vpop.f32.mrb[65].mxu1  ;;  %v2033_v56 = vsel %vm818_vm4, %v1953_v0, 0.0 }
 0x385   : > { %v7701_v29 = vpop.eup %7700  ;;  %v2861_v43 = vadd.f32 %v9091_v51, %v2860_v13  ;;  %2034 = vadd.xlane.f32.xlu0 %v2033_v56  ;;  %2037 = vadd.xlane.f32.xlu1 %v2036_v63  ;;  %v1956_v25 = vmul.f32 %v9108_v35, %v7699_v33  ;;  %v9215_v63 = vpop.permute.xlu1 %4071 }
 0x386   : > { %7710 = vtanh.f32 %v2866_v17  ;;  %v1955_v28 = vmul.f32 %v9108_v35, %v7701_v29  ;;  %11520 = vst [vmem:[#allocation36_spill] sm:$0xff] %v9215_v63  ;;  %v9218_v17 = vpop.permute.xlu0 %4231  ;;  %v8103_v63 = vld [vmem:[%s8553_s17 + $0x60] sm:$0xff] }
 0x387   : > { %7712 = vtanh.f32 %v2861_v43  ;;  %v7131_v7 = vpop.f32.mrb[66].mxu1  ;;  %v2042_v16 = vsel %vm818_vm4, %v1956_v25, 0.0 }
 0x388   : > { %v7703_v49 = vpop.eup %7702  ;;  %v2876_v60 = vadd.f32 %v9091_v51, %v7131_v7  ;;  %v2870_v0 = vpop.f32.mrb[67].mxu1  ;;  %v2039_v52 = vsel %vm818_vm4, %v1955_v28, 0.0 }
 0x389   : > { %v7705_v30 = vpop.eup %7704  ;;  %v2871_v13 = vadd.f32 %v9091_v51, %v2870_v0  ;;  %2040 = vadd.xlane.f32.xlu0 %v2039_v52  ;;  %2043 = vadd.xlane.f32.xlu1 %v2042_v16  ;;  %v1958_v56 = vmul.f32 %v9108_v35, %v7703_v49  ;;  %v9227_v61 = vpop.permute.xlu1 %4283 }
 0x38a   : > { %7714 = vtanh.f32 %v2876_v60  ;;  %v1957_v33 = vmul.f32 %v9108_v35, %v7705_v30  ;;  %11521 = vst [vmem:[#allocation37_spill] sm:$0xff] %v9227_v61 }
 0x38b   : > { %7716 = vtanh.f32 %v2871_v13  ;;  %v7134_v29 = vpop.f32.mrb[68].mxu1  ;;  %v2048_v43 = vsel %vm818_vm4, %v1958_v56, 0.0 }
 0x38c   : > { %v7707_v25 = vpop.eup %7706  ;;  %v2886_v28 = vadd.f32 %v9091_v51, %v7134_v29  ;;  %v2880_v7 = vpop.f32.mrb[69].mxu1  ;;  %v2045_v52 = vsel %vm818_vm4, %v1957_v33, 0.0 }
 0x38d   : > { %v7709_v16 = vpop.eup %7708  ;;  %v2881_v49 = vadd.f32 %v9091_v51, %v2880_v7  ;;  %2046 = vadd.xlane.f32.xlu0 %v2045_v52  ;;  %2049 = vadd.xlane.f32.xlu1 %v2048_v43  ;;  %v1960_v60 = vmul.f32 %v9108_v35, %v7707_v25  ;;  %v9231_v52 = vpop.permute.xlu0 %4239 }
 0x38e   : > { %7718 = vtanh.f32 %v2886_v28  ;;  %v1959_v30 = vmul.f32 %v9108_v35, %v7709_v16 }
 0x38f   : > { %7720 = vtanh.f32 %v2881_v49  ;;  %v7137_v0 = vpop.f32.mrb[70].mxu1  ;;  %v2054_v13 = vsel %vm818_vm4, %v1960_v60, 0.0 }
 0x390   : > { %v7711_v56 = vpop.eup %7710  ;;  %v2896_v29 = vadd.f32 %v9091_v51, %v7137_v0  ;;  %v2890_v33 = vpop.f32.mrb[71].mxu1  ;;  %v2051_v14 = vsel %vm818_vm4, %v1959_v30, 0.0 }
 0x391   : > { %v7713_v7 = vpop.eup %7712  ;;  %v2891_v43 = vadd.f32 %v9091_v51, %v2890_v33  ;;  %2052 = vadd.xlane.f32.xlu0 %v2051_v14  ;;  %2055 = vadd.xlane.f32.xlu1 %v2054_v13  ;;  %v3052_v25 = vmul.f32 %v9108_v35, %v7711_v56  ;;  %v9241_v13 = vpop.permute.xlu1 %4081 }
 0x392   : > { %7722 = vtanh.f32 %v2896_v29  ;;  %v3051_v28 = vmul.f32 %v9108_v35, %v7713_v7  ;;  %11522 = vst [vmem:[#allocation38_spill] sm:$0xff] %v9241_v13  ;;  %v9244_v29 = vpop.permute.xlu0 %4247  ;;  %v8100_v13 = vld [vmem:[%s8553_s17 + $0x30] sm:$0xff] }
 0x393   : > { %7724 = vtanh.f32 %v2891_v43  ;;  %v7140_v16 = vpop.f32.mrb[72].mxu1  ;;  %v3086_v49 = vsel %vm818_vm4, %v3052_v25, 0.0 }
 0x394   : > { %v7715_v60 = vpop.eup %7714  ;;  %v2906_v0 = vadd.f32 %v9091_v51, %v7140_v16  ;;  %v2900_v30 = vpop.f32.mrb[73].mxu1  ;;  %v3083_v57 = vsel %vm818_vm4, %v3051_v28, 0.0 }
 0x395   : > { %v7717_v32 = vpop.eup %7716  ;;  %v2901_v33 = vadd.f32 %v9091_v51, %v2900_v30  ;;  %3087 = vadd.xlane.f32.xlu0 %v3086_v49  ;;  %3084 = vadd.xlane.f32.xlu1 %v3083_v57  ;;  %v3054_v14 = vmul.f32 %v9108_v35, %v7715_v60  ;;  %v9253_v21 = vpop.permute.xlu1 %4291 }
 0x396   : > { %7726 = vtanh.f32 %v2906_v0  ;;  %v3053_v56 = vmul.f32 %v9108_v35, %v7717_v32  ;;  %11523 = vst [vmem:[#allocation39_spill] sm:$0xff] %v9253_v21 }
 0x397   : > { %7728 = vtanh.f32 %v2901_v33  ;;  %v7143_v7 = vpop.f32.mrb[74].mxu1  ;;  %v3092_v43 = vsel %vm818_vm4, %v3054_v14, 0.0 }
 0x398   : > { %v7719_v25 = vpop.eup %7718  ;;  %v2916_v28 = vadd.f32 %v9091_v51, %v7143_v7  ;;  %v2910_v16 = vpop.f32.mrb[75].mxu1  ;;  %v3089_v49 = vsel %vm818_vm4, %v3053_v56, 0.0 }
 0x399   : > { %v7721_v57 = vpop.eup %7720  ;;  %v2911_v60 = vadd.f32 %v9091_v51, %v2910_v16  ;;  %3090 = vadd.xlane.f32.xlu0 %v3089_v49  ;;  %3093 = vadd.xlane.f32.xlu1 %v3092_v43  ;;  %v3056_v0 = vmul.f32 %v9108_v35, %v7719_v25  ;;  %v9257_v49 = vpop.permute.xlu0 %4255 }
 0x39a   : > { %7730 = vtanh.f32 %v2916_v28  ;;  %v3055_v32 = vmul.f32 %v9108_v35, %v7721_v57  ;;  %11524 = vst [vmem:[#allocation40_spill] sm:$0xff] %v9257_v49 }
 0x39b   : > { %7732 = vtanh.f32 %v2911_v60  ;;  %v7146_v30 = vpop.f32.mrb[76].mxu1  ;;  %v3098_v33 = vsel %vm818_vm4, %v3056_v0, 0.0 }
 0x39c   : > { %v7723_v14 = vpop.eup %7722  ;;  %v2926_v7 = vadd.f32 %v9091_v51, %v7146_v30  ;;  %v2920_v56 = vpop.f32.mrb[77].mxu1  ;;  %v3095_v31 = vsel %vm818_vm4, %v3055_v32, 0.0 }
 0x39d   : > { %v7725_v16 = vpop.eup %7724  ;;  %v2921_v43 = vadd.f32 %v9091_v51, %v2920_v56  ;;  %3096 = vadd.xlane.f32.xlu0 %v3095_v31  ;;  %3099 = vadd.xlane.f32.xlu1 %v3098_v33  ;;  %v3058_v25 = vmul.f32 %v9108_v35, %v7723_v14  ;;  %v9267_v33 = vpop.permute.xlu1 %4091 }
 0x39e   : > { %7734 = vtanh.f32 %v2926_v7  ;;  %v3057_v28 = vmul.f32 %v9108_v35, %v7725_v16  ;;  %11525 = vst [vmem:[#allocation41_spill] sm:$0xff] %v9267_v33  ;;  %v9270_v7 = vpop.permute.xlu0 %4263 }
 0x39f   : > { %7736 = vtanh.f32 %v2921_v43  ;;  %v7149_v57 = vpop.f32.mrb[78].mxu1  ;;  %v3104_v60 = vsel %vm818_vm4, %v3058_v25, 0.0  ;;  %11526 = vst [vmem:[#allocation42_spill] sm:$0xff] %v9270_v7 }
 0x3a0   : > { %v7727_v0 = vpop.eup %7726  ;;  %v2936_v30 = vadd.f32 %v9091_v51, %v7149_v57  ;;  %v2930_v32 = vpop.f32.mrb[79].mxu1  ;;  %v3101_v9 = vsel %vm818_vm4, %v3057_v28, 0.0 }
 0x3a1   : > { %v7729_v18 = vpop.eup %7728  ;;  %v2931_v56 = vadd.f32 %v9091_v51, %v2930_v32  ;;  %3102 = vadd.xlane.f32.xlu0 %v3101_v9  ;;  %3105 = vadd.xlane.f32.xlu1 %v3104_v60  ;;  %v3060_v31 = vmul.f32 %v9108_v35, %v7727_v0  ;;  %v9279_v55 = vpop.permute.xlu1 %4299 }
 0x3a2   : > { %7738 = vtanh.f32 %v2936_v30  ;;  %v3059_v14 = vmul.f32 %v9108_v35, %v7729_v18  ;;  %11527 = vst [vmem:[#allocation43_spill] sm:$0xff] %v9279_v55 }
 0x3a3   : > { %7740 = vtanh.f32 %v2931_v56  ;;  %v7152_v16 = vpop.f32.mrb[80].mxu1  ;;  %v3110_v43 = vsel %vm818_vm4, %v3060_v31, 0.0 }
 0x3a4   : > { %v7731_v25 = vpop.eup %7730  ;;  %v2946_v28 = vadd.f32 %v9091_v51, %v7152_v16  ;;  %v2940_v57 = vpop.f32.mrb[81].mxu1  ;;  %v3107_v9 = vsel %vm818_vm4, %v3059_v14, 0.0 }
 0x3a5   : > { %v7733_v60 = vpop.eup %7732  ;;  %v2941_v0 = vadd.f32 %v9091_v51, %v2940_v57  ;;  %3108 = vadd.xlane.f32.xlu0 %v3107_v9  ;;  %3111 = vadd.xlane.f32.xlu1 %v3110_v43  ;;  %v3062_v30 = vmul.f32 %v9108_v35, %v7731_v25  ;;  %v9283_v9 = vpop.permute.xlu0 %4271 }
 0x3a6   : > { %7742 = vtanh.f32 %v2946_v28  ;;  %v3061_v18 = vmul.f32 %v9108_v35, %v7733_v60  ;;  %11528 = vst [vmem:[#allocation44_spill] sm:$0xff] %v9283_v9  ;;  %v8107_v9 = vld [vmem:[%s8553_s17 + $0xa0] sm:$0xff] }
 0x3a7   : > { %7744 = vtanh.f32 %v2941_v0  ;;  %v7155_v32 = vpop.f32.mrb[82].mxu1  ;;  %v3116_v56 = vsel %vm818_vm4, %v3062_v30, 0.0 }
 0x3a8   : > { %v7735_v31 = vpop.eup %7734  ;;  %v2956_v16 = vadd.f32 %v9091_v51, %v7155_v32  ;;  %v2950_v14 = vpop.f32.mrb[83].mxu1  ;;  %v3113_v8 = vsel %vm818_vm4, %v3061_v18, 0.0 }
 0x3a9   : > { %v7737_v57 = vpop.eup %7736  ;;  %v2951_v43 = vadd.f32 %v9091_v51, %v2950_v14  ;;  %3114 = vadd.xlane.f32.xlu0 %v3113_v8  ;;  %3117 = vadd.xlane.f32.xlu1 %v3116_v56  ;;  %v3064_v25 = vmul.f32 %v9108_v35, %v7735_v31  ;;  %v9293_v56 = vpop.permute.xlu1 %4101 }
 0x3aa   : > { %7746 = vtanh.f32 %v2956_v16  ;;  %v3063_v28 = vmul.f32 %v9108_v35, %v7737_v57  ;;  %11529 = vst [vmem:[#allocation45_spill] sm:$0xff] %v9293_v56  ;;  %v9296_v16 = vpop.permute.xlu0 %4279 }
 0x3ab   : > { %7748 = vtanh.f32 %v2951_v43  ;;  %v7158_v60 = vpop.f32.mrb[84].mxu1  ;;  %v3122_v0 = vsel %vm818_vm4, %v3064_v25, 0.0  ;;  %11530 = vst [vmem:[#allocation46_spill] sm:$0xff] %v9296_v16  ;;  %v4491_v16 = vld [vmem:[%s11374_s4 + $0x98] sm:$0xff] }
 0x3ac   : > { %v7739_v30 = vpop.eup %7738  ;;  %v2966_v32 = vadd.f32 %v9091_v51, %v7158_v60  ;;  %v2960_v18 = vpop.f32.mrb[85].mxu1  ;;  %v3119_v55 = vsel %vm818_vm4, %v3063_v28, 0.0 }
 0x3ad   : > { %v7741_v33 = vpop.eup %7740  ;;  %v2961_v14 = vadd.f32 %v9091_v51, %v2960_v18  ;;  %3120 = vadd.xlane.f32.xlu0 %v3119_v55  ;;  %3123 = vadd.xlane.f32.xlu1 %v3122_v0  ;;  %v3066_v8 = vmul.f32 %v9108_v35, %v7739_v30  ;;  %v9305_v56 = vpop.permute.xlu1 %4307 }
 0x3ae   : > { %7750 = vtanh.f32 %v2966_v32  ;;  %v3065_v31 = vmul.f32 %v9108_v35, %v7741_v33  ;;  %11531 = vst [vmem:[#allocation47_spill] sm:$0xff] %v9305_v56 }
 0x3af   : > { %7752 = vtanh.f32 %v2961_v14  ;;  %v7161_v57 = vpop.f32.mrb[86].mxu1  ;;  %v3128_v43 = vsel %vm818_vm4, %v3066_v8, 0.0 }
 0x3b0   : > { %v7743_v25 = vpop.eup %7742  ;;  %v2976_v28 = vadd.f32 %v9091_v51, %v7161_v57  ;;  %v2970_v60 = vpop.f32.mrb[87].mxu1  ;;  %v3125_v55 = vsel %vm818_vm4, %v3065_v31, 0.0 }
 0x3b1   : > { %v7745_v0 = vpop.eup %7744  ;;  %v2971_v30 = vadd.f32 %v9091_v51, %v2970_v60  ;;  %3126 = vadd.xlane.f32.xlu0 %v3125_v55  ;;  %3129 = vadd.xlane.f32.xlu1 %v3128_v43  ;;  %v3068_v32 = vmul.f32 %v9108_v35, %v7743_v25  ;;  %v9309_v55 = vpop.permute.xlu0 %4287 }
 0x3b2   : > { %7754 = vtanh.f32 %v2976_v28  ;;  %v3067_v33 = vmul.f32 %v9108_v35, %v7745_v0  ;;  %11532 = vst [vmem:[#allocation48_spill] sm:$0xff] %v9309_v55 }
 0x3b3   : > { %7756 = vtanh.f32 %v2971_v30  ;;  %v7164_v18 = vpop.f32.mrb[88].mxu1  ;;  %v3134_v14 = vsel %vm818_vm4, %v3068_v32, 0.0 }
 0x3b4   : > { %v7747_v8 = vpop.eup %7746  ;;  %v2986_v57 = vadd.f32 %v9091_v51, %v7164_v18  ;;  %v2980_v31 = vpop.f32.mrb[89].mxu1  ;;  %v3131_v21 = vsel %vm818_vm4, %v3067_v33, 0.0 }
 0x3b5   : > { %v7749_v60 = vpop.eup %7748  ;;  %v2981_v43 = vadd.f32 %v9091_v51, %v2980_v31  ;;  %3132 = vadd.xlane.f32.xlu0 %v3131_v21  ;;  %3135 = vadd.xlane.f32.xlu1 %v3134_v14  ;;  %v3070_v25 = vmul.f32 %v9108_v35, %v7747_v8  ;;  %v9319_v14 = vpop.permute.xlu1 %4111 }
 0x3b6   : > { %7758 = vtanh.f32 %v2986_v57  ;;  %v3069_v28 = vmul.f32 %v9108_v35, %v7749_v60  ;;  %11533 = vst [vmem:[#allocation49_spill] sm:$0xff] %v9319_v14  ;;  %v9322_v57 = vpop.permute.xlu0 %4295 }
 0x3b7   : > { %7760 = vtanh.f32 %v2981_v43  ;;  %v7167_v0 = vpop.f32.mrb[90].mxu1  ;;  %v3140_v30 = vsel %vm818_vm4, %v3070_v25, 0.0  ;;  %11534 = vst [vmem:[#allocation50_spill] sm:$0xff] %v9322_v57 }
 0x3b8   : > { %v7751_v32 = vpop.eup %7750  ;;  %v2996_v18 = vadd.f32 %v9091_v51, %v7167_v0  ;;  %v2990_v33 = vpop.f32.mrb[91].mxu1  ;;  %v3137_v56 = vsel %vm818_vm4, %v3069_v28, 0.0 }
 0x3b9   : > { %v7753_v55 = vpop.eup %7752  ;;  %v2991_v31 = vadd.f32 %v9091_v51, %v2990_v33  ;;  %3138 = vadd.xlane.f32.xlu0 %v3137_v56  ;;  %3141 = vadd.xlane.f32.xlu1 %v3140_v30  ;;  %v3072_v21 = vmul.f32 %v9108_v35, %v7751_v32  ;;  %v9331_v14 = vpop.permute.xlu1 %4315 }
 0x3ba   : > { %7762 = vtanh.f32 %v2996_v18  ;;  %v3071_v8 = vmul.f32 %v9108_v35, %v7753_v55  ;;  %11535 = vst [vmem:[#allocation51_spill] sm:$0xff] %v9331_v14 }
 0x3bb   : > { %7764 = vtanh.f32 %v2991_v31  ;;  %v7170_v60 = vpop.f32.mrb[92].mxu1  ;;  %v3146_v43 = vsel %vm818_vm4, %v3072_v21, 0.0 }
 0x3bc   : > { %v7755_v25 = vpop.eup %7754  ;;  %v3006_v28 = vadd.f32 %v9091_v51, %v7170_v60  ;;  %v3000_v0 = vpop.f32.mrb[93].mxu1  ;;  %v3143_v56 = vsel %vm818_vm4, %v3071_v8, 0.0 }
 0x3bd   : > { %v7757_v30 = vpop.eup %7756  ;;  %v3001_v32 = vadd.f32 %v9091_v51, %v3000_v0  ;;  %3144 = vadd.xlane.f32.xlu0 %v3143_v56  ;;  %3147 = vadd.xlane.f32.xlu1 %v3146_v43  ;;  %v3074_v18 = vmul.f32 %v9108_v35, %v7755_v25  ;;  %v9335_v56 = vpop.permute.xlu0 %4303 }
 0x3be   : > { %7766 = vtanh.f32 %v3006_v28  ;;  %v3073_v55 = vmul.f32 %v9108_v35, %v7757_v30  ;;  %11536 = vst [vmem:[#allocation52_spill] sm:$0xff] %v9335_v56  ;;  %v9343_v14 = vpop.permute.xlu1 %4121 }
 0x3bf   : > { %7768 = vtanh.f32 %v3001_v32  ;;  %v7173_v33 = vpop.f32.mrb[94].mxu1  ;;  %v3152_v31 = vsel %vm818_vm4, %v3074_v18, 0.0  ;;  %11537 = vst [vmem:[#allocation53_spill] sm:$0xff] %v9343_v14  ;;  %v8099_v14 = vld [vmem:[%s8553_s17 + $0x20] sm:$0xff] }
 0x3c0   : > { %v7759_v21 = vpop.eup %7758  ;;  %v3016_v60 = vadd.f32 %v9091_v51, %v7173_v33  ;;  %v3010_v8 = vpop.f32.mrb[95].mxu1  ;;  %v3149_v57 = vsel %vm818_vm4, %v3073_v55, 0.0 }
 0x3c1   : > { %v7761_v0 = vpop.eup %7760  ;;  %v3011_v43 = vadd.f32 %v9091_v51, %v3010_v8  ;;  %3150 = vadd.xlane.f32.xlu0 %v3149_v57  ;;  %3153 = vadd.xlane.f32.xlu1 %v3152_v31  ;;  %v3076_v25 = vmul.f32 %v9108_v35, %v7759_v21  ;;  %v9346_v57 = vpop.permute.xlu0 %4311 }
 0x3c2   : > { %7770 = vtanh.f32 %v3016_v60  ;;  %v3075_v28 = vmul.f32 %v9108_v35, %v7761_v0  ;;  %11538 = vst [vmem:[#allocation54_spill] sm:$0xff] %v9346_v57  ;;  %v4489_v57 = vld [vmem:[%s11374_s4 + $0x88] sm:$0xff] }
 0x3c3   : > { %7772 = vtanh.f32 %v3011_v43  ;;  %v3158_v30 = vsel %vm818_vm4, %v3076_v25, 0.0 }
 0x3c4   : > { %v7763_v32 = vpop.eup %7762  ;;  %v3155_v18 = vsel %vm818_vm4, %v3075_v28, 0.0 }
 0x3c5   : > { %v7765_v33 = vpop.eup %7764  ;;  %3156 = vadd.xlane.f32.xlu0 %v3155_v18  ;;  %3159 = vadd.xlane.f32.xlu1 %v3158_v30  ;;  %v3078_v55 = vmul.f32 %v9108_v35, %v7763_v32  ;;  %v9353_v30 = vpop.permute.xlu1 %4323 }
 0x3c6   : > { %v3077_v51 = vmul.f32 %v9108_v35, %v7765_v33  ;;  %11539 = vst [vmem:[#allocation55_spill] sm:$0xff] %v9353_v30  ;;  %v9356_v33 = vpop.permute.xlu0 %4319 }
 0x3c7   : > { %v3164_v31 = vsel %vm818_vm4, %v3078_v55, 0.0  ;;  %11540 = vst [vmem:[#allocation56_spill] sm:$0xff] %v9356_v33 }
 0x3c8   : > { %v7767_v21 = vpop.eup %7766  ;;  %v3161_v60 = vsel %vm818_vm4, %v3077_v51, 0.0 }
 0x3c9   : > { %v7769_v8 = vpop.eup %7768  ;;  %3162 = vadd.xlane.f32.xlu0 %v3161_v60  ;;  %3165 = vadd.xlane.f32.xlu1 %v3164_v31  ;;  %v3080_v0 = vmul.f32 %v9108_v35, %v7767_v21  ;;  %v9362_v60 = vpop.permute.xlu1 %4131 }
 0x3ca   : > { %v3079_v43 = vmul.f32 %v9108_v35, %v7769_v8  ;;  %11541 = vst [vmem:[#allocation57_spill] sm:$0xff] %v9362_v60  ;;  %v9364_v8 = vpop.permute.xlu0 %4327 }
 0x3cb   : > { %v3170_v25 = vsel %vm818_vm4, %v3080_v0, 0.0  ;;  %11542 = vst [vmem:[#allocation58_spill] sm:$0xff] %v9364_v8 }
 0x3cc   : > { %v7771_v28 = vpop.eup %7770  ;;  %v3167_v32 = vsel %vm818_vm4, %v3079_v43, 0.0 }
 0x3cd   : > { %v7773_v18 = vpop.eup %7772  ;;  %3168 = vadd.xlane.f32.xlu0 %v3167_v32  ;;  %3171 = vadd.xlane.f32.xlu1 %v3170_v25  ;;  %v3082_v55 = vmul.f32 %v9108_v35, %v7771_v28  ;;  %v9366_v0 = vpop.permute.xlu1 %4331 }
 0x3ce   : > { %v3081_v51 = vmul.f32 %v9108_v35, %v7773_v18  ;;  %11543 = vst [vmem:[#allocation59_spill] sm:$0xff] %v9366_v0  ;;  %v9368_v43 = vpop.permute.xlu0 %4335  ;;  %v9377_v35 = vld [vmem:[%s11374_s4 + $0x30] ss:$0 sm:$0xff] }
 0x3cf   : > { %v3176_v31 = vsel %vm818_vm4, %v3082_v55, 0.0  ;;  %11544 = vst [vmem:[#allocation60_spill] sm:$0xff] %v9368_v43 }
 0x3d0   : > { %v3173_v21 = vsel %vm818_vm4, %v3081_v51, 0.0 }
 0x3d1   : > { %3174 = vadd.xlane.f32.xlu0 %v3173_v21  ;;  %3177 = vadd.xlane.f32.xlu1 %v3176_v31  ;;  %v9372_v25 = vpop.permute.xlu1 %4141 }
 0x3d2   : > { %v9370_v32 = vpop.permute.xlu0 %4001  ;;  %11545 = vst [vmem:[#allocation61_spill] sm:$0xff] %v9372_v25 }
 0x3e1   : > { %v1966_v28 = vpop.xlane.xlu0 %1965 }
 0x3e2   : > { %v2058_v18 = vadd.f32 %v9377_v35, %v1966_v28  ;;  %v1963_v55 = vpop.xlane.xlu1 %1962 }
 0x3e3   : > { %v2057_v51 = vadd.f32 %v9377_v35, %v1963_v55 }
 0x3e4   : > { %2096 = vperm.xlu1 %7510, %v2058_v18  }
 0x3e6   : > { %v1972_v31 = vpop.xlane.xlu1 %1971  ;;  %v1969_v21 = vpop.xlane.xlu0 %1968 }
 0x3e7   : > { %v2059_v43 = vadd.f32 %v9377_v35, %v1969_v21  ;;  %2091 = vperm.xlu0 %7511, %v2057_v51   ;;  %v2060_v8 = vadd.f32 %v9377_v35, %v1972_v31 }
 0x3e9   : > { %2101 = vperm.xlu1 %7510, %v2059_v43  }
 0x3ea   : > { %v1978_v25 = vpop.xlane.xlu1 %1977  ;;  %v1975_v0 = vpop.xlane.xlu0 %1974 }
 0x3eb   : > { %v2061_v60 = vadd.f32 %v9377_v35, %v1975_v0  ;;  %2106 = vperm.xlu0 %7511, %v2060_v8   ;;  %v2062_v33 = vadd.f32 %v9377_v35, %v1978_v25 }
 0x3ed   : > { %2111 = vperm.xlu1 %7510, %v2061_v60  }
 0x3ee   : > { %v1984_v28 = vpop.xlane.xlu1 %1983  ;;  %v1981_v18 = vpop.xlane.xlu0 %1980 }
 0x3ef   : > { %v2063_v55 = vadd.f32 %v9377_v35, %v1981_v18  ;;  %2116 = vperm.xlu0 %7511, %v2062_v33   ;;  %v2064_v30 = vadd.f32 %v9377_v35, %v1984_v28 }
 0x3f1   : > { %2121 = vperm.xlu1 %7510, %v2063_v55  }
 0x3f2   : > { %v1990_v51 = vpop.xlane.xlu1 %1989  ;;  %v1987_v21 = vpop.xlane.xlu0 %1986 }
 0x3f3   : > { %v2065_v43 = vadd.f32 %v9377_v35, %v1987_v21  ;;  %2126 = vperm.xlu0 %7511, %v2064_v30   ;;  %v2066_v31 = vadd.f32 %v9377_v35, %v1990_v51 }
 0x3f5   : > { %2131 = vperm.xlu1 %7510, %v2065_v43  }
 0x3f6   : > { %v1996_v8 = vpop.xlane.xlu1 %1995  ;;  %v1993_v0 = vpop.xlane.xlu0 %1992 }
 0x3f7   : > { %v2067_v60 = vadd.f32 %v9377_v35, %v1993_v0  ;;  %2136 = vperm.xlu0 %7511, %v2066_v31   ;;  %v2068_v25 = vadd.f32 %v9377_v35, %v1996_v8 }
 0x3f9   : > { %2141 = vperm.xlu1 %7510, %v2067_v60  }
 0x3fa   : > { %v2002_v33 = vpop.xlane.xlu1 %2001  ;;  %v1999_v18 = vpop.xlane.xlu0 %1998 }
 0x3fb   : > { %v2069_v28 = vadd.f32 %v9377_v35, %v1999_v18  ;;  %2146 = vperm.xlu0 %7511, %v2068_v25   ;;  %v2070_v55 = vadd.f32 %v9377_v35, %v2002_v33 }
 0x3fd   : > { %2151 = vperm.xlu1 %7510, %v2069_v28  }
 0x3fe   : > { %v2008_v30 = vpop.xlane.xlu1 %2007  ;;  %v2005_v21 = vpop.xlane.xlu0 %2004 }
 0x3ff   : > { %v2071_v51 = vadd.f32 %v9377_v35, %v2005_v21  ;;  %2156 = vperm.xlu0 %7511, %v2070_v55   ;;  %v2072_v43 = vadd.f32 %v9377_v35, %v2008_v30 }
 0x401   : > { %2161 = vperm.xlu1 %7510, %v2071_v51  }
 0x402   : > { %v2014_v31 = vpop.xlane.xlu1 %2013  ;;  %v2011_v0 = vpop.xlane.xlu0 %2010 }
 0x403   : > { %v2073_v8 = vadd.f32 %v9377_v35, %v2011_v0  ;;  %2166 = vperm.xlu0 %7511, %v2072_v43   ;;  %v2074_v60 = vadd.f32 %v9377_v35, %v2014_v31 }
 0x405   : > { %2171 = vperm.xlu1 %7510, %v2073_v8  }
 0x406   : > { %v2020_v25 = vpop.xlane.xlu1 %2019  ;;  %v2017_v18 = vpop.xlane.xlu0 %2016 }
 0x407   : > { %v2075_v33 = vadd.f32 %v9377_v35, %v2017_v18  ;;  %2176 = vperm.xlu0 %7511, %v2074_v60   ;;  %v2076_v28 = vadd.f32 %v9377_v35, %v2020_v25 }
 0x409   : > { %2181 = vperm.xlu1 %7510, %v2075_v33  }
 0x40a   : > { %v2026_v55 = vpop.xlane.xlu1 %2025  ;;  %v2023_v21 = vpop.xlane.xlu0 %2022 }
 0x40b   : > { %v2077_v30 = vadd.f32 %v9377_v35, %v2023_v21  ;;  %2186 = vperm.xlu0 %7511, %v2076_v28   ;;  %v2078_v51 = vadd.f32 %v9377_v35, %v2026_v55 }
 0x40d   : > { %2191 = vperm.xlu1 %7510, %v2077_v30  }
 0x40e   : > { %v2032_v43 = vpop.xlane.xlu1 %2031  ;;  %v2029_v0 = vpop.xlane.xlu0 %2028 }
 0x40f   : > { %v2079_v31 = vadd.f32 %v9377_v35, %v2029_v0  ;;  %2196 = vperm.xlu0 %7511, %v2078_v51   ;;  %v2080_v8 = vadd.f32 %v9377_v35, %v2032_v43 }
 0x411   : > { %2201 = vperm.xlu1 %7510, %v2079_v31  }
 0x412   : > { %v2038_v60 = vpop.xlane.xlu1 %2037  ;;  %v2035_v18 = vpop.xlane.xlu0 %2034 }
 0x413   : > { %v2081_v25 = vadd.f32 %v9377_v35, %v2035_v18  ;;  %2206 = vperm.xlu0 %7511, %v2080_v8   ;;  %v2082_v33 = vadd.f32 %v9377_v35, %v2038_v60 }
 0x415   : > { %2211 = vperm.xlu1 %7510, %v2081_v25  }
 0x416   : > { %v2044_v28 = vpop.xlane.xlu1 %2043  ;;  %v2041_v21 = vpop.xlane.xlu0 %2040 }
 0x417   : > { %v2083_v55 = vadd.f32 %v9377_v35, %v2041_v21  ;;  %2216 = vperm.xlu0 %7511, %v2082_v33   ;;  %v2084_v30 = vadd.f32 %v9377_v35, %v2044_v28 }
 0x419   : > { %2221 = vperm.xlu1 %7510, %v2083_v55  }
 0x41a   : > { %v2050_v51 = vpop.xlane.xlu1 %2049  ;;  %v2047_v0 = vpop.xlane.xlu0 %2046 }
 0x41b   : > { %v2085_v43 = vadd.f32 %v9377_v35, %v2047_v0  ;;  %2226 = vperm.xlu0 %7511, %v2084_v30   ;;  %v2086_v31 = vadd.f32 %v9377_v35, %v2050_v51  ;;  %v11546_v0 = vmov 1  }
 0x41d   : > { %2231 = vperm.xlu1 %7510, %v2085_v43   ;;  %v8097_v43 = vld [vmem:[%s8553_s17 + $0xe8] sm:$0xff] }
 0x41e   : > { %v2056_v8 = vpop.xlane.xlu1 %2055  ;;  %v2053_v60 = vpop.xlane.xlu0 %2052 }
 0x41f   : > { %v2087_v18 = vadd.f32 %v9377_v35, %v2053_v60  ;;  %2236 = vperm.xlu0 %7511, %v2086_v31   ;;  %v2088_v25 = vadd.f32 %v9377_v35, %v2056_v8  ;;  %v8098_v60 = vld [vmem:[%s8553_s17 + $0x10] sm:$0xff] }
 0x421   : > { %2241 = vperm.xlu1 %7510, %v2087_v18   ;;  %v4486_v18 = vld [vmem:[%s11374_s4 + $0x70] sm:$0xff] }
 0x422   : > { %v3085_v33 = vpop.xlane.xlu1 %3084  ;;  %v3088_v28 = vpop.xlane.xlu0 %3087 }
 0x423   : > { %v3180_v21 = vadd.f32 %v9377_v35, %v3088_v28  ;;  %2246 = vperm.xlu0 %7511, %v2088_v25   ;;  %v3179_v55 = vadd.f32 %v9377_v35, %v3085_v33  ;;  %v4487_v25 = vld [vmem:[%s11374_s4 + $0x78] sm:$0xff] }
 0x424   : > { %v9423_v33 = vld [vmem:[%s8553_s17 + $0xf8] sm:$0xff]  ;;  %v7402_v28 = vpack.c.bf16 %v4487_v25, %v4486_v18 }
 0x425   : > { %3218 = vperm.xlu1 %7510, %v3180_v21   ;;  %v11547_v21 = vmov 0  }
 0x426   : > { %v3094_v30 = vpop.xlane.xlu1 %3093  ;;  %v3091_v51 = vpop.xlane.xlu0 %3090  ;;  %7403 = vmatprep.subr.bf16.mxu1 %v7402_v28 }
 0x427   : > { %3213 = vperm.xlu0 %7511, %v3179_v55   ;;  %7405 = vmatpush3.bf16.msra.mxu1 %v7402_v28  ;;  %v3182_v25 = vadd.f32 %v9377_v35, %v3094_v30 }
 0x429   : > { %7512 = vset.pattern.permute.xlu1 %v11546_v0 }
 0x42a   : > { %4339 = vperm.xlu1 %7512, %v8097_v43   ;;  %v3100_v31 = vpop.xlane.xlu1 %3099  ;;  %v3097_v8 = vpop.xlane.xlu0 %3096 }
 0x42b   : > { %4006 = vperm.xlu0 %7511, %v8098_v60   ;;  %v4488_v60 = vld [vmem:[%s11374_s4 + $0x80] sm:$0xff] }
 0x42c   : > { %v7406_v18 = vpack.c.bf16 %v4489_v57, %v4488_v60  ;;  %v3181_v57 = vadd.f32 %v9377_v35, %v3091_v51 }
 0x42e   : > { %7513 = vset.pattern.permute.xlu1 %v11547_v21  ;;  %v3106_v55 = vpop.xlane.xlu1 %3105  ;;  %v3103_v43 = vpop.xlane.xlu0 %3102  ;;  %7407 = vmatprep.subr.bf16.mxu1 %v7406_v18 }
 0x42f   : > { %4016 = vperm.xlu0 %7511, %v8099_v14   ;;  %4151 = vperm.xlu1 %7513, %v9423_v33   ;;  %v4490_v14 = vld [vmem:[%s11374_s4 + $0x90] sm:$0xff] }
 0x430   : > { %7409 = vmatpush3.bf16.msra.mxu1 %v7406_v18  ;;  %v7410_v28 = vpack.c.bf16 %v4491_v16, %v4490_v14  ;;  %v3184_v18 = vadd.f32 %v9377_v35, %v3100_v31 }
 0x432   : > { %v3112_v56 = vpop.xlane.xlu1 %3111  ;;  %v3109_v40 = vpop.xlane.xlu0 %3108  ;;  %7411 = vmatprep.subr.bf16.mxu1 %v7410_v28 }
 0x433   : > { %4026 = vperm.xlu0 %7511, %v8100_v13   ;;  %3228 = vperm.xlu1 %7513, %v3182_v25   ;;  %v4492_v13 = vld [vmem:[%s11374_s4 + $0xa0] sm:$0xff]  ;;  %v4493_v25 = vld [vmem:[%s11374_s4 + $0xa8] sm:$0xff] }
 0x434   : > { %7413 = vmatpush3.bf16.msra.mxu1 %v7410_v28  ;;  %v7414_v16 = vpack.c.bf16 %v4493_v25, %v4492_v13  ;;  %v3186_v28 = vadd.f32 %v9377_v35, %v3106_v55  ;;  %v8104_v25 = vld [vmem:[%s8553_s17 + $0x70] sm:$0xff] }
 0x436   : > { %v3118_v30 = vpop.xlane.xlu1 %3117  ;;  %v3115_v60 = vpop.xlane.xlu0 %3114  ;;  %7415 = vmatprep.subr.bf16.mxu1 %v7414_v16 }
 0x437   : > { %4036 = vperm.xlu0 %7511, %v8101_v54   ;;  %3223 = vperm.xlu1 %7513, %v3181_v57   ;;  %v3183_v54 = vadd.f32 %v9377_v35, %v3097_v8 }
 0x438   : > { %7417 = vmatpush3.bf16.msra.mxu1 %v7414_v16 }
 0x43a   : > { %v3124_v51 = vpop.xlane.xlu1 %3123  ;;  %v3121_v14 = vpop.xlane.xlu0 %3120 }
 0x43b   : > { %4046 = vperm.xlu0 %7511, %v8102_v27   ;;  %3238 = vperm.xlu1 %7513, %v3184_v18   ;;  %v3185_v27 = vadd.f32 %v9377_v35, %v3103_v43  ;;  %v8105_v18 = vld [vmem:[%s8553_s17 + $0x80] sm:$0xff]  ;;  %v3187_v43 = vadd.f32 %v9377_v35, %v3109_v40 }
 0x43e   : > { %v3130_v57 = vpop.xlane.xlu1 %3129  ;;  %v3127_v61 = vpop.xlane.xlu0 %3126 }
 0x43f   : > { %4056 = vperm.xlu0 %7511, %v8103_v63   ;;  %3233 = vperm.xlu1 %7513, %v3183_v54   ;;  %v3188_v63 = vadd.f32 %v9377_v35, %v3112_v56  ;;  %v3190_v56 = vadd.f32 %v9377_v35, %v3118_v30  ;;  %v3192_v30 = vadd.f32 %v9377_v35, %v3124_v51 }
 0x440   : > { %v3194_v51 = vadd.f32 %v9377_v35, %v3130_v57 }
 0x442   : > { %v9455_v31 = vpop.xlane.xlu1 %3135  ;;  %v9457_v13 = vpop.xlane.xlu0 %3132 }
 0x443   : > { %4066 = vperm.xlu0 %7511, %v8104_v25   ;;  %3248 = vperm.xlu1 %7513, %v3186_v28  }
 0x446   : > { %v9461_v16 = vpop.xlane.xlu1 %3141  ;;  %v9463_v8 = vpop.xlane.xlu0 %3138 }
 0x447   : > { %4076 = vperm.xlu0 %7511, %v8105_v18   ;;  %3243 = vperm.xlu1 %7513, %v3185_v27  }
 0x44a   : > { %v9467_v55 = vpop.xlane.xlu1 %3147  ;;  %v9469_v54 = vpop.xlane.xlu0 %3144 }
 0x44b   : > { %4086 = vperm.xlu0 %7511, %v8106_v38   ;;  %3258 = vperm.xlu1 %7513, %v3188_v63   ;;  %v3189_v38 = vadd.f32 %v9377_v35, %v3115_v60 }
 0x44e   : > { %v9473_v28 = vpop.xlane.xlu1 %3153  ;;  %v9475_v25 = vpop.xlane.xlu0 %3150 }
 0x44f   : > { %4096 = vperm.xlu0 %7511, %v8107_v9   ;;  %3253 = vperm.xlu1 %7513, %v3187_v43   ;;  %v8109_v9 = vld [vmem:[%s8553_s17 + $0xc0] sm:$0xff] }
 0x452   : > { %v9479_v27 = vpop.xlane.xlu1 %3159  ;;  %v9481_v18 = vpop.xlane.xlu0 %3156 }
 0x453   : > { %4106 = vperm.xlu0 %7511, %v8108_v20   ;;  %3268 = vperm.xlu1 %7513, %v3190_v56   ;;  %v3191_v20 = vadd.f32 %v9377_v35, %v3121_v14  ;;  %v8111_v56 = vld [vmem:[%s8553_s17 + $0xe0] sm:$0xff] }
 0x456   : > { %v9485_v40 = vpop.xlane.xlu1 %3165  ;;  %v9487_v63 = vpop.xlane.xlu0 %3162 }
 0x457   : > { %4116 = vperm.xlu0 %7511, %v8109_v9   ;;  %3263 = vperm.xlu1 %7513, %v3189_v38   ;;  %v9503_v9 = vld [vmem:[%s8553_s17 + $0xf0] sm:$0xff] }
 0x45a   : > { %v9491_v43 = vpop.xlane.xlu1 %3171  ;;  %v9493_v42 = vpop.xlane.xlu0 %3168 }
 0x45b   : > { %4126 = vperm.xlu0 %7511, %v8110_v26   ;;  %3278 = vperm.xlu1 %7513, %v3192_v30   ;;  %v9512_v26 = vld [vmem:[%s11374_s4 + $0x38] ss:$0 sm:$0xff]  ;;  %v3193_v30 = vadd.f32 %v9377_v35, %v3127_v61  ;;  %v3196_v61 = vadd.f32 %v9377_v35, %v9455_v31 }
 0x45e   : > { %v9497_v60 = vpop.xlane.xlu1 %3177  ;;  %v9500_v10 = vpop.xlane.xlu0 %3174 }
 0x45f   : > { %4136 = vperm.xlu0 %7511, %v8111_v56   ;;  %3273 = vperm.xlu1 %7513, %v3191_v20   ;;  %v9525_v56 = vld [vmem:[%s11374_s4 + $0x40] ss:$0 sm:$0xff] }
 0x463   : > { %v9506_v38 = vpop.permute.xlu1 %2096  ;;  %4146 = vperm.xlu0 %7511, %v9503_v9   ;;  %3288 = vperm.xlu1 %7513, %v3194_v51  }
 0x464   : > { %11548 = vst [vmem:[#allocation62_spill] sm:$0xff] %v9506_v38  ;;  %v2250_v14 = vmul.f32 %v9512_v26, %v9506_v38 }
 0x466   : > { %v9517_v20 = vpop.permute.xlu0 %2091  ;;  %v2282_v51 = vadd.f32 %v9525_v56, %v2250_v14 }
 0x467   : > { %v2249_v57 = vmul.f32 %v9512_v26, %v9517_v20  ;;  %3283 = vperm.xlu1 %7513, %v3193_v30   ;;  %7515 = vset.pattern.permute.xlu0 %v11546_v0 }
 0x468   : > { %v9528_v7 = vpop.permute.xlu1 %2101  ;;  %4347 = vperm.xlu0 %7515, %v9423_v33   ;;  %v3195_v33 = vadd.f32 %v9377_v35, %v9457_v13  ;;  %v3198_v13 = vadd.f32 %v9377_v35, %v9461_v16  ;;  %v3197_v16 = vadd.f32 %v9377_v35, %v9463_v8 }
 0x469   : > { %v2281_v39 = vadd.f32 %v9525_v56, %v2249_v57  ;;  %v2251_v30 = vmul.f32 %v9512_v26, %v9528_v7 }
 0x46a   : > { %v9536_v12 = vpop.permute.xlu0 %2106 }
 0x46b   : > { %7774 = vtanh.f32 %v2281_v39  ;;  %v2283_v5 = vadd.f32 %v9525_v56, %v2251_v30  ;;  %v2252_v14 = vmul.f32 %v9512_v26, %v9536_v12  ;;  %3298 = vperm.xlu1 %7513, %v3196_v61  }
 0x46c   : > { %7776 = vtanh.f32 %v2282_v51  ;;  %v9541_v49 = vpop.permute.xlu1 %2111  ;;  %7517 = vset.pattern.permute.xlu0 %v11547_v21 }
 0x46d   : > { %7778 = vtanh.f32 %v2283_v5  ;;  %v2284_v31 = vadd.f32 %v9525_v56, %v2252_v14  ;;  %v2253_v39 = vmul.f32 %v9512_v26, %v9541_v49 }
 0x46e   : > { %v9549_v57 = vpop.permute.xlu0 %2116 }
 0x46f   : > { %7780 = vtanh.f32 %v2284_v31  ;;  %v2285_v30 = vadd.f32 %v9525_v56, %v2253_v39  ;;  %v2254_v51 = vmul.f32 %v9512_v26, %v9549_v57  ;;  %3293 = vperm.xlu1 %7513, %v3195_v33  }
 0x470   : > { %v9554_v61 = vpop.permute.xlu1 %2121 }
 0x471   : > { %7782 = vtanh.f32 %v2285_v30  ;;  %v2286_v5 = vadd.f32 %v9525_v56, %v2254_v51  ;;  %v2255_v14 = vmul.f32 %v9512_v26, %v9554_v61 }
 0x472   : > { %v9561_v19 = vpop.permute.xlu0 %2126 }
 0x473   : > { %11549 = vst [vmem:[#allocation63_spill] sm:$0xff] %v9561_v19  ;;  %7784 = vtanh.f32 %v2286_v5  ;;  %v2287_v31 = vadd.f32 %v9525_v56, %v2255_v14  ;;  %v2256_v39 = vmul.f32 %v9512_v26, %v9561_v19  ;;  %3308 = vperm.xlu1 %7513, %v3198_v13  }
 0x474   : > { %v9566_v33 = vpop.permute.xlu1 %2131 }
 0x475   : > { %v7775_v2 = vpop.eup %7774  ;;  %7786 = vtanh.f32 %v2287_v31  ;;  %v2288_v30 = vadd.f32 %v9525_v56, %v2256_v39  ;;  %v2257_v51 = vmul.f32 %v9512_v26, %v9566_v33  ;;  %v3200_v31 = vadd.f32 %v9377_v35, %v9467_v55 }
 0x476   : > { %v7777_v6 = vpop.eup %7776  ;;  %7070 = vmatprep.mubr.msk.f32.mxu0 %vm818_vm4, %v7775_v2  ;;  %v9574_v5 = vpop.permute.xlu0 %2136  ;;  %v3199_v55 = vadd.f32 %v9377_v35, %v9469_v54 }
 0x477   : > { %v7779_v14 = vpop.eup %7778  ;;  %7788 = vtanh.f32 %v2288_v30  ;;  %v2289_v13 = vadd.f32 %v9525_v56, %v2257_v51  ;;  %v2258_v62 = vmul.f32 %v9512_v26, %v9574_v5  ;;  %3303 = vperm.xlu1 %7513, %v3197_v16   ;;  %7071 = vmatmul.mubr.msk.f32.vlgmr.msra.gmra.mrb[32].mxu0 %vm818_vm4, %v7777_v6 }
 0x478   : > { %v9580_v8 = vpop.permute.xlu1 %2141  ;;  %7073 = vmatprep.mubr.msk.f32.mxu0 %vm818_vm4, %v7779_v14  ;;  %7401 = vmatpush3.bf16.msk.msra.mxu0 %vm8504_vm6, %v8500_v41 }
 0x479   : > { %11550 = vst [vmem:[#allocation64_spill] sm:$0xff] %v9580_v8  ;;  %v7781_v2 = vpop.eup %7780  ;;  %7790 = vtanh.f32 %v2289_v13  ;;  %v2290_v39 = vadd.f32 %v9525_v56, %v2258_v62  ;;  %v2259_v16 = vmul.f32 %v9512_v26, %v9580_v8 }
 0x47a   : > { %v9591_v30 = vpop.permute.xlu0 %2146 }
 0x47b   : > { %11551 = vst [vmem:[#allocation65_spill] sm:$0xff] %v9591_v30  ;;  %v7783_v6 = vpop.eup %7782  ;;  %7792 = vtanh.f32 %v2290_v39  ;;  %v2291_v51 = vadd.f32 %v9525_v56, %v2259_v16  ;;  %v2260_v44 = vmul.f32 %v9512_v26, %v9591_v30  ;;  %3318 = vperm.xlu1 %7513, %v3200_v31   ;;  %7074 = vmatmul.mubr.msk.f32.gmra.mrb[34].mxu0 %vm818_vm4, %v7781_v2 }
 0x47c   : > { %v9597_v41 = vpop.permute.xlu1 %2151  ;;  %7076 = vmatprep.mubr.msk.f32.mxu0 %vm818_vm4, %v7783_v6 }
 0x47d   : > { %11552 = vst [vmem:[#allocation66_spill] sm:$0xff] %v9597_v41  ;;  %v7785_v62 = vpop.eup %7784  ;;  %7794 = vtanh.f32 %v2291_v51  ;;  %v2292_v14 = vadd.f32 %v9525_v56, %v2260_v44  ;;  %v2261_v13 = vmul.f32 %v9512_v26, %v9597_v41  ;;  %v3202_v51 = vadd.f32 %v9377_v35, %v9473_v28 }
 0x47e   : > { %v9605_v39 = vpop.permute.xlu0 %2156 }
 0x47f   : > { %11553 = vst [vmem:[#allocation67_spill] sm:$0xff] %v9605_v39  ;;  %v7787_v16 = vpop.eup %7786  ;;  %7796 = vtanh.f32 %v2292_v14  ;;  %v2293_v2 = vadd.f32 %v9525_v56, %v2261_v13  ;;  %v2262_v31 = vmul.f32 %v9512_v26, %v9605_v39  ;;  %3313 = vperm.xlu1 %7513, %v3199_v55   ;;  %7077 = vmatmul.mubr.msk.f32.gmra.mrb[36].mxu0 %vm818_vm4, %v7785_v62 }
 0x480   : > { %v9611_v6 = vpop.permute.xlu1 %2161  ;;  %7079 = vmatprep.mubr.msk.f32.mxu0 %vm818_vm4, %v7787_v16 }
 0x481   : > { %11554 = vst [vmem:[#allocation68_spill] sm:$0xff] %v9611_v6  ;;  %v7789_v54 = vpop.eup %7788  ;;  %7798 = vtanh.f32 %v2293_v2  ;;  %v2294_v44 = vadd.f32 %v9525_v56, %v2262_v31  ;;  %v2263_v14 = vmul.f32 %v9512_v26, %v9611_v6  ;;  %v3201_v2 = vadd.f32 %v9377_v35, %v9475_v25 }
 0x482   : > { %v9619_v13 = vpop.permute.xlu0 %2166 }
 0x483   : > { %11555 = vst [vmem:[#allocation69_spill] sm:$0xff] %v9619_v13  ;;  %v7791_v41 = vpop.eup %7790  ;;  %7800 = vtanh.f32 %v2294_v44  ;;  %v2295_v62 = vadd.f32 %v9525_v56, %v2263_v14  ;;  %v2264_v55 = vmul.f32 %v9512_v26, %v9619_v13  ;;  %3328 = vperm.xlu1 %7513, %v3202_v51   ;;  %7080 = vmatmul.mubr.msk.f32.gmra.mrb[38].mxu0 %vm818_vm4, %v7789_v54 }
 0x484   : > { %v9625_v16 = vpop.permute.xlu1 %2171  ;;  %7082 = vmatprep.mubr.msk.f32.mxu0 %vm818_vm4, %v7791_v41 }
 0x485   : > { %11556 = vst [vmem:[#allocation70_spill] sm:$0xff] %v9625_v16  ;;  %v7793_v28 = vpop.eup %7792  ;;  %7802 = vtanh.f32 %v2295_v62  ;;  %v2296_v31 = vadd.f32 %v9525_v56, %v2264_v55  ;;  %v2265_v44 = vmul.f32 %v9512_v26, %v9625_v16  ;;  %v3204_v62 = vadd.f32 %v9377_v35, %v9479_v27 }
 0x486   : > { %v9633_v14 = vpop.permute.xlu0 %2176 }
 0x487   : > { %11557 = vst [vmem:[#allocation71_spill] sm:$0xff] %v9633_v14  ;;  %v7795_v6 = vpop.eup %7794  ;;  %7804 = vtanh.f32 %v2296_v31  ;;  %v2297_v54 = vadd.f32 %v9525_v56, %v2265_v44  ;;  %v2266_v51 = vmul.f32 %v9512_v26, %v9633_v14  ;;  %3323 = vperm.xlu1 %7513, %v3201_v2   ;;  %7083 = vmatmul.mubr.msk.f32.gmra.mrb[40].mxu0 %vm818_vm4, %v7793_v28 }
 0x488   : > { %v9639_v41 = vpop.permute.xlu1 %2181  ;;  %7085 = vmatprep.mubr.msk.f32.mxu0 %vm818_vm4, %v7795_v6 }
 0x489   : > { %11558 = vst [vmem:[#allocation72_spill] sm:$0xff] %v9639_v41  ;;  %v7797_v25 = vpop.eup %7796  ;;  %7806 = vtanh.f32 %v2297_v54  ;;  %v2298_v55 = vadd.f32 %v9525_v56, %v2266_v51  ;;  %v2267_v31 = vmul.f32 %v9512_v26, %v9639_v41  ;;  %v3203_v54 = vadd.f32 %v9377_v35, %v9481_v18 }
 0x48a   : > { %v9647_v44 = vpop.permute.xlu0 %2186 }
 0x48b   : > { %11559 = vst [vmem:[#allocation73_spill] sm:$0xff] %v9647_v44  ;;  %v7799_v16 = vpop.eup %7798  ;;  %7808 = vtanh.f32 %v2298_v55  ;;  %v2299_v28 = vadd.f32 %v9525_v56, %v2267_v31  ;;  %v2268_v2 = vmul.f32 %v9512_v26, %v9647_v44  ;;  %3338 = vperm.xlu1 %7513, %v3204_v62   ;;  %7086 = vmatmul.mubr.msk.f32.gmra.mrb[42].mxu0 %vm818_vm4, %v7797_v25 }
 0x48c   : > { %v9653_v6 = vpop.permute.xlu1 %2191  ;;  %7088 = vmatprep.mubr.msk.f32.mxu0 %vm818_vm4, %v7799_v16 }
 0x48d   : > { %11560 = vst [vmem:[#allocation74_spill] sm:$0xff] %v9653_v6  ;;  %v7801_v27 = vpop.eup %7800  ;;  %7810 = vtanh.f32 %v2299_v28  ;;  %v2300_v51 = vadd.f32 %v9525_v56, %v2268_v2  ;;  %v2269_v55 = vmul.f32 %v9512_v26, %v9653_v6  ;;  %v3206_v28 = vadd.f32 %v9377_v35, %v9485_v40 }
 0x48e   : > { %v9661_v31 = vpop.permute.xlu0 %2196 }
 0x48f   : > { %11561 = vst [vmem:[#allocation75_spill] sm:$0xff] %v9661_v31  ;;  %v7803_v41 = vpop.eup %7802  ;;  %7812 = vtanh.f32 %v2300_v51  ;;  %v2301_v25 = vadd.f32 %v9525_v56, %v2269_v55  ;;  %v2270_v62 = vmul.f32 %v9512_v26, %v9661_v31  ;;  %3333 = vperm.xlu1 %7513, %v3203_v54   ;;  %7089 = vmatmul.mubr.msk.f32.gmra.mrb[44].mxu0 %vm818_vm4, %v7801_v27 }
 0x490   : > { %v9667_v16 = vpop.permute.xlu1 %2201  ;;  %7091 = vmatprep.mubr.msk.f32.mxu0 %vm818_vm4, %v7803_v41 }
 0x491   : > { %11562 = vst [vmem:[#allocation76_spill] sm:$0xff] %v9667_v16  ;;  %v7805_v18 = vpop.eup %7804  ;;  %7814 = vtanh.f32 %v2301_v25  ;;  %v2302_v2 = vadd.f32 %v9525_v56, %v2270_v62  ;;  %v2271_v51 = vmul.f32 %v9512_v26, %v9667_v16  ;;  %v3205_v62 = vadd.f32 %v9377_v35, %v9487_v63 }
 0x492   : > { %v9675_v6 = vpop.permute.xlu0 %2206 }
 0x493   : > { %11563 = vst [vmem:[#allocation77_spill] sm:$0xff] %v9675_v6  ;;  %v7807_v54 = vpop.eup %7806  ;;  %7816 = vtanh.f32 %v2302_v2  ;;  %v2303_v27 = vadd.f32 %v9525_v56, %v2271_v51  ;;  %v2272_v41 = vmul.f32 %v9512_v26, %v9675_v6  ;;  %3348 = vperm.xlu1 %7513, %v3206_v28   ;;  %7092 = vmatmul.mubr.msk.f32.gmra.mrb[46].mxu0 %vm818_vm4, %v7805_v18  ;;  %v11565_v51 = vlaneseq }
 0x494   : > { %v9681_v40 = vpop.permute.xlu1 %2211  ;;  %7094 = vmatprep.mubr.msk.f32.mxu0 %vm818_vm4, %v7807_v54 }
 0x495   : > { %11564 = vst [vmem:[#allocation78_spill] sm:$0xff] %v9681_v40  ;;  %v7809_v25 = vpop.eup %7808  ;;  %7818 = vtanh.f32 %v2303_v27  ;;  %v2304_v55 = vadd.f32 %v9525_v56, %v2272_v41  ;;  %v2273_v2 = vmul.f32 %v9512_v26, %v9681_v40  ;;  %v9690_v16 = vshrl.u32 %v11565_v51, 7 }
 0x496   : > { %v9692_v28 = vpop.permute.xlu0 %2216  ;;  %v3208_v51 = vadd.f32 %v9377_v35, %v9491_v43 }
 0x497   : > { %11566 = vst [vmem:[#allocation79_spill] sm:$0xff] %v9692_v28  ;;  %v7811_v18 = vpop.eup %7810  ;;  %7820 = vtanh.f32 %v2304_v55  ;;  %v2305_v6 = vadd.f32 %v9525_v56, %v2273_v2  ;;  %v2274_v54 = vmul.f32 %v9512_v26, %v9692_v28  ;;  %3343 = vperm.xlu1 %7513, %v3205_v62   ;;  %7095 = vmatmul.mubr.msk.f32.gmra.mrb[48].mxu0 %vm818_vm4, %v7809_v25  ;;  %v3860_v63 = vsub.s32 1, %v9690_v16  ;;  %v3788_v28 = vld [vmem:[%s11374_s4 + $0x60] sm:$0x1f] }
 0x498   : > { %v9699_v27 = vpop.permute.xlu1 %2221  ;;  %7097 = vmatprep.mubr.msk.f32.mxu0 %vm818_vm4, %v7811_v18  ;;  %v3824_v62 = vsub.s32 0, %v9690_v16  ;;  %v4156_v44 = vsub.s32 3, %v9690_v16 }
 0x499   : > { %11567 = vst [vmem:[#allocation80_spill] sm:$0xff] %v9699_v27  ;;  %v7813_v41 = vpop.eup %7812  ;;  %7822 = vtanh.f32 %v2305_v6  ;;  %v2306_v55 = vadd.f32 %v9525_v56, %v2274_v54  ;;  %v2275_v2 = vmul.f32 %v9512_v26, %v9699_v27  ;;  %v9717_v6 = vrot.slane %v3788_v28, %v3860_v63 }
 0x49a   : > { %v9708_v40 = vpop.permute.xlu0 %2226  ;;  %v3928_v27 = vsub.s32 2, %v9690_v16 }
 0x49b   : > { %11568 = vst [vmem:[#allocation81_spill] sm:$0xff] %v9708_v40  ;;  %v7815_v25 = vpop.eup %7814  ;;  %7824 = vtanh.f32 %v2306_v55  ;;  %v2307_v18 = vadd.f32 %v9525_v56, %v2275_v2  ;;  %v2276_v43 = vmul.f32 %v9512_v26, %v9708_v40  ;;  %3358 = vperm.xlu1 %7513, %v3208_v51   ;;  %7098 = vmatmul.mubr.msk.f32.gmra.mrb[50].mxu0 %vm818_vm4, %v7813_v41 }
 0x49c   : > { %v9719_v54 = vpop.permute.xlu1 %2231  ;;  %7100 = vmatprep.mubr.msk.f32.mxu0 %vm818_vm4, %v7815_v25  ;;  %v3207_v55 = vadd.f32 %v9377_v35, %v9493_v42  ;;  %v9728_v40 = vrot.slane %v3788_v28, %v3824_v62  ;;  %v4352_v42 = vsub.s32 4, %v9690_v16  ;;  %v3863_v62 = vmul.f32 %v9717_v6, %v9506_v38 }
 0x49d   : > { %11569 = vst [vmem:[#allocation82_spill] sm:$0xff] %v9719_v54  ;;  %v7817_v31 = vpop.eup %7816  ;;  %7826 = vtanh.f32 %v2307_v18  ;;  %v2308_v2 = vadd.f32 %v9525_v56, %v2276_v43  ;;  %v2277_v51 = vmul.f32 %v9512_v26, %v9719_v54  ;;  %v9743_v43 = vrot.slane %v3788_v28, %v3928_v27 }
 0x49e   : > { %v9730_v63 = vpop.permute.xlu0 %2236  ;;  %v3827_v16 = vmul.f32 %v9728_v40, %v8561_v34  ;;  %v3862_v34 = vmul.f32 %v9717_v6, %v9517_v20 }
 0x49f   : > { %11570 = vst [vmem:[#allocation83_spill] sm:$0xff] %v9730_v63  ;;  %v7819_v41 = vpop.eup %7818  ;;  %7828 = vtanh.f32 %v2308_v2  ;;  %v2309_v25 = vadd.f32 %v9525_v56, %v2277_v51  ;;  %v2278_v14 = vmul.f32 %v9512_v26, %v9730_v63  ;;  %3353 = vperm.xlu1 %7513, %v3207_v55   ;;  %7101 = vmatmul.mubr.msk.f32.gmra.mrb[52].mxu0 %vm818_vm4, %v7817_v31 }
 0x4a0   : > { %v9740_v18 = vpop.permute.xlu1 %2241  ;;  %7103 = vmatprep.mubr.msk.f32.mxu0 %vm818_vm4, %v7819_v41  ;;  %v3210_v51 = vadd.f32 %v9377_v35, %v9497_v60  ;;  %v9754_v63 = vrot.slane %v3788_v28, %v4156_v44  ;;  %v3209_v41 = vadd.f32 %v9377_v35, %v9500_v10  ;;  %v3826_v10 = vmul.f32 %v9728_v40, %v8572_v37 }
 0x4a1   : > { %v7821_v2 = vpop.eup %7820  ;;  %7830 = vtanh.f32 %v2309_v25  ;;  %v2310_v55 = vadd.f32 %v9525_v56, %v2278_v14  ;;  %v2279_v31 = vmul.f32 %v9512_v26, %v9740_v18  ;;  %v9760_v14 = vrot.slane %v3788_v28, %v4352_v42 }
 0x4a2   : > { %v9752_v38 = vpop.permute.xlu0 %2246  ;;  %v3895_v25 = vadd.f32 %v3863_v62, %v3827_v16  ;;  %v4159_v62 = vmul.f32 %v9754_v63, %v9370_v32  ;;  %v3894_v16 = vadd.f32 %v3862_v34, %v3826_v10 }
 0x4a3   : > { %11571 = vst [vmem:[#allocation84_spill] sm:$0xff] %v9752_v38  ;;  %v7823_v54 = vpop.eup %7822  ;;  %7832 = vtanh.f32 %v2310_v55  ;;  %v2311_v27 = vadd.f32 %v9525_v56, %v2279_v31  ;;  %v2280_v60 = vmul.f32 %v9512_v26, %v9752_v38  ;;  %3368 = vperm.xlu1 %7513, %v3210_v51   ;;  %7104 = vmatmul.mubr.msk.f32.gmra.mrb[54].mxu0 %vm818_vm4, %v7821_v2 }
 0x4a4   : > { %v9766_v44 = vpop.permute.xlu1 %3218  ;;  %7106 = vmatprep.mubr.msk.f32.mxu0 %vm818_vm4, %v7823_v54  ;;  %v4355_v32 = vmul.f32 %v9760_v14, %v9072_v24  ;;  %v4354_v10 = vmul.f32 %v9760_v14, %v9205_v47  ;;  %v9801_v24 = vld [vmem:[%s11374_s4 + $0x68] ss:$0 sm:$0xff] }
 0x4a5   : > { %v7825_v55 = vpop.eup %7824  ;;  %7834 = vtanh.f32 %v2311_v27  ;;  %v2312_v31 = vadd.f32 %v9525_v56, %v2280_v60  ;;  %v3372_v2 = vmul.f32 %v9512_v26, %v9766_v44  ;;  %v3931_v28 = vmul.f32 %v9743_v43, %v9766_v44 }
 0x4a6   : > { %v9776_v35 = vpop.permute.xlu0 %3213 }
 0x4a7   : > { %v7827_v42 = vpop.eup %7826  ;;  %7836 = vtanh.f32 %v2312_v31  ;;  %v3963_v54 = vadd.f32 %v3931_v28, %v3895_v25  ;;  %v3371_v51 = vmul.f32 %v9512_v26, %v9776_v35  ;;  %3363 = vperm.xlu1 %7513, %v3209_v41   ;;  %7107 = vmatmul.mubr.msk.f32.gmra.mrb[56].mxu0 %vm818_vm4, %v7825_v55  ;;  %v3404_v27 = vadd.f32 %v9525_v56, %v3372_v2 }
 0x4a8   : > { %v3930_v60 = vmul.f32 %v9743_v43, %v9776_v35  ;;  %7109 = vmatprep.mubr.msk.f32.mxu0 %vm818_vm4, %v7827_v42  ;;  %v4158_v41 = vmul.f32 %v9754_v63, %v9064_v15 }
 0x4a9   : > { %v7829_v37 = vpop.eup %7828  ;;  %v4191_v31 = vadd.f32 %v4159_v62, %v3963_v54  ;;  %v3403_v25 = vadd.f32 %v9525_v56, %v3371_v51  ;;  %v9790_v28 = vpop.permute.xlu1 %4339 }
 0x4aa   : > { %v3962_v34 = vadd.f32 %v3930_v60, %v3894_v16  ;;  %v3829_v16 = vmul.f32 %v9728_v40, %v8570_v36  ;;  %v3864_v60 = vmul.f32 %v9717_v6, %v9528_v7 }
 0x4ab   : > { %v7831_v55 = vpop.eup %7830  ;;  %v4387_v2 = vadd.f32 %v4355_v32, %v4191_v31  ;;  %7838 = vtanh.f32 %v3403_v25  ;;  %7514 = vset.pattern.permute.xlu1 %v11546_v0  ;;  %7110 = vmatmul.mubr.msk.f32.gmra.mrb[58].mxu0 %vm818_vm4, %v7829_v37  ;;  %v3865_v37 = vmul.f32 %v9717_v6, %v9536_v12 }
 0x4ac   : > { %7840 = vtanh.f32 %v3404_v27  ;;  %v4190_v42 = vadd.f32 %v4158_v41, %v3962_v34  ;;  %4343 = vperm.xlu1 %7514, %v9503_v9   ;;  %7112 = vmatprep.mubr.msk.f32.mxu0 %vm818_vm4, %v7831_v55  ;;  %v3828_v41 = vmul.f32 %v9728_v40, %v8580_v46  ;;  %v4161_v34 = vmul.f32 %v9754_v63, %v9082_v48 }
 0x4ad   : > { %v7833_v15 = vpop.eup %7832  ;;  %v4423_v47 = vadd.f32 %v9801_v24, %v4387_v2  ;;  %v3897_v32 = vadd.f32 %v3865_v37, %v3829_v16  ;;  %v4357_v48 = vmul.f32 %v9760_v14, %v9095_v4  ;;  %v3830_v4 = vmul.f32 %v9728_v40, %v8590_v53 }
 0x4ae   : > { %v4386_v62 = vadd.f32 %v4354_v10, %v4190_v42  ;;  %v9805_v54 = vpop.permute.xlu1 %4151  ;;  %v4007_v10 = vpop.permute.xlu0 %4006 }
 0x4af   : > { %v7835_v0 = vpop.eup %7834  ;;  %7113 = vmatmul.mubr.msk.f32.gmra.mrb[60].mxu0 %vm818_vm4, %v7833_v15  ;;  %v3896_v15 = vadd.f32 %v3864_v60, %v3828_v41 }
 0x4b0   : > { %v4422_v51 = vadd.f32 %v9801_v24, %v4386_v62  ;;  %7115 = vmatprep.mubr.msk.f32.mxu0 %vm818_vm4, %v7835_v0  ;;  %7516 = vset.pattern.permute.xlu1 %v11547_v21 }
 0x4b1   : > { %v7837_v9 = vpop.eup %7836 }
 0x4b2   : > { %7842 = vtanh.f32 %v4422_v51  ;;  %v9816_v27 = vpop.permute.xlu1 %3228 }
 0x4b3   : > { %7844 = vtanh.f32 %v4423_v47  ;;  %v3933_v31 = vmul.f32 %v9743_v43, %v9816_v27  ;;  %7116 = vmatmul.mubr.msk.f32.gmra.mrb[62].mxu0 %vm818_vm4, %v7837_v9  ;;  %v3374_v21 = vmul.f32 %v9512_v26, %v9816_v27  ;;  %v3867_v47 = vmul.f32 %v9717_v6, %v9549_v57 }
 0x4b4   : > { %v4160_v9 = vmul.f32 %v9754_v63, %v4007_v10 }
 0x4b5   : > { %v7839_v25 = vpop.eup %7838  ;;  %v3965_v55 = vadd.f32 %v3933_v31, %v3897_v32  ;;  %v3406_v51 = vadd.f32 %v9525_v56, %v3374_v21  ;;  %v3831_v32 = vmul.f32 %v9728_v40, %v8586_v50  ;;  %v3866_v31 = vmul.f32 %v9717_v6, %v9541_v49 }
 0x4b6   : > { %v7841_v2 = vpop.eup %7840  ;;  %v9829_v42 = vpop.permute.xlu1 %3223  ;;  %7178 = vmatprep.mubr.msk.f32.mxu0 %vm818_vm4, %v7839_v25  ;;  %v4356_v21 = vmul.f32 %v9760_v14, %v9218_v17 }
 0x4b7   : > { %v4193_v62 = vadd.f32 %v4161_v34, %v3965_v55  ;;  %v3373_v0 = vmul.f32 %v9512_v26, %v9829_v42  ;;  %v3932_v37 = vmul.f32 %v9743_v43, %v9829_v42  ;;  %7179 = vmatmul.mubr.msk.f32.vlgmr.msra.gmra.mrb[64].mxu0 %vm818_vm4, %v7841_v2  ;;  %v3899_v2 = vadd.f32 %v3867_v47, %v3831_v32  ;;  %v4017_v17 = vpop.permute.xlu0 %4016 }
 0x4b9   : > { %v3405_v16 = vadd.f32 %v9525_v56, %v3373_v0  ;;  %v3964_v60 = vadd.f32 %v3932_v37, %v3896_v15  ;;  %v4389_v25 = vadd.f32 %v4357_v48, %v4193_v62  ;;  %v4163_v37 = vmul.f32 %v9754_v63, %v9101_v23 }
 0x4ba   : > { %v9848_v41 = vpop.permute.xlu1 %3238  ;;  %v3898_v48 = vadd.f32 %v3866_v31, %v3830_v4  ;;  %v3833_v31 = vmul.f32 %v9728_v40, %v8596_v58 }
 0x4bb   : > { %7846 = vtanh.f32 %v3405_v16  ;;  %v4192_v34 = vadd.f32 %v4160_v9, %v3964_v60  ;;  %v3376_v10 = vmul.f32 %v9512_v26, %v9848_v41  ;;  %v3935_v15 = vmul.f32 %v9743_v43, %v9848_v41 }
 0x4bc   : > { %v7843_v55 = vpop.eup %7842  ;;  %7848 = vtanh.f32 %v3406_v51  ;;  %v4425_v9 = vadd.f32 %v9801_v24, %v4389_v25  ;;  %v3869_v51 = vmul.f32 %v9717_v6, %v9561_v19  ;;  %v4359_v25 = vmul.f32 %v9760_v14, %v9113_v3 }
 0x4bd   : > { %v7845_v62 = vpop.eup %7844  ;;  %v4388_v0 = vadd.f32 %v4356_v21, %v4192_v34  ;;  %7242 = vmatprep.mubr.msk.f32.mxu1 %vm4499_vm7, %v7843_v55  ;;  %v3967_v16 = vadd.f32 %v3935_v15, %v3899_v2  ;;  %v3408_v4 = vadd.f32 %v9525_v56, %v3376_v10  ;;  %v4162_v34 = vmul.f32 %v9754_v63, %v4017_v17 }
 0x4be   : > { %7243 = vmatmul.mubr.msk.f32.vlgmr.msra.gmra.mrb[96].mxu1 %vm4499_vm7, %v7845_v62  ;;  %v9863_v47 = vpop.permute.xlu1 %3233  ;;  %v4358_v15 = vmul.f32 %v9760_v14, %v9231_v52  ;;  %v3901_v58 = vadd.f32 %v3869_v51, %v3833_v31  ;;  %v3868_v10 = vmul.f32 %v9717_v6, %v9554_v61  ;;  %v4165_v52 = vmul.f32 %v9754_v63, %v9125_v45 }
 0x4bf   : > { %v4424_v60 = vadd.f32 %v9801_v24, %v4388_v0  ;;  %v3375_v32 = vmul.f32 %v9512_v26, %v9863_v47  ;;  %v3934_v23 = vmul.f32 %v9743_v43, %v9863_v47  ;;  %v4195_v21 = vadd.f32 %v4163_v37, %v3967_v16 }
 0x4c0   : > { %v3832_v51 = vmul.f32 %v9728_v40, %v8609_v1  ;;  %v3871_v31 = vmul.f32 %v9717_v6, %v9574_v5 }
 0x4c1   : > { %7850 = vtanh.f32 %v4424_v60  ;;  %v3407_v55 = vadd.f32 %v9525_v56, %v3375_v32  ;;  %v3966_v2 = vadd.f32 %v3934_v23, %v3898_v48  ;;  %v4391_v62 = vadd.f32 %v4359_v25, %v4195_v21  ;;  %v4027_v25 = vpop.permute.xlu0 %4026 }
 0x4c2   : > { %7852 = vtanh.f32 %v4425_v9  ;;  %v9881_v0 = vpop.permute.xlu1 %3248  ;;  %v4361_v60 = vmul.f32 %v9760_v14, %v9135_v22 }
 0x4c3   : > { %7854 = vtanh.f32 %v3407_v55  ;;  %v4194_v19 = vadd.f32 %v4162_v34, %v3966_v2  ;;  %v3937_v3 = vmul.f32 %v9743_v43, %v9881_v0  ;;  %v3378_v37 = vmul.f32 %v9512_v26, %v9881_v0 }
 0x4c4   : > { %7856 = vtanh.f32 %v3408_v4  ;;  %v4427_v32 = vadd.f32 %v9801_v24, %v4391_v62  ;;  %v3900_v4 = vadd.f32 %v3868_v10, %v3832_v51  ;;  %v3835_v34 = vmul.f32 %v9728_v40, %v8598_v59 }
 0x4c5   : > { %v7847_v48 = vpop.eup %7846  ;;  %v4390_v17 = vadd.f32 %v4358_v15, %v4194_v19  ;;  %v3969_v9 = vadd.f32 %v3937_v3, %v3901_v58  ;;  %v3410_v22 = vadd.f32 %v9525_v56, %v3378_v37  ;;  %v4164_v15 = vmul.f32 %v9754_v63, %v4027_v25 }
 0x4c6   : > { %v7849_v16 = vpop.eup %7848  ;;  %v9896_v23 = vpop.permute.xlu1 %3243  ;;  %7181 = vmatprep.mubr.msk.f32.mxu0 %vm818_vm4, %v7847_v48  ;;  %v3870_v10 = vmul.f32 %v9717_v6, %v9566_v33  ;;  %v3903_v37 = vadd.f32 %v3871_v31, %v3835_v34  ;;  %v11572_v31 = vld [vmem:[#allocation30_spill] sm:$0xff] }
 0x4c7   : > { %v4426_v19 = vadd.f32 %v9801_v24, %v4390_v17  ;;  %v4197_v58 = vadd.f32 %v4165_v52, %v3969_v9  ;;  %v3377_v45 = vmul.f32 %v9512_v26, %v9896_v23  ;;  %7182 = vmatmul.mubr.msk.f32.gmra.mrb[66].mxu0 %vm818_vm4, %v7849_v16  ;;  %v3936_v21 = vmul.f32 %v9743_v43, %v9896_v23 }
 0x4c8   : > { %v4360_v9 = vmul.f32 %v9760_v14, %v9244_v29  ;;  %v4167_v25 = vmul.f32 %v9754_v63, %v11572_v31 }
 0x4c9   : > { %7858 = vtanh.f32 %v4426_v19  ;;  %v4393_v55 = vadd.f32 %v4361_v60, %v4197_v58  ;;  %v3409_v2 = vadd.f32 %v9525_v56, %v3377_v45  ;;  %v3968_v62 = vadd.f32 %v3936_v21, %v3900_v4  ;;  %v4037_v45 = vpop.permute.xlu0 %4036 }
 0x4ca   : > { %7860 = vtanh.f32 %v4427_v32  ;;  %v9912_v3 = vpop.permute.xlu1 %3258  ;;  %v3834_v32 = vmul.f32 %v9728_v40, %v8630_v11 }
 0x4cb   : > { %v7851_v48 = vpop.eup %7850  ;;  %7862 = vtanh.f32 %v3409_v2  ;;  %v3939_v52 = vmul.f32 %v9743_v43, %v9912_v3  ;;  %v4196_v16 = vadd.f32 %v4164_v15, %v3968_v62  ;;  %v3380_v51 = vmul.f32 %v9512_v26, %v9912_v3 }
 0x4cc   : > { %v7853_v17 = vpop.eup %7852  ;;  %7864 = vtanh.f32 %v3410_v22  ;;  %7245 = vmatprep.mubr.msk.f32.mxu1 %vm4499_vm7, %v7851_v48  ;;  %v4429_v19 = vadd.f32 %v9801_v24, %v4393_v55  ;;  %v3902_v21 = vadd.f32 %v3870_v10, %v3834_v32  ;;  %v11573_v55 = vld [vmem:[#allocation31_spill] sm:$0xff]  ;;  %v3873_v48 = vmul.f32 %v9717_v6, %v9591_v30 }
 0x4cd   : > { %v7855_v60 = vpop.eup %7854  ;;  %v3971_v58 = vadd.f32 %v3939_v52, %v3903_v37  ;;  %7246 = vmatmul.mubr.msk.f32.gmra.mrb[98].mxu1 %vm4499_vm7, %v7853_v17  ;;  %v4392_v4 = vadd.f32 %v4360_v9, %v4196_v16  ;;  %v4363_v62 = vmul.f32 %v9760_v14, %v11573_v55  ;;  %v3412_v52 = vadd.f32 %v9525_v56, %v3380_v51  ;;  %v11574_v16 = vld [vmem:[#allocation8_spill] sm:$0xff] }
 0x4ce   : > { %v7857_v29 = vpop.eup %7856  ;;  %v9929_v22 = vpop.permute.xlu1 %3253  ;;  %7184 = vmatprep.mubr.msk.f32.mxu0 %vm818_vm4, %v7855_v60  ;;  %v4166_v10 = vmul.f32 %v9754_v63, %v4037_v45  ;;  %7866 = vtanh.f32 %v4429_v19  ;;  %v3837_v60 = vmul.f32 %v9728_v40, %v11574_v16  ;;  %v3872_v32 = vmul.f32 %v9717_v6, %v9580_v8 }
 0x4cf   : > { %v4199_v34 = vadd.f32 %v4167_v25, %v3971_v58  ;;  %v3379_v2 = vmul.f32 %v9512_v26, %v9929_v22  ;;  %v3938_v15 = vmul.f32 %v9743_v43, %v9929_v22  ;;  %7185 = vmatmul.mubr.msk.f32.gmra.mrb[68].mxu0 %vm818_vm4, %v7857_v29  ;;  %v4428_v37 = vadd.f32 %v9801_v24, %v4392_v4  ;;  %v11575_v29 = vld [vmem:[#allocation10_spill] sm:$0xff]  ;;  %v11576_v4 = vld [vmem:[#allocation40_spill] sm:$0xff] }
 0x4d0   : > { %v3836_v51 = vmul.f32 %v9728_v40, %v11575_v29  ;;  %v4362_v19 = vmul.f32 %v9760_v14, %v11576_v4  ;;  %v11577_v29 = vld [vmem:[#allocation32_spill] sm:$0xff] }
 0x4d1   : > { %v3411_v17 = vadd.f32 %v9525_v56, %v3379_v2  ;;  %v3970_v9 = vadd.f32 %v3938_v15, %v3902_v21  ;;  %7868 = vtanh.f32 %v4428_v37  ;;  %v4395_v31 = vadd.f32 %v4363_v62, %v4199_v34 }
 0x4d2   : > { %v9949_v25 = vpop.permute.xlu1 %3268  ;;  %v3905_v2 = vadd.f32 %v3873_v48, %v3837_v60 }
 0x4d3   : > { %v7859_v58 = vpop.eup %7858  ;;  %7870 = vtanh.f32 %v3411_v17  ;;  %v4198_v45 = vadd.f32 %v4166_v10, %v3970_v9  ;;  %v3382_v15 = vmul.f32 %v9512_v26, %v9949_v25  ;;  %v3941_v34 = vmul.f32 %v9743_v43, %v9949_v25  ;;  %v4047_v9 = vpop.permute.xlu0 %4046 }
 0x4d4   : > { %v7861_v21 = vpop.eup %7860  ;;  %7872 = vtanh.f32 %v3412_v52  ;;  %7248 = vmatprep.mubr.msk.f32.mxu1 %vm4499_vm7, %v7859_v58  ;;  %v4169_v17 = vmul.f32 %v9754_v63, %v11577_v29  ;;  %v3904_v10 = vadd.f32 %v3872_v32, %v3836_v51  ;;  %v4431_v48 = vadd.f32 %v9801_v24, %v4395_v31  ;;  %v11579_v32 = vld [vmem:[#allocation9_spill] sm:$0xff] }
 0x4d5   : > { %v7863_v55 = vpop.eup %7862  ;;  %v4394_v62 = vadd.f32 %v4362_v19, %v4198_v45  ;;  %7249 = vmatmul.mubr.msk.f32.gmra.mrb[100].mxu1 %vm4499_vm7, %v7861_v21  ;;  %v3973_v52 = vadd.f32 %v3941_v34, %v3905_v2  ;;  %v3875_v58 = vmul.f32 %v9717_v6, %v9605_v39  ;;  %v3839_v31 = vmul.f32 %v9728_v40, %v11579_v32  ;;  %v11580_v51 = vld [vmem:[#allocation33_spill] sm:$0xff]  ;;  %v11581_v39 = vld [vmem:[#allocation42_spill] sm:$0xff] }
 0x4d6   : > { %v7865_v37 = vpop.eup %7864  ;;  %v9964_v60 = vpop.permute.xlu1 %3263  ;;  %7187 = vmatprep.mubr.msk.f32.mxu0 %vm818_vm4, %v7863_v55  ;;  %v4365_v45 = vmul.f32 %v9760_v14, %v11580_v51  ;;  %v3414_v21 = vadd.f32 %v9525_v56, %v3382_v15  ;;  %v4168_v34 = vmul.f32 %v9754_v63, %v4047_v9  ;;  %v4364_v16 = vmul.f32 %v9760_v14, %v11581_v39  ;;  %v11583_v9 = vld [vmem:[#allocation66_spill] sm:$0xff] }
 0x4d7   : > { %11578 = vst [vmem:[#allocation30_spill] sm:$0xff] %v9964_v60  ;;  %v4430_v4 = vadd.f32 %v9801_v24, %v4394_v62  ;;  %v3381_v19 = vmul.f32 %v9512_v26, %v9964_v60  ;;  %v3940_v29 = vmul.f32 %v9743_v43, %v9964_v60  ;;  %7188 = vmatmul.mubr.msk.f32.gmra.mrb[70].mxu0 %vm818_vm4, %v7865_v37 }
 0x4d8   : > { %v4201_v2 = vadd.f32 %v4169_v17, %v3973_v52  ;;  %v7867_v32 = vpop.eup %7866  ;;  %v3907_v60 = vadd.f32 %v3875_v58, %v3839_v31  ;;  %v3874_v52 = vmul.f32 %v9717_v6, %v11583_v9  ;;  %v11585_v31 = vld [vmem:[#allocation12_spill] sm:$0xff]  ;;  %v11601_v9 = vld [vmem:[#allocation46_spill] sm:$0xff] }
 0x4d9   : > { %7874 = vtanh.f32 %v4430_v4  ;;  %v3413_v55 = vadd.f32 %v9525_v56, %v3381_v19  ;;  %v3972_v62 = vadd.f32 %v3940_v29, %v3904_v10 }
 0x4da   : > { %7876 = vtanh.f32 %v4431_v48  ;;  %v4397_v37 = vadd.f32 %v4365_v45, %v4201_v2  ;;  %v9984_v8 = vpop.permute.xlu1 %3278  ;;  %v11584_v48 = vld [vmem:[#allocation34_spill] sm:$0xff]  ;;  %v3838_v45 = vmul.f32 %v9728_v40, %v11585_v31  ;;  %v11586_v2 = vld [vmem:[#allocation35_spill] sm:$0xff] }
 0x4db   : > { %11582 = vst [vmem:[#allocation31_spill] sm:$0xff] %v9984_v8  ;;  %7878 = vtanh.f32 %v3413_v55  ;;  %v4200_v51 = vadd.f32 %v4168_v34, %v3972_v62  ;;  %v3943_v15 = vmul.f32 %v9743_v43, %v9984_v8  ;;  %v7869_v17 = vpop.eup %7868  ;;  %v3384_v10 = vmul.f32 %v9512_v26, %v9984_v8 }
 0x4dc   : > { %7880 = vtanh.f32 %v3414_v21  ;;  %v4171_v4 = vmul.f32 %v9754_v63, %v11584_v48  ;;  %7251 = vmatprep.mubr.msk.f32.mxu1 %vm4499_vm7, %v7869_v17  ;;  %v4367_v34 = vmul.f32 %v9760_v14, %v11586_v2  ;;  %v4433_v21 = vadd.f32 %v9801_v24, %v4397_v37  ;;  %v11588_v48 = vld [vmem:[#allocation11_spill] sm:$0xff] }
 0x4dd   : > { %v7871_v39 = vpop.eup %7870  ;;  %v4396_v19 = vadd.f32 %v4364_v16, %v4200_v51  ;;  %v3975_v29 = vadd.f32 %v3943_v15, %v3907_v60  ;;  %7252 = vmatmul.mubr.msk.f32.gmra.mrb[102].mxu1 %vm4499_vm7, %v7867_v32  ;;  %v3877_v16 = vmul.f32 %v9717_v6, %v9619_v13  ;;  %v4057_v60 = vpop.permute.xlu0 %4056  ;;  %v3906_v17 = vadd.f32 %v3874_v52, %v3838_v45  ;;  %v11590_v52 = vld [vmem:[#allocation68_spill] sm:$0xff] }
 0x4de   : > { %v7873_v58 = vpop.eup %7872  ;;  %v10001_v55 = vpop.permute.xlu1 %3273  ;;  %7190 = vmatprep.mubr.msk.f32.mxu0 %vm818_vm4, %v7871_v39  ;;  %v3416_v37 = vadd.f32 %v9525_v56, %v3384_v10  ;;  %v3841_v39 = vmul.f32 %v9728_v40, %v11588_v48  ;;  %v3876_v10 = vmul.f32 %v9717_v6, %v11590_v52 }
 0x4df   : > { %11587 = vst [vmem:[#allocation40_spill] sm:$0xff] %v10001_v55  ;;  %v4432_v62 = vadd.f32 %v9801_v24, %v4396_v19  ;;  %v4203_v51 = vadd.f32 %v4171_v4, %v3975_v29  ;;  %v3383_v15 = vmul.f32 %v9512_v26, %v10001_v55  ;;  %7191 = vmatmul.mubr.msk.f32.gmra.mrb[72].mxu0 %vm818_vm4, %v7873_v58 }
 0x4e0   : > { %v3942_v32 = vmul.f32 %v9743_v43, %v10001_v55  ;;  %v4170_v4 = vmul.f32 %v9754_v63, %v4057_v60  ;;  %v3909_v45 = vadd.f32 %v3877_v16, %v3841_v39  ;;  %v11593_v16 = vld [vmem:[#allocation36_spill] sm:$0xff] }
 0x4e1   : > { %7882 = vtanh.f32 %v4432_v62  ;;  %v4399_v2 = vadd.f32 %v4367_v34, %v4203_v51  ;;  %v3415_v13 = vadd.f32 %v9525_v56, %v3383_v15  ;;  %v11591_v62 = vld [vmem:[#allocation44_spill] sm:$0xff]  ;;  %v11592_v51 = vld [vmem:[#allocation14_spill] sm:$0xff] }
 0x4e2   : > { %7884 = vtanh.f32 %v4433_v21  ;;  %v3974_v19 = vadd.f32 %v3942_v32, %v3906_v17  ;;  %v10017_v29 = vpop.permute.xlu1 %3288  ;;  %v4366_v34 = vmul.f32 %v9760_v14, %v11591_v62  ;;  %v3840_v15 = vmul.f32 %v9728_v40, %v11592_v51  ;;  %v10040_v62 = vld [vmem:[%s11374_s4 + $0x38] ss:$0 sm:$0xff]  ;;  %v11598_v51 = vld [vmem:[#allocation70_spill] sm:$0xff] }
 0x4e3   : > { %11589 = vst [vmem:[#allocation32_spill] sm:$0xff] %v10017_v29  ;;  %v7875_v58 = vpop.eup %7874  ;;  %7886 = vtanh.f32 %v3415_v13  ;;  %v3945_v31 = vmul.f32 %v9743_v43, %v10017_v29  ;;  %v3386_v21 = vmul.f32 %v9512_v26, %v10017_v29  ;;  %v4173_v13 = vmul.f32 %v9754_v63, %v11593_v16  ;;  %v11600_v29 = vld [vmem:[#allocation16_spill] sm:$0xff] }
 0x4e4   : > { %v7877_v48 = vpop.eup %7876  ;;  %7888 = vtanh.f32 %v3416_v37  ;;  %v4202_v56 = vadd.f32 %v4170_v4, %v3974_v19  ;;  %7254 = vmatprep.mubr.msk.f32.mxu1 %vm4499_vm7, %v7875_v58  ;;  %v4435_v17 = vadd.f32 %v9801_v24, %v4399_v2  ;;  %v4067_v37 = vpop.permute.xlu0 %4066  ;;  %v3908_v26 = vadd.f32 %v3876_v10, %v3840_v15 }
 0x4e5   : > { %v7879_v60 = vpop.eup %7878  ;;  %v3977_v32 = vadd.f32 %v3945_v31, %v3909_v45  ;;  %7255 = vmatmul.mubr.msk.f32.gmra.mrb[104].mxu1 %vm4499_vm7, %v7877_v48  ;;  %v11595_v48 = vld [vmem:[#allocation37_spill] sm:$0xff]  ;;  %v4172_v16 = vmul.f32 %v9754_v63, %v4067_v37 }
 0x4e6   : > { %v7881_v39 = vpop.eup %7880  ;;  %v4398_v4 = vadd.f32 %v4366_v34, %v4202_v56  ;;  %v10034_v19 = vpop.permute.xlu1 %3283  ;;  %7193 = vmatprep.mubr.msk.f32.mxu0 %vm818_vm4, %v7879_v60  ;;  %v4369_v45 = vmul.f32 %v9760_v14, %v11595_v48  ;;  %v11596_v34 = vld [vmem:[#allocation71_spill] sm:$0xff]  ;;  %v10055_v60 = vld [vmem:[%s11374_s4 + $0x40] ss:$0 sm:$0xff]  ;;  %7890 = vtanh.f32 %v4435_v17  ;;  %v4368_v17 = vmul.f32 %v9760_v14, %v11601_v9 }
 0x4e7   : > { %11594 = vst [vmem:[#allocation33_spill] sm:$0xff] %v10034_v19  ;;  %v4205_v58 = vadd.f32 %v4173_v13, %v3977_v32  ;;  %v3385_v2 = vmul.f32 %v10040_v62, %v10034_v19  ;;  %v3944_v31 = vmul.f32 %v9743_v43, %v10034_v19  ;;  %7194 = vmatmul.mubr.msk.f32.gmra.mrb[74].mxu0 %vm818_vm4, %v7881_v39  ;;  %v11597_v39 = vld [vmem:[#allocation13_spill] sm:$0xff] }
 0x4e8   : > { %v3879_v10 = vmul.f32 %v9717_v6, %v11596_v34  ;;  %v4434_v56 = vadd.f32 %v9801_v24, %v4398_v4  ;;  %v3418_v15 = vadd.f32 %v10055_v60, %v3386_v21  ;;  %v3843_v48 = vmul.f32 %v9728_v40, %v11597_v39  ;;  %v11602_v39 = vld [vmem:[#allocation38_spill] sm:$0xff] }
 0x4e9   : > { %v3417_v13 = vadd.f32 %v10055_v60, %v3385_v2  ;;  %v3976_v32 = vadd.f32 %v3944_v31, %v3908_v26  ;;  %v3878_v34 = vmul.f32 %v9717_v6, %v11598_v51  ;;  %v4401_v4 = vadd.f32 %v4369_v45, %v4205_v58  ;;  %v11607_v51 = vld [vmem:[#allocation48_spill] sm:$0xff] }
 0x4ea   : > { %7892 = vtanh.f32 %v4434_v56  ;;  %v10064_v52 = vpop.permute.xlu1 %3298  ;;  %v3842_v21 = vmul.f32 %v9728_v40, %v11600_v29  ;;  %v3911_v2 = vadd.f32 %v3879_v10, %v3843_v48  ;;  %v4175_v9 = vmul.f32 %v9754_v63, %v11602_v39  ;;  %v11604_v48 = vld [vmem:[#allocation73_spill] sm:$0xff] }
 0x4eb   : > { %11599 = vst [vmem:[#allocation42_spill] sm:$0xff] %v10064_v52  ;;  %v7883_v19 = vpop.eup %7882  ;;  %7894 = vtanh.f32 %v3417_v13  ;;  %v4204_v37 = vadd.f32 %v4172_v16, %v3976_v32  ;;  %v3388_v31 = vmul.f32 %v10040_v62, %v10064_v52  ;;  %v3947_v58 = vmul.f32 %v9743_v43, %v10064_v52  ;;  %v4077_v13 = vpop.permute.xlu0 %4076 }
 0x4ec   : > { %v7885_v26 = vpop.eup %7884  ;;  %7896 = vtanh.f32 %v3418_v15  ;;  %7257 = vmatprep.mubr.msk.f32.mxu1 %vm4499_vm7, %v7883_v19  ;;  %v3910_v16 = vadd.f32 %v3878_v34, %v3842_v21  ;;  %v4437_v10 = vadd.f32 %v9801_v24, %v4401_v4  ;;  %v3881_v19 = vmul.f32 %v9717_v6, %v11604_v48  ;;  %v11605_v34 = vld [vmem:[#allocation15_spill] sm:$0xff] }
 0x4ed   : > { %v7887_v45 = vpop.eup %7886  ;;  %v4400_v56 = vadd.f32 %v4368_v17, %v4204_v37  ;;  %7258 = vmatmul.mubr.msk.f32.gmra.mrb[106].mxu1 %vm4499_vm7, %v7885_v26  ;;  %v3979_v15 = vadd.f32 %v3947_v58, %v3911_v2  ;;  %v3845_v4 = vmul.f32 %v9728_v40, %v11605_v34  ;;  %v11606_v21 = vld [vmem:[#allocation39_spill] sm:$0xff]  ;;  %v3420_v2 = vadd.f32 %v10055_v60, %v3388_v31 }
 0x4ee   : > { %v7889_v29 = vpop.eup %7888  ;;  %v10079_v32 = vpop.permute.xlu1 %3293  ;;  %7196 = vmatprep.mubr.msk.f32.mxu0 %vm818_vm4, %v7887_v45  ;;  %v4371_v26 = vmul.f32 %v9760_v14, %v11606_v21  ;;  %v4174_v45 = vmul.f32 %v9754_v63, %v4077_v13  ;;  %v11609_v13 = vld [vmem:[#allocation72_spill] sm:$0xff] }
 0x4ef   : > { %11603 = vst [vmem:[#allocation34_spill] sm:$0xff] %v10079_v32  ;;  %v4436_v17 = vadd.f32 %v9801_v24, %v4400_v56  ;;  %v3387_v37 = vmul.f32 %v10040_v62, %v10079_v32  ;;  %v3946_v39 = vmul.f32 %v9743_v43, %v10079_v32  ;;  %7197 = vmatmul.mubr.msk.f32.gmra.mrb[76].mxu0 %vm818_vm4, %v7889_v29 }
 0x4f0   : > { %v4207_v58 = vadd.f32 %v4175_v9, %v3979_v15  ;;  %v4370_v32 = vmul.f32 %v9760_v14, %v11607_v51  ;;  %v7891_v34 = vpop.eup %7890  ;;  %v3913_v55 = vadd.f32 %v3881_v19, %v3845_v4  ;;  %v3880_v15 = vmul.f32 %v9717_v6, %v11609_v13  ;;  %v11611_v19 = vld [vmem:[#allocation18_spill] sm:$0xff] }
 0x4f1   : > { %7898 = vtanh.f32 %v4436_v17  ;;  %v3419_v56 = vadd.f32 %v10055_v60, %v3387_v37  ;;  %v3978_v48 = vadd.f32 %v3946_v39, %v3910_v16  ;;  %v3844_v4 = vmul.f32 %v9728_v40, %v11611_v19 }
 0x4f2   : > { %7900 = vtanh.f32 %v4437_v10  ;;  %v4403_v29 = vadd.f32 %v4371_v26, %v4207_v58  ;;  %v10099_v52 = vpop.permute.xlu1 %3308  ;;  %v11610_v10 = vld [vmem:[#allocation41_spill] sm:$0xff]  ;;  %v11612_v26 = vld [vmem:[#allocation43_spill] sm:$0xff] }
 0x4f3   : > { %11608 = vst [vmem:[#allocation35_spill] sm:$0xff] %v10099_v52  ;;  %7902 = vtanh.f32 %v3419_v56  ;;  %v4206_v21 = vadd.f32 %v4174_v45, %v3978_v48  ;;  %v3949_v31 = vmul.f32 %v9743_v43, %v10099_v52  ;;  %v3390_v16 = vmul.f32 %v10040_v62, %v10099_v52  ;;  %v11614_v56 = vld [vmem:[#allocation75_spill] sm:$0xff] }
 0x4f4   : > { %v7893_v9 = vpop.eup %7892  ;;  %7904 = vtanh.f32 %v3420_v2  ;;  %v4177_v17 = vmul.f32 %v9754_v63, %v11610_v10  ;;  %v4373_v58 = vmul.f32 %v9760_v14, %v11612_v26  ;;  %v4439_v2 = vadd.f32 %v9801_v24, %v4403_v29  ;;  %v11615_v26 = vld [vmem:[#allocation17_spill] sm:$0xff] }
 0x4f5   : > { %v7895_v51 = vpop.eup %7894  ;;  %v4402_v37 = vadd.f32 %v4370_v32, %v4206_v21  ;;  %v3981_v39 = vadd.f32 %v3949_v31, %v3913_v55  ;;  %7260 = vmatprep.mubr.msk.f32.mxu1 %vm4499_vm7, %v7893_v9  ;;  %v3883_v55 = vmul.f32 %v9717_v6, %v11614_v56  ;;  %v4087_v32 = vpop.permute.xlu0 %4086  ;;  %v3912_v10 = vadd.f32 %v3880_v15, %v3844_v4  ;;  %v11617_v15 = vld [vmem:[#allocation74_spill] sm:$0xff] }
 0x4f6   : > { %v7897_v48 = vpop.eup %7896  ;;  %7261 = vmatmul.mubr.msk.f32.gmra.mrb[108].mxu1 %vm4499_vm7, %v7891_v34  ;;  %v10116_v45 = vpop.permute.xlu1 %3303  ;;  %7199 = vmatprep.mubr.msk.f32.mxu0 %vm818_vm4, %v7895_v51  ;;  %v3422_v29 = vadd.f32 %v10055_v60, %v3390_v16  ;;  %v3847_v51 = vmul.f32 %v9728_v40, %v11615_v26  ;;  %v3882_v16 = vmul.f32 %v9717_v6, %v11617_v15 }
 0x4f7   : > { %11613 = vst [vmem:[#allocation44_spill] sm:$0xff] %v10116_v45  ;;  %v4438_v21 = vadd.f32 %v9801_v24, %v4402_v37  ;;  %v4209_v31 = vadd.f32 %v4177_v17, %v3981_v39  ;;  %v3389_v9 = vmul.f32 %v10040_v62, %v10116_v45  ;;  %7200 = vmatmul.mubr.msk.f32.gmra.mrb[78].mxu0 %vm818_vm4, %v7897_v48 }
 0x4f8   : > { %v3948_v34 = vmul.f32 %v9743_v43, %v10116_v45  ;;  %v4176_v17 = vmul.f32 %v9754_v63, %v4087_v32  ;;  %v3915_v4 = vadd.f32 %v3883_v55, %v3847_v51  ;;  %v11620_v55 = vld [vmem:[#allocation45_spill] sm:$0xff]  ;;  %v11628_v45 = vld [vmem:[#allocation52_spill] sm:$0xff] }
 0x4f9   : > { %7906 = vtanh.f32 %v4438_v21  ;;  %v4405_v56 = vadd.f32 %v4373_v58, %v4209_v31  ;;  %v3421_v19 = vadd.f32 %v10055_v60, %v3389_v9  ;;  %v11618_v21 = vld [vmem:[#allocation50_spill] sm:$0xff]  ;;  %v11619_v9 = vld [vmem:[#allocation20_spill] sm:$0xff] }
 0x4fa   : > { %7908 = vtanh.f32 %v4439_v2  ;;  %v3980_v37 = vadd.f32 %v3948_v34, %v3912_v10  ;;  %v10132_v39 = vpop.permute.xlu1 %3318  ;;  %v4372_v58 = vmul.f32 %v9760_v14, %v11618_v21  ;;  %v3846_v10 = vmul.f32 %v9728_v40, %v11619_v9 }
 0x4fb   : > { %11616 = vst [vmem:[#allocation36_spill] sm:$0xff] %v10132_v39  ;;  %v7899_v48 = vpop.eup %7898  ;;  %7910 = vtanh.f32 %v3421_v19  ;;  %v3951_v13 = vmul.f32 %v9743_v43, %v10132_v39  ;;  %v3392_v2 = vmul.f32 %v10040_v62, %v10132_v39  ;;  %v4179_v19 = vmul.f32 %v9754_v63, %v11620_v55 }
 0x4fc   : > { %v7901_v26 = vpop.eup %7900  ;;  %7912 = vtanh.f32 %v3422_v29  ;;  %v4208_v31 = vadd.f32 %v4176_v17, %v3980_v37  ;;  %7263 = vmatprep.mubr.msk.f32.mxu1 %vm4499_vm7, %v7899_v48  ;;  %v4441_v34 = vadd.f32 %v9801_v24, %v4405_v56  ;;  %v4097_v29 = vpop.permute.xlu0 %4096  ;;  %v3914_v48 = vadd.f32 %v3882_v16, %v3846_v10 }
 0x4fd   : > { %v7903_v32 = vpop.eup %7902  ;;  %v3983_v51 = vadd.f32 %v3951_v13, %v3915_v4  ;;  %7264 = vmatmul.mubr.msk.f32.gmra.mrb[110].mxu1 %vm4499_vm7, %v7901_v26  ;;  %v11622_v13 = vld [vmem:[#allocation47_spill] sm:$0xff]  ;;  %v11623_v26 = vld [vmem:[#allocation77_spill] sm:$0xff]  ;;  %v4178_v16 = vmul.f32 %v9754_v63, %v4097_v29 }
 0x4fe   : > { %v7905_v21 = vpop.eup %7904  ;;  %v4404_v17 = vadd.f32 %v4372_v58, %v4208_v31  ;;  %v10149_v37 = vpop.permute.xlu1 %3313  ;;  %7202 = vmatprep.mubr.msk.f32.mxu0 %vm818_vm4, %v7903_v32  ;;  %v4375_v56 = vmul.f32 %v9760_v14, %v11622_v13  ;;  %v3885_v4 = vmul.f32 %v9717_v6, %v11623_v26  ;;  %v3424_v31 = vadd.f32 %v10055_v60, %v3392_v2 }
 0x4ff   : > { %11621 = vst [vmem:[#allocation37_spill] sm:$0xff] %v10149_v37  ;;  %v4211_v15 = vadd.f32 %v4179_v19, %v3983_v51  ;;  %v3391_v9 = vmul.f32 %v10040_v62, %v10149_v37  ;;  %v3950_v55 = vmul.f32 %v9743_v43, %v10149_v37  ;;  %7203 = vmatmul.mubr.msk.f32.gmra.mrb[80].mxu0 %vm818_vm4, %v7905_v21  ;;  %7914 = vtanh.f32 %v4441_v34  ;;  %v11624_v19 = vld [vmem:[#allocation19_spill] sm:$0xff]  ;;  %v11625_v21 = vld [vmem:[#allocation76_spill] sm:$0xff] }
 0x500   : > { %v4440_v58 = vadd.f32 %v9801_v24, %v4404_v17  ;;  %v3849_v51 = vmul.f32 %v9728_v40, %v11624_v19  ;;  %v3884_v37 = vmul.f32 %v9717_v6, %v11625_v21  ;;  %v11627_v17 = vld [vmem:[#allocation22_spill] sm:$0xff]  ;;  %v4374_v34 = vmul.f32 %v9760_v14, %v11628_v45  ;;  %v11629_v19 = vld [vmem:[#allocation49_spill] sm:$0xff] }
 0x501   : > { %v3423_v32 = vadd.f32 %v10055_v60, %v3391_v9  ;;  %v3982_v10 = vadd.f32 %v3950_v55, %v3914_v48  ;;  %v4407_v13 = vadd.f32 %v4375_v56, %v4211_v15  ;;  %v3848_v2 = vmul.f32 %v9728_v40, %v11627_v17  ;;  %v11634_v21 = vld [vmem:[#allocation54_spill] sm:$0xff] }
 0x502   : > { %7916 = vtanh.f32 %v4440_v58  ;;  %v10169_v39 = vpop.permute.xlu1 %3328  ;;  %v3917_v48 = vadd.f32 %v3885_v4, %v3849_v51  ;;  %v4181_v45 = vmul.f32 %v9754_v63, %v11629_v19  ;;  %v11631_v51 = vld [vmem:[#allocation79_spill] sm:$0xff] }
 0x503   : > { %11626 = vst [vmem:[#allocation46_spill] sm:$0xff] %v10169_v39  ;;  %v7907_v26 = vpop.eup %7906  ;;  %7918 = vtanh.f32 %v3423_v32  ;;  %v4210_v9 = vadd.f32 %v4178_v16, %v3982_v10  ;;  %v3394_v55 = vmul.f32 %v10040_v62, %v10169_v39  ;;  %v3953_v15 = vmul.f32 %v9743_v43, %v10169_v39  ;;  %v4107_v32 = vpop.permute.xlu0 %4106 }
 0x504   : > { %v7909_v29 = vpop.eup %7908  ;;  %7920 = vtanh.f32 %v3424_v31  ;;  %7266 = vmatprep.mubr.msk.f32.mxu1 %vm4499_vm7, %v7907_v26  ;;  %v3916_v16 = vadd.f32 %v3884_v37, %v3848_v2  ;;  %v4443_v4 = vadd.f32 %v9801_v24, %v4407_v13  ;;  %v3887_v26 = vmul.f32 %v9717_v6, %v11631_v51  ;;  %v11632_v37 = vld [vmem:[#allocation21_spill] sm:$0xff]  ;;  %v11633_v2 = vld [vmem:[#allocation51_spill] sm:$0xff] }
 0x505   : > { %v7911_v56 = vpop.eup %7910  ;;  %v4406_v58 = vadd.f32 %v4374_v34, %v4210_v9  ;;  %7267 = vmatmul.mubr.msk.f32.gmra.mrb[112].mxu1 %vm4499_vm7, %v7909_v29  ;;  %v3985_v31 = vadd.f32 %v3953_v15, %v3917_v48  ;;  %v3851_v13 = vmul.f32 %v9728_v40, %v11632_v37  ;;  %v4377_v29 = vmul.f32 %v9760_v14, %v11633_v2 }
 0x506   : > { %v7913_v17 = vpop.eup %7912  ;;  %v10184_v10 = vpop.permute.xlu1 %3323  ;;  %7205 = vmatprep.mubr.msk.f32.mxu0 %vm818_vm4, %v7911_v56  ;;  %v3426_v48 = vadd.f32 %v10055_v60, %v3394_v55  ;;  %v4180_v56 = vmul.f32 %v9754_v63, %v4107_v32  ;;  %v11636_v32 = vld [vmem:[#allocation78_spill] sm:$0xff] }
 0x507   : > { %11630 = vst [vmem:[#allocation38_spill] sm:$0xff] %v10184_v10  ;;  %v4442_v34 = vadd.f32 %v9801_v24, %v4406_v58  ;;  %v3393_v9 = vmul.f32 %v10040_v62, %v10184_v10  ;;  %v3952_v19 = vmul.f32 %v9743_v43, %v10184_v10  ;;  %7206 = vmatmul.mubr.msk.f32.gmra.mrb[82].mxu0 %vm818_vm4, %v7913_v17 }
 0x508   : > { %v4213_v15 = vadd.f32 %v4181_v45, %v3985_v31  ;;  %v4376_v10 = vmul.f32 %v9760_v14, %v11634_v21  ;;  %v3919_v52 = vadd.f32 %v3887_v26, %v3851_v13  ;;  %v3886_v31 = vmul.f32 %v9717_v6, %v11636_v32 }
 0x509   : > { %7922 = vtanh.f32 %v4442_v34  ;;  %v3425_v58 = vadd.f32 %v10055_v60, %v3393_v9  ;;  %v3984_v51 = vadd.f32 %v3952_v19, %v3916_v16  ;;  %v7915_v37 = vpop.eup %7914  ;;  %v11638_v9 = vld [vmem:[#allocation53_spill] sm:$0xff] }
 0x50a   : > { %7924 = vtanh.f32 %v4443_v4  ;;  %v4409_v17 = vadd.f32 %v4377_v29, %v4213_v15  ;;  %v10204_v39 = vpop.permute.xlu1 %3338  ;;  %v11637_v4 = vld [vmem:[#allocation23_spill] sm:$0xff]  ;;  %v4183_v26 = vmul.f32 %v9754_v63, %v11638_v9  ;;  %v11639_v29 = vld [vmem:[#allocation24_spill] sm:$0xff] }
 0x50b   : > { %11635 = vst [vmem:[#allocation39_spill] sm:$0xff] %v10204_v39  ;;  %7926 = vtanh.f32 %v3425_v58  ;;  %v4212_v2 = vadd.f32 %v4180_v56, %v3984_v51  ;;  %v3955_v55 = vmul.f32 %v9743_v43, %v10204_v39  ;;  %v3396_v16 = vmul.f32 %v10040_v62, %v10204_v39  ;;  %v11640_v56 = vld [vmem:[#allocation55_spill] sm:$0xff]  ;;  %v4117_v58 = vpop.permute.xlu0 %4116  ;;  %v11642_v39 = vld [vmem:[#allocation26_spill] sm:$0xff] }
 0x50c   : > { %v7917_v45 = vpop.eup %7916  ;;  %7928 = vtanh.f32 %v3426_v48  ;;  %v3853_v34 = vmul.f32 %v9728_v40, %v11637_v4  ;;  %v3850_v15 = vmul.f32 %v9728_v40, %v11639_v29  ;;  %v4379_v48 = vmul.f32 %v9760_v14, %v11640_v56 }
 0x50d   : > { %v7919_v21 = vpop.eup %7918  ;;  %v4408_v19 = vadd.f32 %v4376_v10, %v4212_v2  ;;  %v3987_v51 = vadd.f32 %v3955_v55, %v3919_v52  ;;  %7269 = vmatprep.mubr.msk.f32.mxu1 %vm4499_vm7, %v7917_v45  ;;  %v4445_v32 = vadd.f32 %v9801_v24, %v4409_v17  ;;  %v4853_v52 = vld [vmem:[%s11374_s4 + $0xb8] sm:$0xff]  ;;  %v4854_v10 = vld [vmem:[%s11374_s4 + $0xc0] sm:$0xff]  ;;  %v3428_v9 = vadd.f32 %v10055_v60, %v3396_v16  ;;  %v4855_v16 = vld [vmem:[%s11374_s4 + $0xc8] sm:$0xff] }
 0x50e   : > { %v7921_v13 = vpop.eup %7920  ;;  %7270 = vmatmul.mubr.msk.f32.gmra.mrb[114].mxu1 %vm4499_vm7, %v7915_v37  ;;  %v10223_v4 = vpop.permute.xlu1 %3333  ;;  %7208 = vmatprep.mubr.msk.f32.mxu0 %vm818_vm4, %v7919_v21  ;;  %v11641_v2 = vld [vmem:[#allocation81_spill] sm:$0xff]  ;;  %v3918_v21 = vadd.f32 %v3886_v31, %v3850_v15  ;;  %v7418_v29 = vpack.c.bf16 %v4854_v10, %v4853_v52  ;;  %v3852_v8 = vmul.f32 %v9728_v40, %v11642_v39  ;;  %v4856_v15 = vld [vmem:[%s11374_s4 + $0xd0] sm:$0xff]  ;;  %v11645_v52 = vld [vmem:[#allocation56_spill] sm:$0xff] }
 0x50f   : > { %v3889_v55 = vmul.f32 %v9717_v6, %v11641_v2  ;;  %v4444_v45 = vadd.f32 %v9801_v24, %v4408_v19  ;;  %v4215_v17 = vadd.f32 %v4183_v26, %v3987_v51  ;;  %v3395_v37 = vmul.f32 %v10040_v62, %v10223_v4  ;;  %7209 = vmatmul.mubr.msk.f32.gmra.mrb[84].mxu0 %vm818_vm4, %v7921_v13  ;;  %v11643_v26 = vld [vmem:[#allocation80_spill] sm:$0xff] }
 0x510   : > { %v3954_v56 = vmul.f32 %v9743_v43, %v10223_v4  ;;  %v3888_v51 = vmul.f32 %v9717_v6, %v11643_v26  ;;  %v4182_v30 = vmul.f32 %v9754_v63, %v4117_v58  ;;  %7419 = vmatprep.subr.bf16.mxu0 %v7418_v29  ;;  %v4378_v10 = vmul.f32 %v9760_v14, %v11645_v52  ;;  %v11646_v26 = vld [vmem:[#allocation57_spill] sm:$0xff] }
 0x511   : > { %7930 = vtanh.f32 %v4444_v45  ;;  %v4411_v2 = vadd.f32 %v4379_v48, %v4215_v17  ;;  %v3427_v19 = vadd.f32 %v10055_v60, %v3395_v37  ;;  %v3921_v45 = vadd.f32 %v3889_v55, %v3853_v34  ;;  %7421 = vmatpush3.bf16.msra.mxu0 %v7418_v29  ;;  %v4127_v17 = vpop.permute.xlu0 %4126  ;;  %v4857_v29 = vld [vmem:[%s11374_s4 + $0xd8] sm:$0xff] }
 0x512   : > { %7932 = vtanh.f32 %v4445_v32  ;;  %v3986_v31 = vadd.f32 %v3954_v56, %v3918_v21  ;;  %v10247_v13 = vpop.permute.xlu1 %3348  ;;  %v7422_v56 = vpack.c.bf16 %v4856_v15, %v4855_v16  ;;  %v4185_v52 = vmul.f32 %v9754_v63, %v11646_v26  ;;  %v11648_v26 = vld [vmem:[#allocation83_spill] sm:$0xff] }
 0x513   : > { %11644 = vst [vmem:[#allocation48_spill] sm:$0xff] %v10247_v13  ;;  %v7923_v48 = vpop.eup %7922  ;;  %7934 = vtanh.f32 %v3427_v19  ;;  %v3957_v32 = vmul.f32 %v9743_v43, %v10247_v13  ;;  %v3398_v21 = vmul.f32 %v10040_v62, %v10247_v13  ;;  %v4447_v34 = vadd.f32 %v9801_v24, %v4411_v2 }
 0x514   : > { %v7925_v58 = vpop.eup %7924  ;;  %7936 = vtanh.f32 %v3428_v9  ;;  %v4214_v37 = vadd.f32 %v4182_v30, %v3986_v31  ;;  %7272 = vmatprep.mubr.msk.f32.mxu1 %vm4499_vm7, %v7923_v48  ;;  %v4858_v30 = vld [vmem:[%s11374_s4 + $0xe0] sm:$0xff]  ;;  %v3920_v19 = vadd.f32 %v3888_v51, %v3852_v8  ;;  %7423 = vmatprep.subr.bf16.mxu0 %v7422_v56  ;;  %v3891_v15 = vmul.f32 %v9717_v6, %v11648_v26  ;;  %v11652_v26 = vld [vmem:[#allocation82_spill] sm:$0xff] }
 0x515   : > { %v7927_v39 = vpop.eup %7926  ;;  %v3989_v55 = vadd.f32 %v3957_v32, %v3921_v45  ;;  %7273 = vmatmul.mubr.msk.f32.gmra.mrb[116].mxu1 %vm4499_vm7, %v7925_v58  ;;  %v7426_v2 = vpack.c.bf16 %v4858_v30, %v4857_v29  ;;  %v11649_v8 = vld [vmem:[#allocation25_spill] sm:$0xff]  ;;  %7425 = vmatpush3.bf16.msra.mxu0 %v7422_v56  ;;  %7938 = vtanh.f32 %v4447_v34  ;;  %v11651_v30 = vld [vmem:[#allocation28_spill] sm:$0xff]  ;;  %v11653_v34 = vld [vmem:[#allocation58_spill] sm:$0xff] }
 0x516   : > { %v7929_v9 = vpop.eup %7928  ;;  %v4410_v31 = vadd.f32 %v4378_v10, %v4214_v37  ;;  %v10272_v16 = vpop.permute.xlu1 %3343  ;;  %7211 = vmatprep.mubr.msk.f32.mxu0 %vm818_vm4, %v7927_v39  ;;  %v3855_v51 = vmul.f32 %v9728_v40, %v11649_v8  ;;  %v11650_v10 = vld [vmem:[#allocation59_spill] sm:$0xff]  ;;  %v3430_v37 = vadd.f32 %v10055_v60, %v3398_v21  ;;  %v3890_v8 = vmul.f32 %v9717_v6, %v11652_v26  ;;  %v11654_v26 = vld [vmem:[#allocation61_spill] sm:$0xff] }
 0x517   : > { %11647 = vst [vmem:[#allocation41_spill] sm:$0xff] %v10272_v16  ;;  %v4217_v48 = vadd.f32 %v4185_v52, %v3989_v55  ;;  %v3397_v45 = vmul.f32 %v10040_v62, %v10272_v16  ;;  %v3956_v32 = vmul.f32 %v9743_v43, %v10272_v16  ;;  %7212 = vmatmul.mubr.msk.f32.gmra.mrb[86].mxu0 %vm818_vm4, %v7929_v9  ;;  %v4137_v16 = vpop.permute.xlu0 %4136  ;;  %v4860_v21 = vld [vmem:[%s11374_s4 + $0xf0] sm:$0xff] }
 0x518   : > { %v4381_v39 = vmul.f32 %v9760_v14, %v11650_v10  ;;  %v4446_v58 = vadd.f32 %v9801_v24, %v4410_v31  ;;  %v4184_v52 = vmul.f32 %v9754_v63, %v4127_v17  ;;  %7427 = vmatprep.subr.bf16.mxu0 %v7426_v2  ;;  %v3854_v9 = vmul.f32 %v9728_v40, %v11651_v30  ;;  %v4859_v17 = vld [vmem:[%s11374_s4 + $0xe8] sm:$0xff] }
 0x519   : > { %v3429_v55 = vadd.f32 %v10055_v60, %v3397_v45  ;;  %v3988_v29 = vadd.f32 %v3956_v32, %v3920_v19  ;;  %v4380_v19 = vmul.f32 %v9760_v14, %v11653_v34  ;;  %v3923_v31 = vadd.f32 %v3891_v15, %v3855_v51  ;;  %7429 = vmatpush3.bf16.msra.mxu0 %v7426_v2 }
 0x51a   : > { %7940 = vtanh.f32 %v4446_v58  ;;  %v4413_v10 = vadd.f32 %v4381_v39, %v4217_v48  ;;  %v10294_v24 = vpop.permute.xlu1 %3358  ;;  %v7430_v58 = vpack.c.bf16 %v4860_v21, %v4859_v17  ;;  %v4187_v13 = vmul.f32 %v9754_v63, %v11654_v26 }
 0x51b   : > { %v7931_v56 = vpop.eup %7930  ;;  %7942 = vtanh.f32 %v3429_v55  ;;  %v4216_v45 = vadd.f32 %v4184_v52, %v3988_v29  ;;  %v3400_v48 = vmul.f32 %v10040_v62, %v10294_v24  ;;  %v3959_v39 = vmul.f32 %v9743_v43, %v10294_v24  ;;  %v4147_v21 = vpop.permute.xlu0 %4146 }
 0x51c   : > { %v7933_v32 = vpop.eup %7932  ;;  %7944 = vtanh.f32 %v3430_v37  ;;  %7275 = vmatprep.mubr.msk.f32.mxu1 %vm4499_vm7, %v7931_v56  ;;  %v3922_v51 = vadd.f32 %v3890_v8, %v3854_v9  ;;  %v10315_v37 = vld [vmem:[%s11374_s4 + $0x68] ss:$0 sm:$0xff]  ;;  %7431 = vmatprep.subr.bf16.mxu0 %v7430_v58  ;;  %v3893_v2 = vmul.f32 %v9717_v6, %v9752_v38 }
 0x51d   : > { %v7935_v30 = vpop.eup %7934  ;;  %v4412_v34 = vadd.f32 %v4380_v19, %v4216_v45  ;;  %7276 = vmatmul.mubr.msk.f32.gmra.mrb[118].mxu1 %vm4499_vm7, %v7933_v32  ;;  %v4449_v52 = vadd.f32 %v10315_v37, %v4413_v10  ;;  %v3991_v55 = vadd.f32 %v3959_v39, %v3923_v31  ;;  %v11655_v10 = vld [vmem:[#allocation27_spill] sm:$0xff]  ;;  %v3432_v56 = vadd.f32 %v10055_v60, %v3400_v48  ;;  %v11656_v39 = vld [vmem:[#allocation60_spill] sm:$0xff] }
 0x51e   : > { %v7937_v15 = vpop.eup %7936  ;;  %v10318_v29 = vpop.permute.xlu1 %3353  ;;  %7214 = vmatprep.mubr.msk.f32.mxu0 %vm818_vm4, %v7935_v30  ;;  %v3857_v17 = vmul.f32 %v9728_v40, %v11655_v10  ;;  %v4383_v30 = vmul.f32 %v9760_v14, %v9790_v28  ;;  %7433 = vmatpush3.bf16.msra.mxu0 %v7430_v58  ;;  %v4186_v31 = vmul.f32 %v9754_v63, %v4137_v16 }
 0x51f   : > { %v4448_v26 = vadd.f32 %v10315_v37, %v4412_v34  ;;  %v3399_v8 = vmul.f32 %v10040_v62, %v10318_v29  ;;  %v3958_v9 = vmul.f32 %v9743_v43, %v10318_v29  ;;  %7215 = vmatmul.mubr.msk.f32.gmra.mrb[88].mxu0 %vm818_vm4, %v7937_v15  ;;  %v4219_v19 = vadd.f32 %v4187_v13, %v3991_v55  ;;  %v7939_v38 = vpop.eup %7938  ;;  %v11657_v55 = vld [vmem:[#allocation29_spill] sm:$0xff] }
 0x520   : > { %v4382_v34 = vmul.f32 %v9760_v14, %v11656_v39  ;;  %v3892_v15 = vmul.f32 %v9717_v6, %v9740_v18  ;;  %v3925_v48 = vadd.f32 %v3893_v2, %v3857_v17  ;;  %v4348_v6 = vpop.permute.xlu0 %4347 }
 0x521   : > { %7946 = vtanh.f32 %v4448_v26  ;;  %v3431_v45 = vadd.f32 %v10055_v60, %v3399_v8  ;;  %v3990_v32 = vadd.f32 %v3958_v9, %v3922_v51  ;;  %v4415_v10 = vadd.f32 %v4383_v30, %v4219_v19 }
 0x522   : > { %7948 = vtanh.f32 %v4449_v52  ;;  %v10340_v28 = vpop.permute.xlu1 %3368  ;;  %v3856_v51 = vmul.f32 %v9728_v40, %v11657_v55  ;;  %v4189_v30 = vmul.f32 %v9754_v63, %v9805_v54 }
 0x523   : > { %7950 = vtanh.f32 %v3431_v45  ;;  %v4218_v13 = vadd.f32 %v4186_v31, %v3990_v32  ;;  %v3961_v16 = vmul.f32 %v9743_v43, %v10340_v28  ;;  %v3402_v26 = vmul.f32 %v10040_v62, %v10340_v28 }
 0x524   : > { %v7941_v58 = vpop.eup %7940  ;;  %7952 = vtanh.f32 %v3432_v56  ;;  %v3924_v17 = vadd.f32 %v3892_v15, %v3856_v51  ;;  %v4451_v19 = vadd.f32 %v10315_v37, %v4415_v10  ;;  %v4385_v32 = vmul.f32 %v9760_v14, %v4348_v6 }
 0x525   : > { %v7943_v52 = vpop.eup %7942  ;;  %v4414_v8 = vadd.f32 %v4382_v34, %v4218_v13  ;;  %7278 = vmatprep.mubr.msk.f32.mxu1 %vm4499_vm7, %v7941_v58  ;;  %v3993_v9 = vadd.f32 %v3961_v16, %v3925_v48  ;;  %v3434_v54 = vadd.f32 %v10055_v60, %v3402_v26 }
 0x526   : > { %v7945_v2 = vpop.eup %7944  ;;  %7279 = vmatmul.mubr.msk.f32.gmra.mrb[120].mxu1 %vm4499_vm7, %v7939_v38  ;;  %v10353_v40 = vpop.permute.xlu1 %3363  ;;  %7217 = vmatprep.mubr.msk.f32.mxu0 %vm818_vm4, %v7943_v52  ;;  %v4188_v38 = vmul.f32 %v9754_v63, %v4147_v21 }
 0x527   : > { %v4450_v56 = vadd.f32 %v10315_v37, %v4414_v8  ;;  %v3401_v31 = vmul.f32 %v10040_v62, %v10353_v40  ;;  %v3960_v45 = vmul.f32 %v9743_v43, %v10353_v40  ;;  %7218 = vmatmul.mubr.msk.f32.gmra.mrb[90].mxu0 %vm818_vm4, %v7945_v2  ;;  %v4221_v10 = vadd.f32 %v4189_v30, %v3993_v9  ;;  %v10382_v2 = vld [vmem:[%s11374_s4 + $0x58] ss:$0 sm:$0xff] }
 0x529   : > { %7954 = vtanh.f32 %v4450_v56  ;;  %v3433_v39 = vadd.f32 %v10055_v60, %v3401_v31  ;;  %v3992_v34 = vadd.f32 %v3960_v45, %v3924_v17  ;;  %v4417_v62 = vadd.f32 %v4385_v32, %v4221_v10 }
 0x52a   : > { %7956 = vtanh.f32 %v4451_v19 }
 0x52b   : > { %v7947_v15 = vpop.eup %7946  ;;  %7958 = vtanh.f32 %v3433_v39  ;;  %v4344_v48 = vpop.permute.xlu1 %4343  ;;  %v4220_v13 = vadd.f32 %v4188_v38, %v3992_v34  ;;  %v4453_v60 = vadd.f32 %v10315_v37, %v4417_v62 }
 0x52c   : > { %v7949_v43 = vpop.eup %7948  ;;  %7960 = vtanh.f32 %v3434_v54  ;;  %v4384_v16 = vmul.f32 %v9760_v14, %v4344_v48  ;;  %7281 = vmatprep.mubr.msk.f32.mxu1 %vm4499_vm7, %v7947_v15 }
 0x52d   : > { %v7951_v58 = vpop.eup %7950  ;;  %7282 = vmatmul.mubr.msk.f32.gmra.mrb[122].mxu1 %vm4499_vm7, %v7949_v43 }
 0x52e   : > { %v7953_v63 = vpop.eup %7952  ;;  %v4416_v21 = vadd.f32 %v4384_v16, %v4220_v13  ;;  %7220 = vmatprep.mubr.msk.f32.mxu0 %vm818_vm4, %v7951_v58 }
 0x52f   : > { %7221 = vmatmul.mubr.msk.f32.gmra.mrb[92].mxu0 %vm818_vm4, %v7953_v63 }
 0x530   : > { %v4452_v51 = vadd.f32 %v10315_v37, %v4416_v21 }
 0x532   : > { %7962 = vtanh.f32 %v4452_v51 }
 0x533   : > { %v7955_v26 = vpop.eup %7954  ;;  %7964 = vtanh.f32 %v4453_v60 }
 0x534   : > { %v7957_v6 = vpop.eup %7956  ;;  %7284 = vmatprep.mubr.msk.f32.mxu1 %vm4499_vm7, %v7955_v26 }
 0x535   : > { %v7959_v14 = vpop.eup %7958  ;;  %7285 = vmatmul.mubr.msk.f32.gmra.mrb[124].mxu1 %vm4499_vm7, %v7957_v6 }
 0x536   : > { %v7961_v52 = vpop.eup %7960  ;;  %7223 = vmatprep.mubr.msk.f32.mxu0 %vm818_vm4, %v7959_v14 }
 0x537   : > { %7224 = vmatmul.mubr.msk.f32.gmra.mrb[94].mxu0 %vm818_vm4, %v7961_v52 }
 0x53c   : > { %v7963_v8 = vpop.eup %7962 }
 0x53d   : > { %v7965_v9 = vpop.eup %7964  ;;  %7287 = vmatprep.mubr.msk.f32.mxu1 %vm4499_vm7, %v7963_v8 }
 0x53e   : > { %7288 = vmatmul.mubr.msk.f32.gmra.mrb[126].mxu1 %vm4499_vm7, %v7965_v9 }
 0x54a   : > { %v7072_v37 = vpop.f32.mrb[32].mxu0 }
 0x54b   : > { %v2513_v17 = vadd.f32 %v10382_v2, %v7072_v37  ;;  %v2507_v30 = vpop.f32.mrb[33].mxu0 }
 0x54c   : > { %v2508_v19 = vadd.f32 %v10382_v2, %v2507_v30 }
 0x54d   : > { %5455 = vrot.lane.b32.xlu0 %v2513_v17, %s8185_s6 }
 0x54e   : > { %5453 = vrot.lane.b32.xlu1 %v2508_v19, %s8185_s6  ;;  %v7075_v56 = vpop.f32.mrb[34].mxu0 }
 0x54f   : > { %v2523_v31 = vadd.f32 %v10382_v2, %v7075_v56  ;;  %v2517_v45 = vpop.f32.mrb[35].mxu0 }
 0x550   : > { %v2518_v10 = vadd.f32 %v10382_v2, %v2517_v45 }
 0x552   : > { %5459 = vrot.lane.b32.xlu1 %v2523_v31, %s8185_s6  ;;  %v7078_v32 = vpop.f32.mrb[36].mxu0 }
 0x553   : > { %v2527_v54 = vpop.f32.mrb[37].mxu0  ;;  %v2533_v15 = vadd.f32 %v10382_v2, %v7078_v32 }
 0x554   : > { %v2528_v38 = vadd.f32 %v10382_v2, %v2527_v54 }
 0x556   : > { %5457 = vrot.lane.b32.xlu1 %v2518_v10, %s8185_s6  ;;  %5461 = vrot.lane.b32.xlu0 %v2528_v38, %s8185_s6  ;;  %v7081_v39 = vpop.f32.mrb[38].mxu0 }
 0x557   : > { %v2537_v34 = vpop.f32.mrb[39].mxu0  ;;  %v2543_v43 = vadd.f32 %v10382_v2, %v7081_v39 }
 0x558   : > { %v2538_v62 = vadd.f32 %v10382_v2, %v2537_v34 }
 0x55a   : > { %5463 = vrot.lane.b32.xlu1 %v2533_v15, %s8185_s6  ;;  %5465 = vrot.lane.b32.xlu0 %v2538_v62, %s8185_s6  ;;  %v7084_v48 = vpop.f32.mrb[40].mxu0 }
 0x55b   : > { %v2547_v13 = vpop.f32.mrb[41].mxu0  ;;  %v2553_v21 = vadd.f32 %v10382_v2, %v7084_v48 }
 0x55c   : > { %v2548_v16 = vadd.f32 %v10382_v2, %v2547_v13 }
 0x55e   : > { %5467 = vrot.lane.b32.xlu1 %v2543_v43, %s8185_s6  ;;  %5469 = vrot.lane.b32.xlu0 %v2548_v16, %s8185_s6  ;;  %v7087_v58 = vpop.f32.mrb[42].mxu0 }
 0x55f   : > { %v2557_v63 = vpop.f32.mrb[43].mxu0  ;;  %v2563_v6 = vadd.f32 %v10382_v2, %v7087_v58 }
 0x560   : > { %v2558_v60 = vadd.f32 %v10382_v2, %v2557_v63 }
 0x562   : > { %5471 = vrot.lane.b32.xlu1 %v2553_v21, %s8185_s6  ;;  %5473 = vrot.lane.b32.xlu0 %v2558_v60, %s8185_s6  ;;  %v7090_v51 = vpop.f32.mrb[44].mxu0 }
 0x563   : > { %v2567_v26 = vpop.f32.mrb[45].mxu0  ;;  %v2573_v9 = vadd.f32 %v10382_v2, %v7090_v51 }
 0x564   : > { %v2568_v14 = vadd.f32 %v10382_v2, %v2567_v26 }
 0x566   : > { %5475 = vrot.lane.b32.xlu1 %v2563_v6, %s8185_s6  ;;  %5477 = vrot.lane.b32.xlu0 %v2568_v14, %s8185_s6  ;;  %v7093_v52 = vpop.f32.mrb[46].mxu0 }
 0x567   : > { %v2577_v8 = vpop.f32.mrb[47].mxu0  ;;  %v2583_v19 = vadd.f32 %v10382_v2, %v7093_v52 }
 0x568   : > { %v2578_v37 = vadd.f32 %v10382_v2, %v2577_v8 }
 0x56a   : > { %5479 = vrot.lane.b32.xlu1 %v2573_v9, %s8185_s6  ;;  %5481 = vrot.lane.b32.xlu0 %v2578_v37, %s8185_s6  ;;  %v7096_v17 = vpop.f32.mrb[48].mxu0 }
 0x56b   : > { %v2587_v30 = vpop.f32.mrb[49].mxu0  ;;  %v2593_v32 = vadd.f32 %v10382_v2, %v7096_v17 }
 0x56c   : > { %v2588_v56 = vadd.f32 %v10382_v2, %v2587_v30 }
 0x56e   : > { %5483 = vrot.lane.b32.xlu1 %v2583_v19, %s8185_s6  ;;  %5485 = vrot.lane.b32.xlu0 %v2588_v56, %s8185_s6  ;;  %v7099_v31 = vpop.f32.mrb[50].mxu0 }
 0x56f   : > { %v2597_v45 = vpop.f32.mrb[51].mxu0  ;;  %v2603_v39 = vadd.f32 %v10382_v2, %v7099_v31 }
 0x570   : > { %v2598_v54 = vadd.f32 %v10382_v2, %v2597_v45 }
 0x572   : > { %5487 = vrot.lane.b32.xlu1 %v2593_v32, %s8185_s6  ;;  %5489 = vrot.lane.b32.xlu0 %v2598_v54, %s8185_s6  ;;  %v7102_v10 = vpop.f32.mrb[52].mxu0  ;;  %v10453_v32 = vld [vmem:[%s11374_s4 + $0xb0] ss:$0 sm:$0xff] }
 0x573   : > { %v2607_v38 = vpop.f32.mrb[53].mxu0  ;;  %v2613_v48 = vadd.f32 %v10382_v2, %v7102_v10 }
 0x574   : > { %v2608_v34 = vadd.f32 %v10382_v2, %v2607_v38 }
 0x576   : > { %5491 = vrot.lane.b32.xlu1 %v2603_v39, %s8185_s6  ;;  %5493 = vrot.lane.b32.xlu0 %v2608_v34, %s8185_s6  ;;  %v7105_v15 = vpop.f32.mrb[54].mxu0 }
 0x577   : > { %v2617_v62 = vpop.f32.mrb[55].mxu0  ;;  %v2623_v58 = vadd.f32 %v10382_v2, %v7105_v15 }
 0x578   : > { %v2618_v13 = vadd.f32 %v10382_v2, %v2617_v62 }
 0x57a   : > { %5495 = vrot.lane.b32.xlu1 %v2613_v48, %s8185_s6  ;;  %5497 = vrot.lane.b32.xlu0 %v2618_v13, %s8185_s6  ;;  %v7108_v43 = vpop.f32.mrb[56].mxu0 }
 0x57b   : > { %v2627_v16 = vpop.f32.mrb[57].mxu0  ;;  %v2633_v51 = vadd.f32 %v10382_v2, %v7108_v43 }
 0x57c   : > { %v2628_v63 = vadd.f32 %v10382_v2, %v2627_v16 }
 0x57e   : > { %5499 = vrot.lane.b32.xlu1 %v2623_v58, %s8185_s6  ;;  %5501 = vrot.lane.b32.xlu0 %v2628_v63, %s8185_s6  ;;  %v7111_v21 = vpop.f32.mrb[58].mxu0 }
 0x57f   : > { %v2637_v60 = vpop.f32.mrb[59].mxu0  ;;  %v2643_v52 = vadd.f32 %v10382_v2, %v7111_v21 }
 0x580   : > { %v2638_v26 = vadd.f32 %v10382_v2, %v2637_v60 }
 0x582   : > { %5503 = vrot.lane.b32.xlu1 %v2633_v51, %s8185_s6  ;;  %5505 = vrot.lane.b32.xlu0 %v2638_v26, %s8185_s6  ;;  %v7114_v6 = vpop.f32.mrb[60].mxu0 }
 0x583   : > { %v2647_v14 = vpop.f32.mrb[61].mxu0  ;;  %v2653_v17 = vadd.f32 %v10382_v2, %v7114_v6 }
 0x584   : > { %v2648_v8 = vadd.f32 %v10382_v2, %v2647_v14 }
 0x586   : > { %5507 = vrot.lane.b32.xlu1 %v2643_v52, %s8185_s6  ;;  %5509 = vrot.lane.b32.xlu0 %v2648_v8, %s8185_s6  ;;  %v7117_v9 = vpop.f32.mrb[62].mxu0 }
 0x587   : > { %v2657_v37 = vpop.f32.mrb[63].mxu0  ;;  %v2663_v31 = vadd.f32 %v10382_v2, %v7117_v9 }
 0x588   : > { %v2658_v30 = vadd.f32 %v10382_v2, %v2657_v37 }
 0x58a   : > { %5511 = vrot.lane.b32.xlu1 %v2653_v17, %s8185_s6  ;;  %5513 = vrot.lane.b32.xlu0 %v2658_v30, %s8185_s6  ;;  %v7180_v19 = vpop.f32.mrb[64].mxu0 }
 0x58b   : > { %v3629_v56 = vpop.f32.mrb[65].mxu0  ;;  %v3635_v54 = vadd.f32 %v10382_v2, %v7180_v19 }
 0x58c   : > { %v3630_v45 = vadd.f32 %v10382_v2, %v3629_v56 }
 0x58e   : > { %5515 = vrot.lane.b32.xlu1 %v2663_v31, %s8185_s6  ;;  %5614 = vrot.lane.b32.xlu0 %v3630_v45, %s8186_s7 }
 0x591   : > { %v7244_v10 = vpop.f32.mrb[96].mxu1 }
 0x592   : > { %v4668_v38 = vadd.f32 %v7244_v10, %v10453_v32  ;;  %v4662_v39 = vpop.f32.mrb[97].mxu1  ;;  %5616 = vrot.lane.b32.xlu1 %v3635_v54, %s8186_s7 }
 0x593   : > { %v4663_v34 = vadd.f32 %v10453_v32, %v4662_v39 }
 0x595   : > { %7966 = vtanh.f32 %v4663_v34 }
 0x596   : > { %7968 = vtanh.f32 %v4668_v38 }
 0x59a   : > { %v7183_v15 = vpop.f32.mrb[66].mxu0 }
 0x59b   : > { %v3645_v62 = vadd.f32 %v10382_v2, %v7183_v15  ;;  %v3639_v48 = vpop.f32.mrb[67].mxu0 }
 0x59c   : > { %v3640_v13 = vadd.f32 %v10382_v2, %v3639_v48 }
 0x59d   : > { %5620 = vrot.lane.b32.xlu1 %v3645_v62, %s8186_s7 }
 0x59e   : > { %5618 = vrot.lane.b32.xlu0 %v3640_v13, %s8186_s7 }
 0x59f   : > { %v7967_v43 = vpop.eup %7966 }
 0x5a0   : > { %v7969_v16 = vpop.eup %7968  ;;  %7306 = vmatprep.mubr.msk.f32.mxu0 %vm4499_vm7, %v7967_v43  ;;  %v7247_v58 = vpop.f32.mrb[98].mxu1 }
 0x5a1   : > { %v4678_v63 = vadd.f32 %v7247_v58, %v10453_v32  ;;  %7307 = vmatmul.mubr.msk.f32.vlgmr.msra.gmra.mrb[96].mxu0 %vm4499_vm7, %v7969_v16  ;;  %v4672_v21 = vpop.f32.mrb[99].mxu1 }
 0x5a2   : > { %v4673_v60 = vadd.f32 %v10453_v32, %v4672_v21  ;;  %v7186_v51 = vpop.f32.mrb[68].mxu0 }
 0x5a3   : > { %v3655_v26 = vadd.f32 %v10382_v2, %v7186_v51  ;;  %v3649_v6 = vpop.f32.mrb[69].mxu0 }
 0x5a4   : > { %7970 = vtanh.f32 %v4673_v60  ;;  %v3650_v14 = vadd.f32 %v10382_v2, %v3649_v6 }
 0x5a5   : > { %7972 = vtanh.f32 %v4678_v63  ;;  %5624 = vrot.lane.b32.xlu1 %v3655_v26, %s8186_s7 }
 0x5a6   : > { %5622 = vrot.lane.b32.xlu0 %v3650_v14, %s8186_s7 }
 0x5a8   : > { %v7250_v52 = vpop.f32.mrb[100].mxu1 }
 0x5a9   : > { %v4688_v8 = vadd.f32 %v7250_v52, %v10453_v32  ;;  %v4682_v9 = vpop.f32.mrb[101].mxu1 }
 0x5aa   : > { %v4683_v37 = vadd.f32 %v10453_v32, %v4682_v9  ;;  %v7189_v17 = vpop.f32.mrb[70].mxu0 }
 0x5ab   : > { %v3665_v30 = vadd.f32 %v10382_v2, %v7189_v17  ;;  %v3659_v19 = vpop.f32.mrb[71].mxu0 }
 0x5ac   : > { %7974 = vtanh.f32 %v4683_v37  ;;  %v3660_v56 = vadd.f32 %v10382_v2, %v3659_v19 }
 0x5ad   : > { %7976 = vtanh.f32 %v4688_v8  ;;  %5628 = vrot.lane.b32.xlu1 %v3665_v30, %s8186_s7 }
 0x5ae   : > { %v7971_v31 = vpop.eup %7970  ;;  %5626 = vrot.lane.b32.xlu0 %v3660_v56, %s8186_s7 }
 0x5af   : > { %v7973_v45 = vpop.eup %7972  ;;  %7309 = vmatprep.mubr.msk.f32.mxu0 %vm4499_vm7, %v7971_v31 }
 0x5b0   : > { %7310 = vmatmul.mubr.msk.f32.gmra.mrb[98].mxu0 %vm4499_vm7, %v7973_v45  ;;  %v7253_v54 = vpop.f32.mrb[102].mxu1 }
 0x5b1   : > { %v4698_v10 = vadd.f32 %v7253_v54, %v10453_v32  ;;  %v4692_v38 = vpop.f32.mrb[103].mxu1 }
 0x5b2   : > { %v7192_v39 = vpop.f32.mrb[72].mxu0  ;;  %v4693_v34 = vadd.f32 %v10453_v32, %v4692_v38 }
 0x5b3   : > { %v3675_v15 = vadd.f32 %v10382_v2, %v7192_v39  ;;  %v3669_v62 = vpop.f32.mrb[73].mxu0 }
 0x5b4   : > { %v3670_v48 = vadd.f32 %v10382_v2, %v3669_v62  ;;  %7978 = vtanh.f32 %v4693_v34 }
 0x5b5   : > { %5632 = vrot.lane.b32.xlu1 %v3675_v15, %s8186_s7  ;;  %7980 = vtanh.f32 %v4698_v10 }
 0x5b6   : > { %v7975_v13 = vpop.eup %7974  ;;  %5630 = vrot.lane.b32.xlu0 %v3670_v48, %s8186_s7 }
 0x5b7   : > { %v7977_v43 = vpop.eup %7976  ;;  %7312 = vmatprep.mubr.msk.f32.mxu0 %vm4499_vm7, %v7975_v13 }
 0x5b8   : > { %v7256_v16 = vpop.f32.mrb[104].mxu1  ;;  %7313 = vmatmul.mubr.msk.f32.gmra.mrb[100].mxu0 %vm4499_vm7, %v7977_v43 }
 0x5b9   : > { %v4708_v58 = vadd.f32 %v7256_v16, %v10453_v32  ;;  %v4702_v63 = vpop.f32.mrb[105].mxu1 }
 0x5ba   : > { %v4703_v21 = vadd.f32 %v10453_v32, %v4702_v63  ;;  %v7195_v60 = vpop.f32.mrb[74].mxu0 }
 0x5bb   : > { %v3685_v51 = vadd.f32 %v10382_v2, %v7195_v60  ;;  %v3679_v26 = vpop.f32.mrb[75].mxu0 }
 0x5bc   : > { %7982 = vtanh.f32 %v4703_v21  ;;  %v3680_v6 = vadd.f32 %v10382_v2, %v3679_v26 }
 0x5bd   : > { %7984 = vtanh.f32 %v4708_v58  ;;  %5636 = vrot.lane.b32.xlu1 %v3685_v51, %s8186_s7 }
 0x5be   : > { %5634 = vrot.lane.b32.xlu0 %v3680_v6, %s8186_s7  ;;  %v7979_v14 = vpop.eup %7978 }
 0x5bf   : > { %v5456_v52 = vpop.permute.xlu0 %5455  ;;  %v7981_v8 = vpop.eup %7980  ;;  %7315 = vmatprep.mubr.msk.f32.mxu0 %vm4499_vm7, %v7979_v14 }
 0x5c0   : > { %5551 = vst.msk [vmem:[%s8986_s23 + $0x8] sm:$0xff] %vm5549_vm8, %v5456_v52  ;;  %v5454_v9 = vpop.permute.xlu1 %5453  ;;  %v7259_v37 = vpop.f32.mrb[106].mxu1  ;;  %7316 = vmatmul.mubr.msk.f32.gmra.mrb[102].mxu0 %vm4499_vm7, %v7981_v8 }
 0x5c1   : > { %5550 = vst.msk [vmem:[%s8986_s23] sm:$0xff] %vm5549_vm8, %v5454_v9  ;;  %v4718_v17 = vadd.f32 %v7259_v37, %v10453_v32  ;;  %v4712_v30 = vpop.f32.mrb[107].mxu1 }
 0x5c2   : > { %v4713_v19 = vadd.f32 %v10453_v32, %v4712_v30  ;;  %v7198_v56 = vpop.f32.mrb[76].mxu0 }
 0x5c3   : > { %v3695_v31 = vadd.f32 %v10382_v2, %v7198_v56  ;;  %v3689_v45 = vpop.f32.mrb[77].mxu0 }
 0x5c4   : > { %7986 = vtanh.f32 %v4713_v19  ;;  %v3690_v54 = vadd.f32 %v10382_v2, %v3689_v45  ;;  %v5460_v10 = vpop.permute.xlu1 %5459 }
 0x5c5   : > { %7988 = vtanh.f32 %v4718_v17  ;;  %5553 = vst.msk [vmem:[%s8986_s23 + $0x18] sm:$0xff] %vm5549_vm8, %v5460_v10  ;;  %5640 = vrot.lane.b32.xlu1 %v3695_v31, %s8186_s7 }
 0x5c6   : > { %v7983_v38 = vpop.eup %7982  ;;  %5638 = vrot.lane.b32.xlu0 %v3690_v54, %s8186_s7 }
 0x5c7   : > { %v7985_v39 = vpop.eup %7984  ;;  %7318 = vmatprep.mubr.msk.f32.mxu0 %vm4499_vm7, %v7983_v38 }
 0x5c8   : > { %v5458_v34 = vpop.permute.xlu1 %5457  ;;  %7319 = vmatmul.mubr.msk.f32.gmra.mrb[104].mxu0 %vm4499_vm7, %v7985_v39  ;;  %v5462_v15 = vpop.permute.xlu0 %5461 }
 0x5c9   : > { %5552 = vst.msk [vmem:[%s8986_s23 + $0x10] sm:$0xff] %vm5549_vm8, %v5458_v34  ;;  %v7262_v62 = vpop.f32.mrb[108].mxu1  ;;  %5554 = vst.msk [vmem:[%s8986_s23 + $0x20] sm:$0xff] %vm5549_vm8, %v5462_v15 }
 0x5ca   : > { %v4728_v48 = vadd.f32 %v7262_v62, %v10453_v32  ;;  %v4722_v13 = vpop.f32.mrb[109].mxu1  ;;  %v7201_v43 = vpop.f32.mrb[78].mxu0 }
 0x5cb   : > { %v4723_v16 = vadd.f32 %v10453_v32, %v4722_v13  ;;  %v3705_v58 = vadd.f32 %v10382_v2, %v7201_v43  ;;  %v3699_v63 = vpop.f32.mrb[79].mxu0 }
 0x5cc   : > { %v3700_v21 = vadd.f32 %v10382_v2, %v3699_v63  ;;  %v5464_v60 = vpop.permute.xlu1 %5463  ;;  %v5466_v51 = vpop.permute.xlu0 %5465 }
 0x5cd   : > { %7990 = vtanh.f32 %v4723_v16  ;;  %5555 = vst.msk [vmem:[%s8986_s23 + $0x28] sm:$0xff] %vm5549_vm8, %v5464_v60  ;;  %5556 = vst.msk [vmem:[%s8986_s23 + $0x30] sm:$0xff] %vm5549_vm8, %v5466_v51  ;;  %5644 = vrot.lane.b32.xlu1 %v3705_v58, %s8186_s7 }
 0x5ce   : > { %v7987_v26 = vpop.eup %7986  ;;  %7992 = vtanh.f32 %v4728_v48  ;;  %5642 = vrot.lane.b32.xlu0 %v3700_v21, %s8186_s7 }
 0x5cf   : > { %v7989_v6 = vpop.eup %7988  ;;  %7321 = vmatprep.mubr.msk.f32.mxu0 %vm4499_vm7, %v7987_v26 }
 0x5d0   : > { %v5468_v14 = vpop.permute.xlu1 %5467  ;;  %v7265_v52 = vpop.f32.mrb[110].mxu1  ;;  %7322 = vmatmul.mubr.msk.f32.gmra.mrb[106].mxu0 %vm4499_vm7, %v7989_v6 }
 0x5d1   : > { %5557 = vst.msk [vmem:[%s8986_s23 + $0x38] sm:$0xff] %vm5549_vm8, %v5468_v14  ;;  %v4738_v8 = vadd.f32 %v7265_v52, %v10453_v32  ;;  %v5470_v9 = vpop.permute.xlu0 %5469  ;;  %v4732_v37 = vpop.f32.mrb[111].mxu1 }
 0x5d2   : > { %5558 = vst.msk [vmem:[%s8986_s23 + $0x40] sm:$0xff] %vm5549_vm8, %v5470_v9  ;;  %v4733_v17 = vadd.f32 %v10453_v32, %v4732_v37  ;;  %v7204_v30 = vpop.f32.mrb[80].mxu0 }
 0x5d3   : > { %v3715_v19 = vadd.f32 %v10382_v2, %v7204_v30  ;;  %v3709_v56 = vpop.f32.mrb[81].mxu0 }
 0x5d4   : > { %7994 = vtanh.f32 %v4733_v17  ;;  %v3710_v31 = vadd.f32 %v10382_v2, %v3709_v56  ;;  %v5472_v45 = vpop.permute.xlu1 %5471 }
 0x5d5   : > { %7996 = vtanh.f32 %v4738_v8  ;;  %5559 = vst.msk [vmem:[%s8986_s23 + $0x48] sm:$0xff] %vm5549_vm8, %v5472_v45  ;;  %v5474_v54 = vpop.permute.xlu0 %5473  ;;  %5648 = vrot.lane.b32.xlu1 %v3715_v19, %s8186_s7 }
 0x5d6   : > { %5560 = vst.msk [vmem:[%s8986_s23 + $0x50] sm:$0xff] %vm5549_vm8, %v5474_v54  ;;  %5646 = vrot.lane.b32.xlu0 %v3710_v31, %s8186_s7 }
 0x5d7   : > { %v7991_v10 = vpop.eup %7990 }
 0x5d8   : > { %v7993_v38 = vpop.eup %7992  ;;  %7324 = vmatprep.mubr.msk.f32.mxu0 %vm4499_vm7, %v7991_v10  ;;  %v5476_v39 = vpop.permute.xlu1 %5475 }
 0x5d9   : > { %v7268_v34 = vpop.f32.mrb[112].mxu1  ;;  %5561 = vst.msk [vmem:[%s8986_s23 + $0x58] sm:$0xff] %vm5549_vm8, %v5476_v39  ;;  %7325 = vmatmul.mubr.msk.f32.gmra.mrb[108].mxu0 %vm4499_vm7, %v7993_v38  ;;  %v5478_v62 = vpop.permute.xlu0 %5477 }
 0x5da   : > { %v4748_v15 = vadd.f32 %v7268_v34, %v10453_v32  ;;  %v4742_v48 = vpop.f32.mrb[113].mxu1  ;;  %5562 = vst.msk [vmem:[%s8986_s23 + $0x60] sm:$0xff] %vm5549_vm8, %v5478_v62  ;;  %v7207_v43 = vpop.f32.mrb[82].mxu0 }
 0x5db   : > { %v4743_v13 = vadd.f32 %v10453_v32, %v4742_v48  ;;  %v3725_v16 = vadd.f32 %v10382_v2, %v7207_v43  ;;  %v3719_v58 = vpop.f32.mrb[83].mxu0 }
 0x5dc   : > { %v3720_v63 = vadd.f32 %v10382_v2, %v3719_v58  ;;  %v5480_v21 = vpop.permute.xlu1 %5479 }
 0x5dd   : > { %7998 = vtanh.f32 %v4743_v13  ;;  %5563 = vst.msk [vmem:[%s8986_s23 + $0x68] sm:$0xff] %vm5549_vm8, %v5480_v21  ;;  %v5482_v60 = vpop.permute.xlu0 %5481  ;;  %5652 = vrot.lane.b32.xlu1 %v3725_v16, %s8186_s7 }
 0x5de   : > { %8000 = vtanh.f32 %v4748_v15  ;;  %v7995_v51 = vpop.eup %7994  ;;  %5564 = vst.msk [vmem:[%s8986_s23 + $0x70] sm:$0xff] %vm5549_vm8, %v5482_v60  ;;  %5650 = vrot.lane.b32.xlu0 %v3720_v63, %s8186_s7 }
 0x5df   : > { %v7997_v26 = vpop.eup %7996  ;;  %7327 = vmatprep.mubr.msk.f32.mxu0 %vm4499_vm7, %v7995_v51 }
 0x5e0   : > { %v5484_v6 = vpop.permute.xlu1 %5483  ;;  %7328 = vmatmul.mubr.msk.f32.gmra.mrb[110].mxu0 %vm4499_vm7, %v7997_v26 }
 0x5e1   : > { %5565 = vst.msk [vmem:[%s8986_s23 + $0x78] sm:$0xff] %vm5549_vm8, %v5484_v6  ;;  %v7271_v14 = vpop.f32.mrb[114].mxu1  ;;  %v5486_v52 = vpop.permute.xlu0 %5485 }
 0x5e2   : > { %v4758_v8 = vadd.f32 %v7271_v14, %v10453_v32  ;;  %5566 = vst.msk [vmem:[%s8986_s23 + $0x80] sm:$0xff] %vm5549_vm8, %v5486_v52  ;;  %v4752_v9 = vpop.f32.mrb[115].mxu1  ;;  %v7210_v37 = vpop.f32.mrb[84].mxu0 }
 0x5e3   : > { %v4753_v17 = vadd.f32 %v10453_v32, %v4752_v9  ;;  %v3735_v30 = vadd.f32 %v10382_v2, %v7210_v37  ;;  %v3729_v19 = vpop.f32.mrb[85].mxu0 }
 0x5e4   : > { %v3730_v56 = vadd.f32 %v10382_v2, %v3729_v19  ;;  %v5488_v31 = vpop.permute.xlu1 %5487 }
 0x5e5   : > { %8002 = vtanh.f32 %v4753_v17  ;;  %5567 = vst.msk [vmem:[%s8986_s23 + $0x88] sm:$0xff] %vm5549_vm8, %v5488_v31  ;;  %v5490_v45 = vpop.permute.xlu0 %5489  ;;  %5656 = vrot.lane.b32.xlu1 %v3735_v30, %s8186_s7 }
 0x5e6   : > { %8004 = vtanh.f32 %v4758_v8  ;;  %5568 = vst.msk [vmem:[%s8986_s23 + $0x90] sm:$0xff] %vm5549_vm8, %v5490_v45  ;;  %5654 = vrot.lane.b32.xlu0 %v3730_v56, %s8186_s7 }
 0x5e7   : > { %v7999_v54 = vpop.eup %7998 }
 0x5e8   : > { %v8001_v10 = vpop.eup %8000  ;;  %7330 = vmatprep.mubr.msk.f32.mxu0 %vm4499_vm7, %v7999_v54  ;;  %v5492_v38 = vpop.permute.xlu1 %5491 }
 0x5e9   : > { %v7274_v39 = vpop.f32.mrb[116].mxu1  ;;  %7331 = vmatmul.mubr.msk.f32.gmra.mrb[112].mxu0 %vm4499_vm7, %v8001_v10  ;;  %5569 = vst.msk [vmem:[%s8986_s23 + $0x98] sm:$0xff] %vm5549_vm8, %v5492_v38  ;;  %v5494_v15 = vpop.permute.xlu0 %5493 }
 0x5ea   : > { %v4768_v34 = vadd.f32 %v7274_v39, %v10453_v32  ;;  %v4762_v62 = vpop.f32.mrb[117].mxu1  ;;  %5570 = vst.msk [vmem:[%s8986_s23 + $0xa0] sm:$0xff] %vm5549_vm8, %v5494_v15  ;;  %v7213_v13 = vpop.f32.mrb[86].mxu0 }
 0x5eb   : > { %v4763_v48 = vadd.f32 %v10453_v32, %v4762_v62  ;;  %v3745_v43 = vadd.f32 %v10382_v2, %v7213_v13  ;;  %v3739_v16 = vpop.f32.mrb[87].mxu0 }
 0x5ec   : > { %v3740_v58 = vadd.f32 %v10382_v2, %v3739_v16  ;;  %v5496_v63 = vpop.permute.xlu1 %5495 }
 0x5ed   : > { %8006 = vtanh.f32 %v4763_v48  ;;  %5571 = vst.msk [vmem:[%s8986_s23 + $0xa8] sm:$0xff] %vm5549_vm8, %v5496_v63  ;;  %v5498_v21 = vpop.permute.xlu0 %5497  ;;  %5660 = vrot.lane.b32.xlu1 %v3745_v43, %s8186_s7 }
 0x5ee   : > { %8008 = vtanh.f32 %v4768_v34  ;;  %5572 = vst.msk [vmem:[%s8986_s23 + $0xb0] sm:$0xff] %vm5549_vm8, %v5498_v21  ;;  %5658 = vrot.lane.b32.xlu0 %v3740_v58, %s8186_s7 }
 0x5ef   : > { %v8003_v60 = vpop.eup %8002 }
 0x5f0   : > { %v8005_v51 = vpop.eup %8004  ;;  %7333 = vmatprep.mubr.msk.f32.mxu0 %vm4499_vm7, %v8003_v60  ;;  %v5500_v26 = vpop.permute.xlu1 %5499 }
 0x5f1   : > { %v7277_v6 = vpop.f32.mrb[118].mxu1  ;;  %5573 = vst.msk [vmem:[%s8986_s23 + $0xb8] sm:$0xff] %vm5549_vm8, %v5500_v26  ;;  %7334 = vmatmul.mubr.msk.f32.gmra.mrb[114].mxu0 %vm4499_vm7, %v8005_v51  ;;  %v5502_v52 = vpop.permute.xlu0 %5501 }
 0x5f2   : > { %v4778_v14 = vadd.f32 %v7277_v6, %v10453_v32  ;;  %v4772_v8 = vpop.f32.mrb[119].mxu1  ;;  %5574 = vst.msk [vmem:[%s8986_s23 + $0xc0] sm:$0xff] %vm5549_vm8, %v5502_v52  ;;  %v7216_v37 = vpop.f32.mrb[88].mxu0 }
 0x5f3   : > { %v4773_v9 = vadd.f32 %v10453_v32, %v4772_v8  ;;  %v3755_v17 = vadd.f32 %v10382_v2, %v7216_v37  ;;  %v3749_v30 = vpop.f32.mrb[89].mxu0 }
 0x5f4   : > { %v3750_v19 = vadd.f32 %v10382_v2, %v3749_v30  ;;  %v5504_v56 = vpop.permute.xlu1 %5503 }
 0x5f5   : > { %8010 = vtanh.f32 %v4773_v9  ;;  %5575 = vst.msk [vmem:[%s8986_s23 + $0xc8] sm:$0xff] %vm5549_vm8, %v5504_v56  ;;  %v5506_v31 = vpop.permute.xlu0 %5505  ;;  %5664 = vrot.lane.b32.xlu1 %v3755_v17, %s8186_s7 }
 0x5f6   : > { %8012 = vtanh.f32 %v4778_v14  ;;  %5576 = vst.msk [vmem:[%s8986_s23 + $0xd0] sm:$0xff] %vm5549_vm8, %v5506_v31  ;;  %5662 = vrot.lane.b32.xlu0 %v3750_v19, %s8186_s7 }
 0x5f7   : > { %v8007_v45 = vpop.eup %8006 }
 0x5f8   : > { %v8009_v54 = vpop.eup %8008  ;;  %7336 = vmatprep.mubr.msk.f32.mxu0 %vm4499_vm7, %v8007_v45  ;;  %v5508_v10 = vpop.permute.xlu1 %5507 }
 0x5f9   : > { %7337 = vmatmul.mubr.msk.f32.gmra.mrb[116].mxu0 %vm4499_vm7, %v8009_v54  ;;  %5577 = vst.msk [vmem:[%s8986_s23 + $0xd8] sm:$0xff] %vm5549_vm8, %v5508_v10  ;;  %v7280_v38 = vpop.f32.mrb[120].mxu1  ;;  %v5510_v39 = vpop.permute.xlu0 %5509 }
 0x5fa   : > { %v4788_v34 = vadd.f32 %v7280_v38, %v10453_v32  ;;  %5578 = vst.msk [vmem:[%s8986_s23 + $0xe0] sm:$0xff] %vm5549_vm8, %v5510_v39  ;;  %v4782_v15 = vpop.f32.mrb[121].mxu1  ;;  %v7219_v62 = vpop.f32.mrb[90].mxu0 }
 0x5fb   : > { %v4783_v48 = vadd.f32 %v10453_v32, %v4782_v15  ;;  %v3765_v13 = vadd.f32 %v10382_v2, %v7219_v62  ;;  %v3759_v43 = vpop.f32.mrb[91].mxu0 }
 0x5fc   : > { %v3760_v16 = vadd.f32 %v10382_v2, %v3759_v43  ;;  %v5512_v58 = vpop.permute.xlu1 %5511 }
 0x5fd   : > { %8014 = vtanh.f32 %v4783_v48  ;;  %5579 = vst.msk [vmem:[%s8986_s23 + $0xe8] sm:$0xff] %vm5549_vm8, %v5512_v58  ;;  %v5514_v63 = vpop.permute.xlu0 %5513  ;;  %5668 = vrot.lane.b32.xlu1 %v3765_v13, %s8186_s7 }
 0x5fe   : > { %8016 = vtanh.f32 %v4788_v34  ;;  %5580 = vst.msk [vmem:[%s8986_s23 + $0xf0] sm:$0xff] %vm5549_vm8, %v5514_v63  ;;  %5666 = vrot.lane.b32.xlu0 %v3760_v16, %s8186_s7 }
 0x5ff   : > { %v8011_v21 = vpop.eup %8010 }
 0x600   : > { %v8013_v60 = vpop.eup %8012  ;;  %7339 = vmatprep.mubr.msk.f32.mxu0 %vm4499_vm7, %v8011_v21  ;;  %v5516_v51 = vpop.permute.xlu1 %5515 }
 0x601   : > { %v7283_v26 = vpop.f32.mrb[122].mxu1  ;;  %7340 = vmatmul.mubr.msk.f32.gmra.mrb[118].mxu0 %vm4499_vm7, %v8013_v60  ;;  %5581 = vst.msk [vmem:[%s8986_s23 + $0xf8] sm:$0xff] %vm5549_vm8, %v5516_v51  ;;  %v5615_v14 = vpop.permute.xlu0 %5614 }
 0x602   : > { %v4798_v6 = vadd.f32 %v7283_v26, %v10453_v32  ;;  %v4792_v52 = vpop.f32.mrb[123].mxu1  ;;  %5711 = vst.msk [vmem:[%s8986_s23] sm:$0xff] %vm5710_vm9, %v5615_v14  ;;  %v7222_v9 = vpop.f32.mrb[92].mxu0 }
 0x603   : > { %v4793_v8 = vadd.f32 %v10453_v32, %v4792_v52  ;;  %v3775_v37 = vadd.f32 %v10382_v2, %v7222_v9  ;;  %v3769_v17 = vpop.f32.mrb[93].mxu0 }
 0x604   : > { %v3770_v30 = vadd.f32 %v10382_v2, %v3769_v17  ;;  %v5617_v19 = vpop.permute.xlu1 %5616 }
 0x605   : > { %8018 = vtanh.f32 %v4793_v8  ;;  %5712 = vst.msk [vmem:[%s8986_s23 + $0x8] sm:$0xff] %vm5710_vm9, %v5617_v19  ;;  %5672 = vrot.lane.b32.xlu1 %v3775_v37, %s8186_s7 }
 0x606   : > { %8020 = vtanh.f32 %v4798_v6  ;;  %5670 = vrot.lane.b32.xlu0 %v3770_v30, %s8186_s7 }
 0x607   : > { %v8015_v56 = vpop.eup %8014 }
 0x608   : > { %v8017_v31 = vpop.eup %8016  ;;  %7342 = vmatprep.mubr.msk.f32.mxu0 %vm4499_vm7, %v8015_v56  ;;  %v7286_v45 = vpop.f32.mrb[124].mxu1 }
 0x609   : > { %v4808_v54 = vadd.f32 %v7286_v45, %v10453_v32  ;;  %7343 = vmatmul.mubr.msk.f32.gmra.mrb[120].mxu0 %vm4499_vm7, %v8017_v31  ;;  %v4802_v10 = vpop.f32.mrb[125].mxu1 }
 0x60a   : > { %v4803_v38 = vadd.f32 %v10453_v32, %v4802_v10  ;;  %v7225_v39 = vpop.f32.mrb[94].mxu0 }
 0x60b   : > { %v3785_v34 = vadd.f32 %v10382_v2, %v7225_v39  ;;  %v3779_v15 = vpop.f32.mrb[95].mxu0 }
 0x60c   : > { %8022 = vtanh.f32 %v4803_v38  ;;  %v3780_v62 = vadd.f32 %v10382_v2, %v3779_v15 }
 0x60d   : > { %8024 = vtanh.f32 %v4808_v54  ;;  %5676 = vrot.lane.b32.xlu1 %v3785_v34, %s8186_s7 }
 0x60e   : > { %5674 = vrot.lane.b32.xlu0 %v3780_v62, %s8186_s7 }
 0x60f   : > { %v8019_v48 = vpop.eup %8018  ;;  %v5621_v43 = vpop.permute.xlu1 %5620 }
 0x610   : > { %v8021_v13 = vpop.eup %8020  ;;  %7345 = vmatprep.mubr.msk.f32.mxu0 %vm4499_vm7, %v8019_v48  ;;  %5714 = vst.msk [vmem:[%s8986_s23 + $0x18] sm:$0xff] %vm5710_vm9, %v5621_v43  ;;  %v5619_v16 = vpop.permute.xlu0 %5618 }
 0x611   : > { %7346 = vmatmul.mubr.msk.f32.gmra.mrb[122].mxu0 %vm4499_vm7, %v8021_v13  ;;  %5713 = vst.msk [vmem:[%s8986_s23 + $0x10] sm:$0xff] %vm5710_vm9, %v5619_v16  ;;  %v7289_v2 = vpop.f32.mrb[126].mxu1 }
 0x612   : > { %v4818_v58 = vadd.f32 %v7289_v2, %v10453_v32  ;;  %v4812_v63 = vpop.f32.mrb[127].mxu1 }
 0x613   : > { %v4813_v21 = vadd.f32 %v10453_v32, %v4812_v63 }
 0x615   : > { %8026 = vtanh.f32 %v4813_v21 }
 0x616   : > { %v8023_v60 = vpop.eup %8022  ;;  %8028 = vtanh.f32 %v4818_v58  ;;  %v10704_v58 = vld [vmem:[%s11374_s4 + $0xf8] ss:$0 sm:$0xff] }
 0x617   : > { %v8025_v51 = vpop.eup %8024  ;;  %v5625_v26 = vpop.permute.xlu1 %5624  ;;  %7348 = vmatprep.mubr.msk.f32.mxu0 %vm4499_vm7, %v8023_v60 }
 0x618   : > { %5716 = vst.msk [vmem:[%s8986_s23 + $0x28] sm:$0xff] %vm5710_vm9, %v5625_v26  ;;  %7349 = vmatmul.mubr.msk.f32.gmra.mrb[124].mxu0 %vm4499_vm7, %v8025_v51  ;;  %v5623_v6 = vpop.permute.xlu0 %5622 }
 0x619   : > { %5715 = vst.msk [vmem:[%s8986_s23 + $0x20] sm:$0xff] %vm5710_vm9, %v5623_v6 }
 0x61f   : > { %v8027_v32 = vpop.eup %8026  ;;  %v5629_v14 = vpop.permute.xlu1 %5628 }
 0x620   : > { %v8029_v52 = vpop.eup %8028  ;;  %5718 = vst.msk [vmem:[%s8986_s23 + $0x38] sm:$0xff] %vm5710_vm9, %v5629_v14  ;;  %7351 = vmatprep.mubr.msk.f32.mxu0 %vm4499_vm7, %v8027_v32  ;;  %v5627_v8 = vpop.permute.xlu0 %5626  ;;  %v10715_v14 = vld [vmem:[%s11374_s4 + $0x100] ss:$0 sm:$0xff] }
 0x621   : > { %5717 = vst.msk [vmem:[%s8986_s23 + $0x30] sm:$0xff] %vm5710_vm9, %v5627_v8  ;;  %7352 = vmatmul.mubr.msk.f32.gmra.mrb[126].mxu0 %vm4499_vm7, %v8029_v52 }
 0x627   : > { %v5633_v9 = vpop.permute.xlu1 %5632 }
 0x628   : > { %5720 = vst.msk [vmem:[%s8986_s23 + $0x48] sm:$0xff] %vm5710_vm9, %v5633_v9  ;;  %v5631_v37 = vpop.permute.xlu0 %5630 }
 0x629   : > { %5719 = vst.msk [vmem:[%s8986_s23 + $0x40] sm:$0xff] %vm5710_vm9, %v5631_v37 }
 0x62f   : > { %v5637_v17 = vpop.permute.xlu1 %5636 }
 0x630   : > { %5722 = vst.msk [vmem:[%s8986_s23 + $0x58] sm:$0xff] %vm5710_vm9, %v5637_v17  ;;  %v5635_v30 = vpop.permute.xlu0 %5634 }
 0x631   : > { %5721 = vst.msk [vmem:[%s8986_s23 + $0x50] sm:$0xff] %vm5710_vm9, %v5635_v30 }
 0x637   : > { %v5641_v19 = vpop.permute.xlu1 %5640 }
 0x638   : > { %5724 = vst.msk [vmem:[%s8986_s23 + $0x68] sm:$0xff] %vm5710_vm9, %v5641_v19  ;;  %v5639_v56 = vpop.permute.xlu0 %5638 }
 0x639   : > { %5723 = vst.msk [vmem:[%s8986_s23 + $0x60] sm:$0xff] %vm5710_vm9, %v5639_v56 }
 0x63f   : > { %v5645_v31 = vpop.permute.xlu1 %5644 }
 0x640   : > { %5726 = vst.msk [vmem:[%s8986_s23 + $0x78] sm:$0xff] %vm5710_vm9, %v5645_v31  ;;  %v5643_v45 = vpop.permute.xlu0 %5642 }
 0x641   : > { %5725 = vst.msk [vmem:[%s8986_s23 + $0x70] sm:$0xff] %vm5710_vm9, %v5643_v45 }
 0x647   : > { %v5649_v54 = vpop.permute.xlu1 %5648 }
 0x648   : > { %5728 = vst.msk [vmem:[%s8986_s23 + $0x88] sm:$0xff] %vm5710_vm9, %v5649_v54  ;;  %v5647_v10 = vpop.permute.xlu0 %5646 }
 0x649   : > { %5727 = vst.msk [vmem:[%s8986_s23 + $0x80] sm:$0xff] %vm5710_vm9, %v5647_v10 }
 0x64f   : > { %v5653_v38 = vpop.permute.xlu1 %5652 }
 0x650   : > { %5730 = vst.msk [vmem:[%s8986_s23 + $0x98] sm:$0xff] %vm5710_vm9, %v5653_v38  ;;  %v5651_v39 = vpop.permute.xlu0 %5650 }
 0x651   : > { %5729 = vst.msk [vmem:[%s8986_s23 + $0x90] sm:$0xff] %vm5710_vm9, %v5651_v39 }
 0x657   : > { %v5657_v34 = vpop.permute.xlu1 %5656 }
 0x658   : > { %5732 = vst.msk [vmem:[%s8986_s23 + $0xa8] sm:$0xff] %vm5710_vm9, %v5657_v34  ;;  %v5655_v15 = vpop.permute.xlu0 %5654 }
 0x659   : > { %5731 = vst.msk [vmem:[%s8986_s23 + $0xa0] sm:$0xff] %vm5710_vm9, %v5655_v15 }
 0x65f   : > { %v5661_v62 = vpop.permute.xlu1 %5660 }
 0x660   : > { %5734 = vst.msk [vmem:[%s8986_s23 + $0xb8] sm:$0xff] %vm5710_vm9, %v5661_v62  ;;  %v5659_v48 = vpop.permute.xlu0 %5658 }
 0x661   : > { %5733 = vst.msk [vmem:[%s8986_s23 + $0xb0] sm:$0xff] %vm5710_vm9, %v5659_v48 }
 0x667   : > { %v5665_v13 = vpop.permute.xlu1 %5664 }
 0x668   : > { %5736 = vst.msk [vmem:[%s8986_s23 + $0xc8] sm:$0xff] %vm5710_vm9, %v5665_v13  ;;  %v5663_v43 = vpop.permute.xlu0 %5662 }
 0x669   : > { %5735 = vst.msk [vmem:[%s8986_s23 + $0xc0] sm:$0xff] %vm5710_vm9, %v5663_v43 }
 0x66f   : > { %v5669_v16 = vpop.permute.xlu1 %5668 }
 0x670   : > { %5738 = vst.msk [vmem:[%s8986_s23 + $0xd8] sm:$0xff] %vm5710_vm9, %v5669_v16  ;;  %v5667_v2 = vpop.permute.xlu0 %5666 }
 0x671   : > { %5737 = vst.msk [vmem:[%s8986_s23 + $0xd0] sm:$0xff] %vm5710_vm9, %v5667_v2 }
 0x674   : > { %v7308_v63 = vpop.f32.mrb[96].mxu0 }
 0x675   : > { %v5034_v21 = vadd.f32 %v7308_v63, %v10704_v58  ;;  %v5028_v60 = vpop.f32.mrb[97].mxu0 }
 0x676   : > { %v5029_v51 = vadd.f32 %v10704_v58, %v5028_v60 }
 0x677   : > { %8030 = vtanh.f32 %v5034_v21  ;;  %v5673_v26 = vpop.permute.xlu1 %5672 }
 0x678   : > { %8032 = vtanh.f32 %v5029_v51  ;;  %5740 = vst.msk [vmem:[%s8986_s23 + $0xe8] sm:$0xff] %vm5710_vm9, %v5673_v26  ;;  %v5671_v6 = vpop.permute.xlu0 %5670 }
 0x679   : > { %5739 = vst.msk [vmem:[%s8986_s23 + $0xe0] sm:$0xff] %vm5710_vm9, %v5671_v6 }
 0x67f   : > { %v5677_v32 = vpop.permute.xlu1 %5676 }
 0x680   : > { %5742 = vst.msk [vmem:[%s8986_s23 + $0xf8] sm:$0xff] %vm5710_vm9, %v5677_v32  ;;  %v5675_v52 = vpop.permute.xlu0 %5674 }
 0x681   : > { %v8031_v8 = vpop.eup %8030  ;;  %5741 = vst.msk [vmem:[%s8986_s23 + $0xf0] sm:$0xff] %vm5710_vm9, %v5675_v52 }
 0x682   : > { %v8033_v9 = vpop.eup %8032  ;;  %v5225_v37 = vmul.f32 %v8031_v8, %v10715_v14 }
 0x683   : > { %v7311_v17 = vpop.f32.mrb[98].mxu0  ;;  %v5224_v30 = vmul.f32 %v8033_v9, %v10715_v14 }
 0x684   : > { %v5044_v19 = vadd.f32 %v7311_v17, %v10704_v58  ;;  %v5259_v56 = vsel %vm4499_vm7, %v5225_v37, 0.0  ;;  %v5038_v31 = vpop.f32.mrb[99].mxu0 }
 0x685   : > { %5260 = vadd.xlane.f32.xlu0 %v5259_v56  ;;  %v5039_v45 = vadd.f32 %v10704_v58, %v5038_v31  ;;  %v5256_v54 = vsel %vm4499_vm7, %v5224_v30, 0.0 }
 0x686   : > { %8034 = vtanh.f32 %v5044_v19  ;;  %5257 = vadd.xlane.f32.xlu1 %v5256_v54 }
 0x687   : > { %8036 = vtanh.f32 %v5039_v45 }
 0x68b   : > { %v7314_v10 = vpop.f32.mrb[100].mxu0 }
 0x68c   : > { %v5054_v38 = vadd.f32 %v7314_v10, %v10704_v58  ;;  %v5048_v39 = vpop.f32.mrb[101].mxu0 }
 0x68d   : > { %v5049_v34 = vadd.f32 %v10704_v58, %v5048_v39 }
 0x68e   : > { %8038 = vtanh.f32 %v5054_v38 }
 0x68f   : > { %8040 = vtanh.f32 %v5049_v34 }
 0x690   : > { %v8035_v15 = vpop.eup %8034 }
 0x691   : > { %v8037_v62 = vpop.eup %8036  ;;  %v5227_v48 = vmul.f32 %v8035_v15, %v10715_v14 }
 0x692   : > { %v5226_v13 = vmul.f32 %v8037_v62, %v10715_v14 }
 0x693   : > { %v5265_v43 = vsel %vm4499_vm7, %v5227_v48, 0.0  ;;  %v7317_v16 = vpop.f32.mrb[102].mxu0 }
 0x694   : > { %5266 = vadd.xlane.f32.xlu0 %v5265_v43  ;;  %v5262_v2 = vsel %vm4499_vm7, %v5226_v13, 0.0  ;;  %v5064_v63 = vadd.f32 %v7317_v16, %v10704_v58  ;;  %v5058_v21 = vpop.f32.mrb[103].mxu0 }
 0x695   : > { %5263 = vadd.xlane.f32.xlu1 %v5262_v2  ;;  %v5059_v60 = vadd.f32 %v10704_v58, %v5058_v21 }
 0x696   : > { %8042 = vtanh.f32 %v5064_v63 }
 0x697   : > { %8044 = vtanh.f32 %v5059_v60 }
 0x698   : > { %v8039_v51 = vpop.eup %8038 }
 0x699   : > { %v8041_v26 = vpop.eup %8040  ;;  %v5229_v6 = vmul.f32 %v8039_v51, %v10715_v14 }
 0x69a   : > { %v5228_v32 = vmul.f32 %v8041_v26, %v10715_v14 }
 0x69b   : > { %v7320_v52 = vpop.f32.mrb[104].mxu0  ;;  %v5271_v8 = vsel %vm4499_vm7, %v5229_v6, 0.0 }
 0x69c   : > { %v5074_v9 = vadd.f32 %v7320_v52, %v10704_v58  ;;  %5272 = vadd.xlane.f32.xlu0 %v5271_v8  ;;  %v5068_v37 = vpop.f32.mrb[105].mxu0  ;;  %v5268_v17 = vsel %vm4499_vm7, %v5228_v32, 0.0 }
 0x69d   : > { %v5069_v30 = vadd.f32 %v10704_v58, %v5068_v37  ;;  %5269 = vadd.xlane.f32.xlu1 %v5268_v17 }
 0x69e   : > { %8046 = vtanh.f32 %v5074_v9 }
 0x69f   : > { %8048 = vtanh.f32 %v5069_v30 }
 0x6a0   : > { %v8043_v19 = vpop.eup %8042 }
 0x6a1   : > { %v8045_v56 = vpop.eup %8044  ;;  %v5231_v31 = vmul.f32 %v8043_v19, %v10715_v14 }
 0x6a2   : > { %v5230_v54 = vmul.f32 %v8045_v56, %v10715_v14 }
 0x6a3   : > { %v7323_v45 = vpop.f32.mrb[106].mxu0  ;;  %v5277_v38 = vsel %vm4499_vm7, %v5231_v31, 0.0 }
 0x6a4   : > { %v5084_v10 = vadd.f32 %v7323_v45, %v10704_v58  ;;  %v5078_v39 = vpop.f32.mrb[107].mxu0  ;;  %5278 = vadd.xlane.f32.xlu0 %v5277_v38  ;;  %v5274_v15 = vsel %vm4499_vm7, %v5230_v54, 0.0 }
 0x6a5   : > { %v5079_v34 = vadd.f32 %v10704_v58, %v5078_v39  ;;  %5275 = vadd.xlane.f32.xlu1 %v5274_v15 }
 0x6a6   : > { %8050 = vtanh.f32 %v5084_v10 }
 0x6a7   : > { %8052 = vtanh.f32 %v5079_v34 }
 0x6a8   : > { %v8047_v62 = vpop.eup %8046 }
 0x6a9   : > { %v8049_v48 = vpop.eup %8048  ;;  %v5233_v13 = vmul.f32 %v8047_v62, %v10715_v14 }
 0x6aa   : > { %v5232_v43 = vmul.f32 %v8049_v48, %v10715_v14 }
 0x6ab   : > { %v5283_v16 = vsel %vm4499_vm7, %v5233_v13, 0.0 }
 0x6ac   : > { %v7326_v2 = vpop.f32.mrb[108].mxu0  ;;  %5284 = vadd.xlane.f32.xlu0 %v5283_v16  ;;  %v5280_v63 = vsel %vm4499_vm7, %v5232_v43, 0.0 }
 0x6ad   : > { %v5094_v21 = vadd.f32 %v7326_v2, %v10704_v58  ;;  %v5088_v60 = vpop.f32.mrb[109].mxu0  ;;  %5281 = vadd.xlane.f32.xlu1 %v5280_v63 }
 0x6ae   : > { %v5089_v51 = vadd.f32 %v10704_v58, %v5088_v60 }
 0x6af   : > { %8054 = vtanh.f32 %v5094_v21 }
 0x6b0   : > { %v8051_v26 = vpop.eup %8050  ;;  %8056 = vtanh.f32 %v5089_v51 }
 0x6b1   : > { %v8053_v6 = vpop.eup %8052  ;;  %v5235_v32 = vmul.f32 %v8051_v26, %v10715_v14 }
 0x6b2   : > { %v5234_v52 = vmul.f32 %v8053_v6, %v10715_v14 }
 0x6b3   : > { %v7329_v8 = vpop.f32.mrb[110].mxu0  ;;  %v5289_v9 = vsel %vm4499_vm7, %v5235_v32, 0.0 }
 0x6b4   : > { %v5104_v37 = vadd.f32 %v7329_v8, %v10704_v58  ;;  %5290 = vadd.xlane.f32.xlu0 %v5289_v9  ;;  %v5098_v17 = vpop.f32.mrb[111].mxu0  ;;  %v5286_v30 = vsel %vm4499_vm7, %v5234_v52, 0.0 }
 0x6b5   : > { %v5099_v19 = vadd.f32 %v10704_v58, %v5098_v17  ;;  %5287 = vadd.xlane.f32.xlu1 %v5286_v30 }
 0x6b6   : > { %8058 = vtanh.f32 %v5104_v37 }
 0x6b7   : > { %8060 = vtanh.f32 %v5099_v19 }
 0x6b9   : > { %v8055_v56 = vpop.eup %8054 }
 0x6ba   : > { %v8057_v31 = vpop.eup %8056  ;;  %v5237_v45 = vmul.f32 %v8055_v56, %v10715_v14 }
 0x6bb   : > { %v5236_v10 = vmul.f32 %v8057_v31, %v10715_v14 }
 0x6bc   : > { %v7332_v54 = vpop.f32.mrb[112].mxu0  ;;  %v5295_v39 = vsel %vm4499_vm7, %v5237_v45, 0.0 }
 0x6bd   : > { %v5114_v38 = vadd.f32 %v7332_v54, %v10704_v58  ;;  %v5108_v34 = vpop.f32.mrb[113].mxu0  ;;  %5296 = vadd.xlane.f32.xlu0 %v5295_v39  ;;  %v5292_v62 = vsel %vm4499_vm7, %v5236_v10, 0.0 }
 0x6be   : > { %v5109_v15 = vadd.f32 %v10704_v58, %v5108_v34  ;;  %5293 = vadd.xlane.f32.xlu1 %v5292_v62 }
 0x6bf   : > { %8062 = vtanh.f32 %v5114_v38 }
 0x6c0   : > { %8064 = vtanh.f32 %v5109_v15  ;;  %v8059_v48 = vpop.eup %8058 }
 0x6c1   : > { %v8061_v13 = vpop.eup %8060  ;;  %v5239_v43 = vmul.f32 %v8059_v48, %v10715_v14 }
 0x6c2   : > { %v5238_v16 = vmul.f32 %v8061_v13, %v10715_v14 }
 0x6c3   : > { %v5301_v2 = vsel %vm4499_vm7, %v5239_v43, 0.0 }
 0x6c4   : > { %v7335_v63 = vpop.f32.mrb[114].mxu0  ;;  %5302 = vadd.xlane.f32.xlu0 %v5301_v2  ;;  %v5298_v21 = vsel %vm4499_vm7, %v5238_v16, 0.0 }
 0x6c5   : > { %v5124_v60 = vadd.f32 %v7335_v63, %v10704_v58  ;;  %v5118_v51 = vpop.f32.mrb[115].mxu0  ;;  %5299 = vadd.xlane.f32.xlu1 %v5298_v21 }
 0x6c6   : > { %v5119_v26 = vadd.f32 %v10704_v58, %v5118_v51 }
 0x6c7   : > { %8066 = vtanh.f32 %v5124_v60 }
 0x6c8   : > { %8068 = vtanh.f32 %v5119_v26 }
 0x6c9   : > { %v8063_v6 = vpop.eup %8062 }
 0x6ca   : > { %v8065_v32 = vpop.eup %8064  ;;  %v5241_v52 = vmul.f32 %v8063_v6, %v10715_v14 }
 0x6cb   : > { %v5240_v8 = vmul.f32 %v8065_v32, %v10715_v14 }
 0x6cc   : > { %v7338_v9 = vpop.f32.mrb[116].mxu0  ;;  %v5307_v37 = vsel %vm4499_vm7, %v5241_v52, 0.0 }
 0x6cd   : > { %v5134_v17 = vadd.f32 %v7338_v9, %v10704_v58  ;;  %5308 = vadd.xlane.f32.xlu0 %v5307_v37  ;;  %v5128_v30 = vpop.f32.mrb[117].mxu0  ;;  %v5304_v19 = vsel %vm4499_vm7, %v5240_v8, 0.0 }
 0x6ce   : > { %v5129_v56 = vadd.f32 %v10704_v58, %v5128_v30  ;;  %5305 = vadd.xlane.f32.xlu1 %v5304_v19 }
 0x6cf   : > { %8070 = vtanh.f32 %v5134_v17 }
 0x6d0   : > { %8072 = vtanh.f32 %v5129_v56 }
 0x6d1   : > { %v8067_v31 = vpop.eup %8066 }
 0x6d2   : > { %v8069_v45 = vpop.eup %8068  ;;  %v5243_v54 = vmul.f32 %v8067_v31, %v10715_v14 }
 0x6d3   : > { %v5242_v38 = vmul.f32 %v8069_v45, %v10715_v14 }
 0x6d4   : > { %v7341_v10 = vpop.f32.mrb[118].mxu0  ;;  %v5313_v34 = vsel %vm4499_vm7, %v5243_v54, 0.0 }
 0x6d5   : > { %v5144_v39 = vadd.f32 %v7341_v10, %v10704_v58  ;;  %v5138_v15 = vpop.f32.mrb[119].mxu0  ;;  %5314 = vadd.xlane.f32.xlu0 %v5313_v34  ;;  %v5310_v48 = vsel %vm4499_vm7, %v5242_v38, 0.0 }
 0x6d6   : > { %v5139_v62 = vadd.f32 %v10704_v58, %v5138_v15  ;;  %5311 = vadd.xlane.f32.xlu1 %v5310_v48 }
 0x6d7   : > { %8074 = vtanh.f32 %v5144_v39 }
 0x6d8   : > { %8076 = vtanh.f32 %v5139_v62 }
 0x6d9   : > { %v8071_v13 = vpop.eup %8070 }
 0x6da   : > { %v8073_v43 = vpop.eup %8072  ;;  %v5245_v16 = vmul.f32 %v8071_v13, %v10715_v14 }
 0x6db   : > { %v5244_v2 = vmul.f32 %v8073_v43, %v10715_v14 }
 0x6dc   : > { %v5319_v63 = vsel %vm4499_vm7, %v5245_v16, 0.0  ;;  %v7344_v21 = vpop.f32.mrb[120].mxu0 }
 0x6dd   : > { %5320 = vadd.xlane.f32.xlu0 %v5319_v63  ;;  %v5316_v60 = vsel %vm4499_vm7, %v5244_v2, 0.0  ;;  %v5154_v51 = vadd.f32 %v7344_v21, %v10704_v58  ;;  %v5148_v26 = vpop.f32.mrb[121].mxu0 }
 0x6de   : > { %5317 = vadd.xlane.f32.xlu1 %v5316_v60  ;;  %v5149_v6 = vadd.f32 %v10704_v58, %v5148_v26 }
 0x6df   : > { %8078 = vtanh.f32 %v5154_v51 }
 0x6e0   : > { %8080 = vtanh.f32 %v5149_v6 }
 0x6e1   : > { %v8075_v32 = vpop.eup %8074 }
 0x6e2   : > { %v8077_v52 = vpop.eup %8076  ;;  %v5247_v8 = vmul.f32 %v8075_v32, %v10715_v14 }
 0x6e3   : > { %v5246_v9 = vmul.f32 %v8077_v52, %v10715_v14 }
 0x6e4   : > { %v7347_v37 = vpop.f32.mrb[122].mxu0  ;;  %v5325_v17 = vsel %vm4499_vm7, %v5247_v8, 0.0 }
 0x6e5   : > { %v5164_v30 = vadd.f32 %v7347_v37, %v10704_v58  ;;  %5326 = vadd.xlane.f32.xlu0 %v5325_v17  ;;  %v5158_v19 = vpop.f32.mrb[123].mxu0  ;;  %v5322_v56 = vsel %vm4499_vm7, %v5246_v9, 0.0 }
 0x6e6   : > { %v5159_v31 = vadd.f32 %v10704_v58, %v5158_v19  ;;  %5323 = vadd.xlane.f32.xlu1 %v5322_v56 }
 0x6e7   : > { %8082 = vtanh.f32 %v5164_v30 }
 0x6e8   : > { %8084 = vtanh.f32 %v5159_v31 }
 0x6e9   : > { %v8079_v45 = vpop.eup %8078 }
 0x6ea   : > { %v8081_v54 = vpop.eup %8080  ;;  %v5249_v10 = vmul.f32 %v8079_v45, %v10715_v14 }
 0x6eb   : > { %v7350_v38 = vpop.f32.mrb[124].mxu0  ;;  %v5248_v39 = vmul.f32 %v8081_v54, %v10715_v14 }
 0x6ec   : > { %v5174_v34 = vadd.f32 %v7350_v38, %v10704_v58  ;;  %v5331_v15 = vsel %vm4499_vm7, %v5249_v10, 0.0  ;;  %v5168_v62 = vpop.f32.mrb[125].mxu0  ;;  %v10818_v10 = vld [vmem:[%s11374_s4 + $0x108] ss:$0 sm:$0xff] }
 0x6ed   : > { %5332 = vadd.xlane.f32.xlu0 %v5331_v15  ;;  %v5169_v48 = vadd.f32 %v10704_v58, %v5168_v62  ;;  %v5328_v13 = vsel %vm4499_vm7, %v5248_v39, 0.0 }
 0x6ee   : > { %8086 = vtanh.f32 %v5174_v34  ;;  %5329 = vadd.xlane.f32.xlu1 %v5328_v13 }
 0x6ef   : > { %8088 = vtanh.f32 %v5169_v48 }
 0x6f1   : > { %v8083_v43 = vpop.eup %8082 }
 0x6f2   : > { %v8085_v16 = vpop.eup %8084  ;;  %v5251_v2 = vmul.f32 %v8083_v43, %v10715_v14 }
 0x6f3   : > { %v5250_v63 = vmul.f32 %v8085_v16, %v10715_v14 }
 0x6f4   : > { %v5337_v21 = vsel %vm4499_vm7, %v5251_v2, 0.0  ;;  %v7353_v60 = vpop.f32.mrb[126].mxu0 }
 0x6f5   : > { %5338 = vadd.xlane.f32.xlu0 %v5337_v21  ;;  %v5334_v51 = vsel %vm4499_vm7, %v5250_v63, 0.0  ;;  %v5184_v26 = vadd.f32 %v7353_v60, %v10704_v58  ;;  %v5178_v6 = vpop.f32.mrb[127].mxu0 }
 0x6f6   : > { %5335 = vadd.xlane.f32.xlu1 %v5334_v51  ;;  %v5179_v32 = vadd.f32 %v10704_v58, %v5178_v6 }
 0x6f7   : > { %8090 = vtanh.f32 %v5184_v26 }
 0x6f8   : > { %v8087_v52 = vpop.eup %8086  ;;  %8092 = vtanh.f32 %v5179_v32 }
 0x6f9   : > { %v8089_v8 = vpop.eup %8088  ;;  %v5253_v9 = vmul.f32 %v8087_v52, %v10715_v14 }
 0x6fa   : > { %v5252_v37 = vmul.f32 %v8089_v8, %v10715_v14 }
 0x6fb   : > { %v5343_v17 = vsel %vm4499_vm7, %v5253_v9, 0.0 }
 0x6fc   : > { %5344 = vadd.xlane.f32.xlu0 %v5343_v17  ;;  %v5340_v30 = vsel %vm4499_vm7, %v5252_v37, 0.0 }
 0x6fd   : > { %5341 = vadd.xlane.f32.xlu1 %v5340_v30 }
 0x701   : > { %v8091_v19 = vpop.eup %8090 }
 0x702   : > { %v8093_v56 = vpop.eup %8092  ;;  %v5255_v31 = vmul.f32 %v8091_v19, %v10715_v14 }
 0x703   : > { %v5254_v58 = vmul.f32 %v8093_v56, %v10715_v14 }
 0x704   : > { %v5349_v45 = vsel %vm4499_vm7, %v5255_v31, 0.0 }
 0x705   : > { %5350 = vadd.xlane.f32.xlu0 %v5349_v45  ;;  %v5346_v54 = vsel %vm4499_vm7, %v5254_v58, 0.0 }
 0x706   : > { %5347 = vadd.xlane.f32.xlu1 %v5346_v54 }
 0x712   : > { %v5261_v38 = vpop.xlane.xlu0 %5260 }
 0x713   : > { %v5358_v39 = vadd.f32 %v10818_v10, %v5261_v38  ;;  %v5258_v34 = vpop.xlane.xlu1 %5257 }
 0x714   : > { %v5357_v15 = vadd.f32 %v10818_v10, %v5258_v34 }
 0x717   : > { %5756 = vperm.xlu1 %7516, %v5358_v39  }
 0x71b   : > { %5751 = vperm.xlu0 %7517, %v5357_v15  }
 0x721   : > { %v5267_v14 = vpop.xlane.xlu0 %5266 }
 0x722   : > { %v5360_v62 = vadd.f32 %v10818_v10, %v5267_v14  ;;  %v5264_v48 = vpop.xlane.xlu1 %5263 }
 0x723   : > { %v5359_v13 = vadd.f32 %v10818_v10, %v5264_v48 }
 0x724   : > { %5766 = vperm.xlu0 %7517, %v5360_v62  }
 0x725   : > { %5761 = vperm.xlu1 %7516, %v5359_v13  }
 0x729   : > { %v5273_v43 = vpop.xlane.xlu0 %5272 }
 0x72a   : > { %v5362_v16 = vadd.f32 %v10818_v10, %v5273_v43  ;;  %v5270_v2 = vpop.xlane.xlu1 %5269 }
 0x72b   : > { %v5361_v63 = vadd.f32 %v10818_v10, %v5270_v2 }
 0x72c   : > { %5776 = vperm.xlu0 %7517, %v5362_v16  }
 0x72d   : > { %5771 = vperm.xlu1 %7516, %v5361_v63  }
 0x731   : > { %v5279_v21 = vpop.xlane.xlu0 %5278 }
 0x732   : > { %v5364_v60 = vadd.f32 %v10818_v10, %v5279_v21  ;;  %v5276_v51 = vpop.xlane.xlu1 %5275 }
 0x733   : > { %v5363_v26 = vadd.f32 %v10818_v10, %v5276_v51 }
 0x734   : > { %5786 = vperm.xlu0 %7517, %v5364_v60  }
 0x735   : > { %5781 = vperm.xlu1 %7516, %v5363_v26  }
 0x739   : > { %v5285_v6 = vpop.xlane.xlu0 %5284 }
 0x73a   : > { %v5366_v32 = vadd.f32 %v10818_v10, %v5285_v6  ;;  %v5282_v52 = vpop.xlane.xlu1 %5281 }
 0x73b   : > { %v5365_v8 = vadd.f32 %v10818_v10, %v5282_v52 }
 0x73c   : > { %5796 = vperm.xlu0 %7517, %v5366_v32  }
 0x73d   : > { %5791 = vperm.xlu1 %7516, %v5365_v8  }
 0x741   : > { %v5291_v9 = vpop.xlane.xlu0 %5290 }
 0x742   : > { %v5368_v37 = vadd.f32 %v10818_v10, %v5291_v9  ;;  %v5288_v17 = vpop.xlane.xlu1 %5287 }
 0x743   : > { %v5367_v30 = vadd.f32 %v10818_v10, %v5288_v17 }
 0x744   : > { %5806 = vperm.xlu0 %7517, %v5368_v37  }
 0x745   : > { %5801 = vperm.xlu1 %7516, %v5367_v30  }
 0x74a   : > { %v5297_v19 = vpop.xlane.xlu0 %5296 }
 0x74b   : > { %v5370_v56 = vadd.f32 %v10818_v10, %v5297_v19  ;;  %v5294_v31 = vpop.xlane.xlu1 %5293 }
 0x74c   : > { %v5369_v58 = vadd.f32 %v10818_v10, %v5294_v31 }
 0x74d   : > { %5816 = vperm.xlu0 %7517, %v5370_v56  }
 0x74e   : > { %5811 = vperm.xlu1 %7516, %v5369_v58  }
 0x751   : > { %v5303_v45 = vpop.xlane.xlu0 %5302 }
 0x752   : > { %v5372_v54 = vadd.f32 %v10818_v10, %v5303_v45  ;;  %v5300_v38 = vpop.xlane.xlu1 %5299 }
 0x753   : > { %v5371_v39 = vadd.f32 %v10818_v10, %v5300_v38  ;;  %v11658_v38 = vlaneseq }
 0x754   : > { %5826 = vperm.xlu0 %7517, %v5372_v54  }
 0x755   : > { %5821 = vperm.xlu1 %7516, %v5371_v39   ;;  %v10851_v39 = vand.u32 127, %v11658_v38 }
 0x757   : > { %vm5748_vm10 = vcmp.eq.s32.totalorder %v10851_v39, 3  ;;  %vm5747_vm11 = vcmp.eq.s32.totalorder %v10851_v39, 2  ;;  %vm5746_vm12 = vcmp.eq.s32.totalorder %v10851_v39, 1  ;;  %vm5745_vm13 = vcmp.eq.s32.totalorder %v10851_v39, 0 }
 0x75a   : > { %v5309_v34 = vpop.xlane.xlu0 %5308 }
 0x75b   : > { %v5374_v15 = vadd.f32 %v10818_v10, %v5309_v34  ;;  %v5306_v14 = vpop.xlane.xlu1 %5305 }
 0x75c   : > { %v5373_v62 = vadd.f32 %v10818_v10, %v5306_v14 }
 0x75d   : > { %5836 = vperm.xlu0 %7517, %v5374_v15  }
 0x75e   : > { %5831 = vperm.xlu1 %7516, %v5373_v62  }
 0x762   : > { %v5315_v48 = vpop.xlane.xlu0 %5314 }
 0x763   : > { %v5376_v13 = vadd.f32 %v10818_v10, %v5315_v48  ;;  %v5312_v43 = vpop.xlane.xlu1 %5311 }
 0x764   : > { %v5375_v16 = vadd.f32 %v10818_v10, %v5312_v43 }
 0x765   : > { %5846 = vperm.xlu0 %7517, %v5376_v13  }
 0x766   : > { %5841 = vperm.xlu1 %7516, %v5375_v16   ;;  %v11659_v16 = vld [vmem:[#allocation62_spill] sm:$0xff] }
 0x76a   : > { %v5321_v2 = vpop.xlane.xlu0 %5320 }
 0x76b   : > { %v5378_v63 = vadd.f32 %v10818_v10, %v5321_v2  ;;  %v5318_v21 = vpop.xlane.xlu1 %5317 }
 0x76c   : > { %v5377_v60 = vadd.f32 %v10818_v10, %v5318_v21  ;;  %v11660_v21 = vld [vmem:[#allocation5_spill] sm:$0xff] }
 0x76d   : > { %5856 = vperm.xlu0 %7517, %v5378_v63  }
 0x76e   : > { %5851 = vperm.xlu1 %7516, %v5377_v60  }
 0x772   : > { %v5327_v51 = vpop.xlane.xlu0 %5326 }
 0x773   : > { %v5380_v26 = vadd.f32 %v10818_v10, %v5327_v51  ;;  %v5324_v6 = vpop.xlane.xlu1 %5323 }
 0x774   : > { %v5379_v32 = vadd.f32 %v10818_v10, %v5324_v6 }
 0x775   : > { %5866 = vperm.xlu0 %7517, %v5380_v26   ;;  %v11661_v26 = vld [vmem:[#allocation6_spill] sm:$0xff] }
 0x776   : > { %5861 = vperm.xlu1 %7516, %v5379_v32  }
 0x77a   : > { %v5333_v52 = vpop.xlane.xlu0 %5332 }
 0x77b   : > { %v5382_v8 = vadd.f32 %v10818_v10, %v5333_v52  ;;  %v5330_v9 = vpop.xlane.xlu1 %5329 }
 0x77c   : > { %v5381_v37 = vadd.f32 %v10818_v10, %v5330_v9 }
 0x77d   : > { %5876 = vperm.xlu0 %7517, %v5382_v8  }
 0x77e   : > { %5871 = vperm.xlu1 %7516, %v5381_v37  }
 0x782   : > { %v5339_v17 = vpop.xlane.xlu0 %5338 }
 0x783   : > { %v5384_v30 = vadd.f32 %v10818_v10, %v5339_v17  ;;  %v5336_v19 = vpop.xlane.xlu1 %5335 }
 0x784   : > { %v5383_v56 = vadd.f32 %v10818_v10, %v5336_v19 }
 0x785   : > { %5886 = vperm.xlu0 %7517, %v5384_v30  }
 0x786   : > { %5881 = vperm.xlu1 %7516, %v5383_v56  }
 0x789   : > { %v5345_v31 = vpop.xlane.xlu0 %5344 }
 0x78a   : > { %v5386_v58 = vadd.f32 %v10818_v10, %v5345_v31  ;;  %v5342_v45 = vpop.xlane.xlu1 %5341 }
 0x78b   : > { %v5385_v54 = vadd.f32 %v10818_v10, %v5342_v45 }
 0x78c   : > { %5896 = vperm.xlu0 %7517, %v5386_v58  }
 0x78d   : > { %5891 = vperm.xlu1 %7516, %v5385_v54   ;;  %v11662_v54 = vld [vmem:[#allocation63_spill] sm:$0xff] }
 0x792   : > { %v5351_v34 = vpop.xlane.xlu0 %5350 }
 0x793   : > { %v5388_v15 = vadd.f32 %v10818_v10, %v5351_v34  ;;  %v5348_v14 = vpop.xlane.xlu1 %5347 }
 0x794   : > { %v5387_v62 = vadd.f32 %v10818_v10, %v5348_v14 }
 0x795   : > { %5906 = vperm.xlu0 %7517, %v5388_v15   ;;  %v11663_v15 = vld [vmem:[#allocation7_spill] sm:$0xff] }
 0x796   : > { %5901 = vperm.xlu1 %7516, %v5387_v62  }
 0x797   : > { %v5757_v48 = vpop.permute.xlu1 %5756 }
 0x798   : > { %v5910_v13 = vsel %vm5748_vm10, %v5757_v48, 0.0 }
 0x799   : > { %v5942_v43 = vsel %vm5747_vm11, %v9766_v44, %v5910_v13 }
 0x79a   : > { %v5974_v10 = vsel %vm5746_vm12, %v11659_v16, %v5942_v43  ;;  %v5752_v2 = vpop.permute.xlu0 %5751 }
 0x79b   : > { %v5909_v63 = vsel %vm5748_vm10, %v5752_v2, 0.0  ;;  %v6006_v60 = vsel %vm5745_vm13, %v11660_v21, %v5974_v10 }
 0x79c   : > { %v5941_v51 = vsel %vm5747_vm11, %v9776_v35, %v5909_v63  ;;  %6071 = vrot.lane.b32.xlu0 %v6006_v60, %s8187_s25  ;;  %v11664_v63 = vld [vmem:[#allocation65_spill] sm:$0xff]  ;;  %v11665_v60 = vld [vmem:[#allocation30_spill] sm:$0xff] }
 0x79d   : > { %v5973_v44 = vsel %vm5746_vm12, %v9517_v20, %v5941_v51  ;;  %v11666_v51 = vld [vmem:[#allocation64_spill] sm:$0xff] }
 0x79e   : > { %v6005_v6 = vsel %vm5745_vm13, %v11661_v26, %v5973_v44  ;;  %v11667_v26 = vld [vmem:[#allocation8_spill] sm:$0xff] }
 0x79f   : > { %6069 = vrot.lane.b32.xlu1 %v6005_v6, %s8187_s25 }
 0x7a3   : > { %v5767_v32 = vpop.permute.xlu0 %5766 }
 0x7a4   : > { %v5912_v52 = vsel %vm5748_vm10, %v5767_v32, 0.0  ;;  %v5762_v8 = vpop.permute.xlu1 %5761 }
 0x7a5   : > { %v5944_v35 = vsel %vm5747_vm11, %v9816_v27, %v5912_v52  ;;  %v5911_v9 = vsel %vm5748_vm10, %v5762_v8, 0.0 }
 0x7a6   : > { %v5976_v20 = vsel %vm5746_vm12, %v9536_v12, %v5944_v35  ;;  %v5943_v37 = vsel %vm5747_vm11, %v9829_v42, %v5911_v9  ;;  %v11669_v9 = vld [vmem:[#allocation31_spill] sm:$0xff] }
 0x7a7   : > { %v5975_v17 = vsel %vm5746_vm12, %v9528_v7, %v5943_v37  ;;  %v6008_v30 = vsel %vm5745_vm13, %v8570_v36, %v5976_v20 }
 0x7a8   : > { %6075 = vrot.lane.b32.xlu0 %v6008_v30, %s8187_s25  ;;  %v6007_v27 = vsel %vm5745_vm13, %v8580_v46, %v5975_v17  ;;  %v11670_v17 = vld [vmem:[#allocation67_spill] sm:$0xff] }
 0x7a9   : > { %6073 = vrot.lane.b32.xlu1 %v6007_v27, %s8187_s25  ;;  %v11671_v27 = vld [vmem:[#allocation40_spill] sm:$0xff] }
 0x7ab   : > { %v5777_v12 = vpop.permute.xlu0 %5776 }
 0x7ac   : > { %v5914_v42 = vsel %vm5748_vm10, %v5777_v12, 0.0  ;;  %v5772_v19 = vpop.permute.xlu1 %5771 }
 0x7ad   : > { %v5946_v7 = vsel %vm5747_vm11, %v9848_v41, %v5914_v42  ;;  %v5913_v36 = vsel %vm5748_vm10, %v5772_v19, 0.0  ;;  %v11672_v42 = vld [vmem:[#allocation66_spill] sm:$0xff] }
 0x7ae   : > { %v5978_v56 = vsel %vm5746_vm12, %v9549_v57, %v5946_v7  ;;  %v5945_v46 = vsel %vm5747_vm11, %v9863_v47, %v5913_v36  ;;  %v11673_v7 = vld [vmem:[#allocation9_spill] sm:$0xff] }
 0x7af   : > { %v5977_v31 = vsel %vm5746_vm12, %v9541_v49, %v5945_v46  ;;  %v6010_v58 = vsel %vm5745_vm13, %v8586_v50, %v5978_v56  ;;  %v11674_v56 = vld [vmem:[#allocation12_spill] sm:$0xff] }
 0x7b0   : > { %6079 = vrot.lane.b32.xlu0 %v6010_v58, %s8187_s25  ;;  %v6009_v41 = vsel %vm5745_vm13, %v8590_v53, %v5977_v31 }
 0x7b1   : > { %6077 = vrot.lane.b32.xlu1 %v6009_v41, %s8187_s25 }
 0x7b3   : > { %v5787_v57 = vpop.permute.xlu0 %5786 }
 0x7b4   : > { %v5916_v47 = vsel %vm5748_vm10, %v5787_v57, 0.0  ;;  %v5782_v45 = vpop.permute.xlu1 %5781  ;;  %v11675_v57 = vld [vmem:[#allocation32_spill] sm:$0xff] }
 0x7b5   : > { %v5948_v49 = vsel %vm5747_vm11, %v9881_v0, %v5916_v47  ;;  %v5915_v50 = vsel %vm5748_vm10, %v5782_v45, 0.0 }
 0x7b6   : > { %v5980_v38 = vsel %vm5746_vm12, %v11662_v54, %v5948_v49  ;;  %v5947_v53 = vsel %vm5747_vm11, %v9896_v23, %v5915_v50  ;;  %v11676_v49 = vld [vmem:[#allocation69_spill] sm:$0xff] }
 0x7b7   : > { %v5979_v34 = vsel %vm5746_vm12, %v9554_v61, %v5947_v53  ;;  %v6012_v14 = vsel %vm5745_vm13, %v11663_v15, %v5980_v38  ;;  %v11677_v54 = vld [vmem:[#allocation33_spill] sm:$0xff]  ;;  %v11678_v53 = vld [vmem:[#allocation68_spill] sm:$0xff]  ;;  %v11679_v15 = vld [vmem:[#allocation11_spill] sm:$0xff] }
 0x7b8   : > { %6083 = vrot.lane.b32.xlu0 %v6012_v14, %s8187_s25  ;;  %v6011_v0 = vsel %vm5745_vm13, %v8609_v1, %v5979_v34 }
 0x7b9   : > { %6081 = vrot.lane.b32.xlu1 %v6011_v0, %s8187_s25  ;;  %v11680_v0 = vld [vmem:[#allocation14_spill] sm:$0xff] }
 0x7bb   : > { %v5797_v62 = vpop.permute.xlu0 %5796 }
 0x7bc   : > { %v5918_v23 = vsel %vm5748_vm10, %v5797_v62, 0.0  ;;  %v5792_v48 = vpop.permute.xlu1 %5791 }
 0x7bd   : > { %v5950_v61 = vsel %vm5747_vm11, %v9912_v3, %v5918_v23  ;;  %v5917_v13 = vsel %vm5748_vm10, %v5792_v48, 0.0 }
 0x7be   : > { %v5982_v43 = vsel %vm5746_vm12, %v9574_v5, %v5950_v61  ;;  %v5949_v1 = vsel %vm5747_vm11, %v9929_v22, %v5917_v13  ;;  %v11681_v13 = vld [vmem:[#allocation42_spill] sm:$0xff] }
 0x7bf   : > { %v5981_v16 = vsel %vm5746_vm12, %v9566_v33, %v5949_v1  ;;  %v6014_v10 = vsel %vm5745_vm13, %v8598_v59, %v5982_v43 }
 0x7c0   : > { %6087 = vrot.lane.b32.xlu0 %v6014_v10, %s8187_s25  ;;  %v6013_v3 = vsel %vm5745_vm13, %v8630_v11, %v5981_v16  ;;  %v11682_v16 = vld [vmem:[#allocation71_spill] sm:$0xff] }
 0x7c1   : > { %6085 = vrot.lane.b32.xlu1 %v6013_v3, %s8187_s25  ;;  %v11683_v3 = vld [vmem:[#allocation34_spill] sm:$0xff] }
 0x7c3   : > { %v5807_v5 = vpop.permute.xlu0 %5806 }
 0x7c4   : > { %v5920_v22 = vsel %vm5748_vm10, %v5807_v5, 0.0  ;;  %v5802_v2 = vpop.permute.xlu1 %5801 }
 0x7c5   : > { %v5952_v33 = vsel %vm5747_vm11, %v9949_v25, %v5920_v22  ;;  %v5919_v59 = vsel %vm5748_vm10, %v5802_v2, 0.0  ;;  %v11668_v25 = vld [vmem:[#allocation10_spill] sm:$0xff] }
 0x7c6   : > { %v5984_v21 = vsel %vm5746_vm12, %v11664_v63, %v5952_v33  ;;  %v5951_v11 = vsel %vm5747_vm11, %v11665_v60, %v5919_v59  ;;  %v11684_v22 = vld [vmem:[#allocation70_spill] sm:$0xff]  ;;  %v11685_v33 = vld [vmem:[#allocation13_spill] sm:$0xff]  ;;  %v11686_v63 = vld [vmem:[#allocation16_spill] sm:$0xff] }
 0x7c7   : > { %v5983_v44 = vsel %vm5746_vm12, %v11666_v51, %v5951_v11  ;;  %v6016_v6 = vsel %vm5745_vm13, %v11667_v26, %v5984_v21 }
 0x7c8   : > { %6091 = vrot.lane.b32.xlu0 %v6016_v6, %s8187_s25  ;;  %v6015_v32 = vsel %vm5745_vm13, %v11668_v25, %v5983_v44  ;;  %v11687_v44 = vld [vmem:[#allocation35_spill] sm:$0xff]  ;;  %v11688_v25 = vld [vmem:[#allocation73_spill] sm:$0xff] }
 0x7c9   : > { %6089 = vrot.lane.b32.xlu1 %v6015_v32, %s8187_s25 }
 0x7cc   : > { %v5817_v52 = vpop.permute.xlu0 %5816 }
 0x7cd   : > { %v5922_v8 = vsel %vm5748_vm10, %v5817_v52, 0.0  ;;  %v5812_v35 = vpop.permute.xlu1 %5811  ;;  %v11689_v52 = vld [vmem:[#allocation44_spill] sm:$0xff] }
 0x7ce   : > { %v5954_v20 = vsel %vm5747_vm11, %v11669_v9, %v5922_v8  ;;  %v5921_v37 = vsel %vm5748_vm10, %v5812_v35, 0.0  ;;  %v11690_v35 = vld [vmem:[#allocation72_spill] sm:$0xff] }
 0x7cf   : > { %v5986_v30 = vsel %vm5746_vm12, %v11670_v17, %v5954_v20  ;;  %v5953_v12 = vsel %vm5747_vm11, %v11671_v27, %v5921_v37  ;;  %v11691_v20 = vld [vmem:[#allocation15_spill] sm:$0xff]  ;;  %v11692_v17 = vld [vmem:[#allocation18_spill] sm:$0xff] }
 0x7d0   : > { %v5985_v19 = vsel %vm5746_vm12, %v11672_v42, %v5953_v12  ;;  %v6018_v36 = vsel %vm5745_vm13, %v11673_v7, %v5986_v30 }
 0x7d1   : > { %6095 = vrot.lane.b32.xlu0 %v6018_v36, %s8187_s25  ;;  %v6017_v46 = vsel %vm5745_vm13, %v11674_v56, %v5985_v19  ;;  %v11693_v19 = vld [vmem:[#allocation36_spill] sm:$0xff]  ;;  %v11694_v56 = vld [vmem:[#allocation75_spill] sm:$0xff] }
 0x7d2   : > { %6093 = vrot.lane.b32.xlu1 %v6017_v46, %s8187_s25 }
 0x7d3   : > { %v5827_v31 = vpop.permute.xlu0 %5826 }
 0x7d4   : > { %v5924_v58 = vsel %vm5748_vm10, %v5827_v31, 0.0  ;;  %v5822_v41 = vpop.permute.xlu1 %5821  ;;  %v11695_v31 = vld [vmem:[#allocation37_spill] sm:$0xff] }
 0x7d5   : > { %v5956_v47 = vsel %vm5747_vm11, %v11675_v57, %v5924_v58  ;;  %v5923_v45 = vsel %vm5748_vm10, %v5822_v41, 0.0  ;;  %v11696_v41 = vld [vmem:[#allocation74_spill] sm:$0xff] }
 0x7d6   : > { %v5988_v50 = vsel %vm5746_vm12, %v11676_v49, %v5956_v47  ;;  %v5955_v38 = vsel %vm5747_vm11, %v11677_v54, %v5923_v45  ;;  %v11697_v47 = vld [vmem:[#allocation17_spill] sm:$0xff]  ;;  %v11698_v49 = vld [vmem:[#allocation20_spill] sm:$0xff] }
 0x7d7   : > { %v5987_v34 = vsel %vm5746_vm12, %v11678_v53, %v5955_v38  ;;  %v6020_v14 = vsel %vm5745_vm13, %v11679_v15, %v5988_v50 }
 0x7d8   : > { %6099 = vrot.lane.b32.xlu0 %v6020_v14, %s8187_s25  ;;  %v6019_v62 = vsel %vm5745_vm13, %v11680_v0, %v5987_v34  ;;  %v11699_v34 = vld [vmem:[#allocation46_spill] sm:$0xff]  ;;  %v11700_v0 = vld [vmem:[#allocation77_spill] sm:$0xff] }
 0x7d9   : > { %6097 = vrot.lane.b32.xlu1 %v6019_v62, %s8187_s25 }
 0x7dc   : > { %v5837_v23 = vpop.permute.xlu0 %5836 }
 0x7dd   : > { %v5926_v48 = vsel %vm5748_vm10, %v5837_v23, 0.0  ;;  %v5832_v61 = vpop.permute.xlu1 %5831  ;;  %v11701_v23 = vld [vmem:[#allocation38_spill] sm:$0xff] }
 0x7de   : > { %v5958_v43 = vsel %vm5747_vm11, %v11681_v13, %v5926_v48  ;;  %v5925_v1 = vsel %vm5748_vm10, %v5832_v61, 0.0  ;;  %v11702_v61 = vld [vmem:[#allocation76_spill] sm:$0xff] }
 0x7df   : > { %v5990_v10 = vsel %vm5746_vm12, %v11682_v16, %v5958_v43  ;;  %v5957_v5 = vsel %vm5747_vm11, %v11683_v3, %v5925_v1  ;;  %v11703_v43 = vld [vmem:[#allocation19_spill] sm:$0xff]  ;;  %v11704_v16 = vld [vmem:[#allocation22_spill] sm:$0xff] }
 0x7e0   : > { %v5989_v2 = vsel %vm5746_vm12, %v11684_v22, %v5957_v5  ;;  %v6022_v59 = vsel %vm5745_vm13, %v11685_v33, %v5990_v10 }
 0x7e1   : > { %6103 = vrot.lane.b32.xlu0 %v6022_v59, %s8187_s25  ;;  %v6021_v21 = vsel %vm5745_vm13, %v11686_v63, %v5989_v2  ;;  %v11705_v2 = vld [vmem:[#allocation39_spill] sm:$0xff] }
 0x7e2   : > { %6101 = vrot.lane.b32.xlu1 %v6021_v21, %s8187_s25  ;;  %v11706_v63 = vld [vmem:[#allocation79_spill] sm:$0xff] }
 0x7e4   : > { %v5847_v60 = vpop.permute.xlu0 %5846 }
 0x7e5   : > { %v5928_v11 = vsel %vm5748_vm10, %v5847_v60, 0.0  ;;  %v5842_v51 = vpop.permute.xlu1 %5841 }
 0x7e6   : > { %v5960_v26 = vsel %vm5747_vm11, %v11687_v44, %v5928_v11  ;;  %v5927_v6 = vsel %vm5748_vm10, %v5842_v51, 0.0  ;;  %v11707_v11 = vld [vmem:[#allocation78_spill] sm:$0xff]  ;;  %v11708_v44 = vld [vmem:[#allocation21_spill] sm:$0xff] }
 0x7e7   : > { %v5992_v32 = vsel %vm5746_vm12, %v11688_v25, %v5960_v26  ;;  %v5959_v8 = vsel %vm5747_vm11, %v11689_v52, %v5927_v6  ;;  %v11709_v6 = vld [vmem:[#allocation24_spill] sm:$0xff] }
 0x7e8   : > { %v5991_v9 = vsel %vm5746_vm12, %v11690_v35, %v5959_v8  ;;  %v6024_v37 = vsel %vm5745_vm13, %v11691_v20, %v5992_v32  ;;  %v11710_v8 = vld [vmem:[#allocation48_spill] sm:$0xff]  ;;  %v11711_v20 = vld [vmem:[#allocation81_spill] sm:$0xff] }
 0x7e9   : > { %6107 = vrot.lane.b32.xlu0 %v6024_v37, %s8187_s25  ;;  %v6023_v30 = vsel %vm5745_vm13, %v11692_v17, %v5991_v9  ;;  %v11712_v17 = vld [vmem:[#allocation41_spill] sm:$0xff] }
 0x7ea   : > { %6105 = vrot.lane.b32.xlu1 %v6023_v30, %s8187_s25 }
 0x7ec   : > { %v5857_v27 = vpop.permute.xlu0 %5856 }
 0x7ed   : > { %v5930_v12 = vsel %vm5748_vm10, %v5857_v27, 0.0  ;;  %v5852_v42 = vpop.permute.xlu1 %5851  ;;  %v11713_v27 = vld [vmem:[#allocation80_spill] sm:$0xff] }
 0x7ee   : > { %v5962_v7 = vsel %vm5747_vm11, %v11693_v19, %v5930_v12  ;;  %v5929_v36 = vsel %vm5748_vm10, %v5852_v42, 0.0  ;;  %v11714_v42 = vld [vmem:[#allocation23_spill] sm:$0xff] }
 0x7ef   : > { %v5994_v46 = vsel %vm5746_vm12, %v11694_v56, %v5962_v7  ;;  %v5961_v58 = vsel %vm5747_vm11, %v11695_v31, %v5929_v36  ;;  %v11715_v7 = vld [vmem:[#allocation26_spill] sm:$0xff] }
 0x7f0   : > { %v5993_v57 = vsel %vm5746_vm12, %v11696_v41, %v5961_v58  ;;  %v6026_v45 = vsel %vm5745_vm13, %v11697_v47, %v5994_v46 }
 0x7f1   : > { %6111 = vrot.lane.b32.xlu0 %v6026_v45, %s8187_s25  ;;  %v6025_v50 = vsel %vm5745_vm13, %v11698_v49, %v5993_v57  ;;  %v11716_v57 = vld [vmem:[#allocation83_spill] sm:$0xff]  ;;  %v11717_v49 = vld [vmem:[#allocation82_spill] sm:$0xff] }
 0x7f2   : > { %6109 = vrot.lane.b32.xlu1 %v6025_v50, %s8187_s25 }
 0x7f4   : > { %v5867_v54 = vpop.permute.xlu0 %5866 }
 0x7f5   : > { %v5932_v38 = vsel %vm5748_vm10, %v5867_v54, 0.0  ;;  %v5862_v53 = vpop.permute.xlu1 %5861  ;;  %v11718_v54 = vld [vmem:[#allocation25_spill] sm:$0xff] }
 0x7f6   : > { %v5964_v15 = vsel %vm5747_vm11, %v11699_v34, %v5932_v38  ;;  %v5931_v14 = vsel %vm5748_vm10, %v5862_v53, 0.0  ;;  %v11719_v38 = vld [vmem:[#allocation28_spill] sm:$0xff] }
 0x7f7   : > { %v5996_v62 = vsel %vm5746_vm12, %v11700_v0, %v5964_v15  ;;  %v5963_v48 = vsel %vm5747_vm11, %v11701_v23, %v5931_v14 }
 0x7f8   : > { %v5995_v13 = vsel %vm5746_vm12, %v11702_v61, %v5963_v48  ;;  %v6028_v1 = vsel %vm5745_vm13, %v11703_v43, %v5996_v62  ;;  %v11720_v62 = vld [vmem:[#allocation84_spill] sm:$0xff] }
 0x7f9   : > { %6115 = vrot.lane.b32.xlu0 %v6028_v1, %s8187_s25  ;;  %v6027_v10 = vsel %vm5745_vm13, %v11704_v16, %v5995_v13  ;;  %v11721_v13 = vld [vmem:[#allocation27_spill] sm:$0xff] }
 0x7fa   : > { %6113 = vrot.lane.b32.xlu1 %v6027_v10, %s8187_s25 }
 0x7fc   : > { %v5877_v3 = vpop.permute.xlu0 %5876 }
 0x7fd   : > { %v5934_v5 = vsel %vm5748_vm10, %v5877_v3, 0.0  ;;  %v5872_v22 = vpop.permute.xlu1 %5871 }
 0x7fe   : > { %v5966_v33 = vsel %vm5747_vm11, %v11705_v2, %v5934_v5  ;;  %v5933_v59 = vsel %vm5748_vm10, %v5872_v22, 0.0 }
 0x7ff   : > { %v5998_v21 = vsel %vm5746_vm12, %v11706_v63, %v5966_v33  ;;  %v5965_v60 = vsel %vm5747_vm11, %v10223_v4, %v5933_v59 }
 0x800   : > { %v5997_v51 = vsel %vm5746_vm12, %v11707_v11, %v5965_v60  ;;  %v6030_v26 = vsel %vm5745_vm13, %v11708_v44, %v5998_v21 }
 0x801   : > { %6119 = vrot.lane.b32.xlu0 %v6030_v26, %s8187_s25  ;;  %v6029_v25 = vsel %vm5745_vm13, %v11709_v6, %v5997_v51 }
 0x802   : > { %6117 = vrot.lane.b32.xlu1 %v6029_v25, %s8187_s25 }
 0x804   : > { %v5887_v32 = vpop.permute.xlu0 %5886 }
 0x805   : > { %v5936_v4 = vsel %vm5748_vm10, %v5887_v32, 0.0  ;;  %v5882_v52 = vpop.permute.xlu1 %5881 }
 0x806   : > { %v5968_v35 = vsel %vm5747_vm11, %v11710_v8, %v5936_v4  ;;  %v5935_v9 = vsel %vm5748_vm10, %v5882_v52, 0.0 }
 0x807   : > { %v6000_v37 = vsel %vm5746_vm12, %v11711_v20, %v5968_v35  ;;  %v5967_v30 = vsel %vm5747_vm11, %v11712_v17, %v5935_v9 }
 0x808   : > { %v5999_v12 = vsel %vm5746_vm12, %v11713_v27, %v5967_v30  ;;  %v6032_v19 = vsel %vm5745_vm13, %v11714_v42, %v6000_v37 }
 0x809   : > { %6123 = vrot.lane.b32.xlu0 %v6032_v19, %s8187_s25  ;;  %v6031_v36 = vsel %vm5745_vm13, %v11715_v7, %v5999_v12 }
 0x80a   : > { %6121 = vrot.lane.b32.xlu1 %v6031_v36, %s8187_s25 }
 0x80b   : > { %v5897_v56 = vpop.permute.xlu0 %5896 }
 0x80c   : > { %v5938_v46 = vsel %vm5748_vm10, %v5897_v56, 0.0  ;;  %v5892_v31 = vpop.permute.xlu1 %5891 }
 0x80d   : > { %v5970_v58 = vsel %vm5747_vm11, %v10294_v24, %v5938_v46  ;;  %v5937_v41 = vsel %vm5748_vm10, %v5892_v31, 0.0 }
 0x80e   : > { %v6002_v47 = vsel %vm5746_vm12, %v11716_v57, %v5970_v58  ;;  %v5969_v45 = vsel %vm5747_vm11, %v10318_v29, %v5937_v41 }
 0x80f   : > { %v6001_v50 = vsel %vm5746_vm12, %v11717_v49, %v5969_v45  ;;  %v6034_v24 = vsel %vm5745_vm13, %v11718_v54, %v6002_v47 }
 0x810   : > { %6127 = vrot.lane.b32.xlu0 %v6034_v24, %s8187_s25  ;;  %v6033_v53 = vsel %vm5745_vm13, %v11719_v38, %v6001_v50 }
 0x811   : > { %6125 = vrot.lane.b32.xlu1 %v6033_v53, %s8187_s25 }
 0x814   : > { %v5907_v34 = vpop.permute.xlu0 %5906 }
 0x815   : > { %v5940_v29 = vsel %vm5748_vm10, %v5907_v34, 0.0  ;;  %v5902_v15 = vpop.permute.xlu1 %5901 }
 0x816   : > { %v5972_v14 = vsel %vm5747_vm11, %v10340_v28, %v5940_v29  ;;  %v5939_v0 = vsel %vm5748_vm10, %v5902_v15, 0.0 }
 0x817   : > { %v6004_v23 = vsel %vm5746_vm12, %v11720_v62, %v5972_v14  ;;  %v5971_v48 = vsel %vm5747_vm11, %v10353_v40, %v5939_v0 }
 0x818   : > { %v6003_v61 = vsel %vm5746_vm12, %v9740_v18, %v5971_v48  ;;  %v6072_v28 = vpop.permute.xlu0 %6071  ;;  %v6036_v43 = vsel %vm5745_vm13, %v11721_v13, %v6004_v23 }
 0x819   : > { %6167 = vst.msk [vmem:[%s8986_s23 + $0x8] sm:$0xff] %vm6165_vm14, %v6072_v28  ;;  %v6070_v1 = vpop.permute.xlu1 %6069  ;;  %6131 = vrot.lane.b32.xlu0 %v6036_v43, %s8187_s25  ;;  %v6035_v40 = vsel %vm5745_vm13, %v11657_v55, %v6003_v61 }
 0x81a   : > { %6166 = vst.msk [vmem:[%s8986_s23] sm:$0xff] %vm6165_vm14, %v6070_v1  ;;  %6129 = vrot.lane.b32.xlu1 %v6035_v40, %s8187_s25 }
 0x81c   : > { %v6076_v18 = vpop.permute.xlu0 %6075 }
 0x81d   : > { %6169 = vst.msk [vmem:[%s8986_s23 + $0x18] sm:$0xff] %vm6165_vm14, %v6076_v18  ;;  %v6074_v16 = vpop.permute.xlu1 %6073 }
 0x81e   : > { %6168 = vst.msk [vmem:[%s8986_s23 + $0x10] sm:$0xff] %vm6165_vm14, %v6074_v16 }
 0x822   : > { %v6080_v10 = vpop.permute.xlu0 %6079 }
 0x823   : > { %6171 = vst.msk [vmem:[%s8986_s23 + $0x28] sm:$0xff] %vm6165_vm14, %v6080_v10  ;;  %v6078_v39 = vpop.permute.xlu1 %6077 }
 0x824   : > { %6170 = vst.msk [vmem:[%s8986_s23 + $0x20] sm:$0xff] %vm6165_vm14, %v6078_v39 }
 0x82a   : > { %v6084_v55 = vpop.permute.xlu0 %6083 }
 0x82b   : > { %6173 = vst.msk [vmem:[%s8986_s23 + $0x38] sm:$0xff] %vm6165_vm14, %v6084_v55  ;;  %v6082_v3 = vpop.permute.xlu1 %6081 }
 0x82c   : > { %6172 = vst.msk [vmem:[%s8986_s23 + $0x30] sm:$0xff] %vm6165_vm14, %v6082_v3 }
 0x832   : > { %v6088_v5 = vpop.permute.xlu0 %6087 }
 0x833   : > { %6175 = vst.msk [vmem:[%s8986_s23 + $0x48] sm:$0xff] %vm6165_vm14, %v6088_v5  ;;  %v6086_v22 = vpop.permute.xlu1 %6085 }
 0x834   : > { %6174 = vst.msk [vmem:[%s8986_s23 + $0x40] sm:$0xff] %vm6165_vm14, %v6086_v22 }
 0x83a   : > { %v6092_v2 = vpop.permute.xlu0 %6091 }
 0x83b   : > { %6177 = vst.msk [vmem:[%s8986_s23 + $0x58] sm:$0xff] %vm6165_vm14, %v6092_v2  ;;  %v6090_v33 = vpop.permute.xlu1 %6089 }
 0x83c   : > { %6176 = vst.msk [vmem:[%s8986_s23 + $0x50] sm:$0xff] %vm6165_vm14, %v6090_v33 }
 0x843   : > { %v6096_v59 = vpop.permute.xlu0 %6095 }
 0x844   : > { %6179 = vst.msk [vmem:[%s8986_s23 + $0x68] sm:$0xff] %vm6165_vm14, %v6096_v59  ;;  %v6094_v63 = vpop.permute.xlu1 %6093 }
 0x845   : > { %6178 = vst.msk [vmem:[%s8986_s23 + $0x60] sm:$0xff] %vm6165_vm14, %v6094_v63 }
 0x84a   : > { %v6100_v21 = vpop.permute.xlu0 %6099 }
 0x84b   : > { %6181 = vst.msk [vmem:[%s8986_s23 + $0x78] sm:$0xff] %vm6165_vm14, %v6100_v21  ;;  %v6098_v60 = vpop.permute.xlu1 %6097 }
 0x84c   : > { %6180 = vst.msk [vmem:[%s8986_s23 + $0x70] sm:$0xff] %vm6165_vm14, %v6098_v60 }
 0x853   : > { %v6104_v11 = vpop.permute.xlu0 %6103 }
 0x854   : > { %6183 = vst.msk [vmem:[%s8986_s23 + $0x88] sm:$0xff] %vm6165_vm14, %v6104_v11  ;;  %v6102_v51 = vpop.permute.xlu1 %6101 }
 0x855   : > { %6182 = vst.msk [vmem:[%s8986_s23 + $0x80] sm:$0xff] %vm6165_vm14, %v6102_v51 }
 0x85b   : > { %v6108_v44 = vpop.permute.xlu0 %6107 }
 0x85c   : > { %6185 = vst.msk [vmem:[%s8986_s23 + $0x98] sm:$0xff] %vm6165_vm14, %v6108_v44  ;;  %v6106_v26 = vpop.permute.xlu1 %6105 }
 0x85d   : > { %6184 = vst.msk [vmem:[%s8986_s23 + $0x90] sm:$0xff] %vm6165_vm14, %v6106_v26 }
 0x863   : > { %v6112_v6 = vpop.permute.xlu0 %6111 }
 0x864   : > { %6187 = vst.msk [vmem:[%s8986_s23 + $0xa8] sm:$0xff] %vm6165_vm14, %v6112_v6  ;;  %v6110_v25 = vpop.permute.xlu1 %6109 }
 0x865   : > { %6186 = vst.msk [vmem:[%s8986_s23 + $0xa0] sm:$0xff] %vm6165_vm14, %v6110_v25 }
 0x86b   : > { %v6116_v32 = vpop.permute.xlu0 %6115 }
 0x86c   : > { %6189 = vst.msk [vmem:[%s8986_s23 + $0xb8] sm:$0xff] %vm6165_vm14, %v6116_v32  ;;  %v6114_v4 = vpop.permute.xlu1 %6113 }
 0x86d   : > { %6188 = vst.msk [vmem:[%s8986_s23 + $0xb0] sm:$0xff] %vm6165_vm14, %v6114_v4 }
 0x873   : > { %v6120_v52 = vpop.permute.xlu0 %6119 }
 0x874   : > { %6191 = vst.msk [vmem:[%s8986_s23 + $0xc8] sm:$0xff] %vm6165_vm14, %v6120_v52  ;;  %v6118_v8 = vpop.permute.xlu1 %6117 }
 0x875   : > { %6190 = vst.msk [vmem:[%s8986_s23 + $0xc0] sm:$0xff] %vm6165_vm14, %v6118_v8 }
 0x87b   : > { %v6124_v35 = vpop.permute.xlu0 %6123 }
 0x87c   : > { %6193 = vst.msk [vmem:[%s8986_s23 + $0xd8] sm:$0xff] %vm6165_vm14, %v6124_v35  ;;  %v6122_v9 = vpop.permute.xlu1 %6121 }
 0x87d   : > { %6192 = vst.msk [vmem:[%s8986_s23 + $0xd0] sm:$0xff] %vm6165_vm14, %v6122_v9 }
 0x882   : > { %v6128_v20 = vpop.permute.xlu0 %6127 }
 0x883   : > { %6195 = vst.msk [vmem:[%s8986_s23 + $0xe8] sm:$0xff] %vm6165_vm14, %v6128_v20  ;;  %v6126_v37 = vpop.permute.xlu1 %6125 }
 0x884   : > { %6194 = vst.msk [vmem:[%s8986_s23 + $0xe0] sm:$0xff] %vm6165_vm14, %v6126_v37 }
 0x887   : > { %6205 = sbr.rel (!%p8259_p5) target bundleno = 2218 (0x8aa), region = 44 }
 0x88b   : > { %v6132_v17 = vpop.permute.xlu0 %6131 }
 0x88c   : > { %6197 = vst.msk [vmem:[%s8986_s23 + $0xf8] sm:$0xff] %vm6165_vm14, %v6132_v17  ;;  %v6130_v30 = vpop.permute.xlu1 %6129 }
 0x88d   : > { %6196 = vst.msk [vmem:[%s8986_s23 + $0xf0] sm:$0xff] %vm6165_vm14, %v6130_v30 }
 0x88e   : > { %s11727_s30 = smov (!%p6208_p11, %s6207_s30), 32 }
 0x88f   : > { %s11314_s6 = sshll.u32 %s11727_s30, 7 }
 0x890   : > { %s6212_s7 = ssub.s32 4096, %s11314_s6 }
 0x891   : > { %6213 = vsyncadd %s11309_s26, %s6212_s7  ;;  %p6605_p12 = scmp.ne.s32.totalorder %s11314_s6, 0  ;;  %s6611_s15 = sshll.u32 %s8242_s22, 12 }
 0x892   : > { %s11323_s9 = scalar_lea.hbm %s11375_s5, %s6611_s15  ;;  %s6218_s11 = sshll.u32 %s8986_s23, 4  ;;  %s11326_s11 = int_to_ptr.vmem [resolvable:$true] %s6218_s11 }
 0x893   : > { %s8118_s10 = scalar_lea.vmem %s11326_s11, %s11314_s6  ;;  %s8188_s12 = smov [#allocation2]  }
 0x894   : > { %p8119_p13 = scmp.ne.s32.totalorder %s11326_s11, %s8118_s10  ;;  %s8122_s13 = sshll.u32 %s8188_s12, 4  ;;  %s8123_s13 = int_to_ptr.vmem [resolvable:$false] %s8122_s13 }
 0x895   : > { %s8124_s22 = scalar_lea.vmem %s8123_s13, 8192  ;;  %p8125_p2 = scmp.lt.s32.totalorder %s11326_s11, %s8123_s13 }
 0x896   : > { %p8120_p0 = pnand %p8119_p13, %p6605_p12  ;;  %p8126_p3 = scmp.lt.s32.totalorder %s8124_s22, %s8118_s10 }
 0x898   : > { %p8121_p1 = pneg %p8120_p0  ;;  %p8127_p4 = por %p8126_p3, %p8125_p2 }
 0x89a   : > { %p8128_p5 = pnand %p8127_p4, %p8121_p1 }
 0x89c   : > { %8131 = shalt.err (!%p8128_p5)
}
 0x89d   : > { %s8132_s23 = scalar_lea.hbm %s11323_s9, %s11314_s6  ;;  %s8136_s17 = scalar_lea.hbm %s11375_s5, 8064 }
 0x89e   : > { %p8133_p7 = scmp.ne.s32.totalorder %s11323_s9, %s8132_s23  ;;  %p8137_p10 = scmp.lt.u32.totalorder %s11323_s9, %s11375_s5 }
 0x89f   : > { %p8138_p11 = scmp.lt.u32.totalorder %s8136_s17, %s8132_s23  ;;  %p8140_p0 = scmp.lt.u32.totalorder %s8132_s23, %s11323_s9 }
 0x8a0   : > { %p8134_p8 = pnand %p8133_p7, %p6605_p12 }
 0x8a1   : > { %p8139_p13 = por %p8138_p11, %p8137_p10 }
 0x8a2   : > { %p8135_p9 = pneg %p8134_p8 }
 0x8a3   : > { %p8141_p1 = por %p8140_p0, %p8139_p13 }
 0x8a5   : > { %p8142_p2 = pnand %p8141_p1, %p8135_p9 }
 0x8a7   : > { %8145 = shalt.err (!%p8142_p2)
}
 0x8a8   : > { %s8189_s7 = smov 128   ;;  %s8190_s15 = smov 8  }
 0x8a9   : > { %6224 = dma.vmem_to_hbm [thread:$0]  (%p6605_p12), %s11326_s11, %s11314_s6, %s11323_s9, %s11309_s26, %s8189_s7, %s8189_s7, %s8190_s15  }
 0x8aa PF: > { %p7439_p3 = scmp.ge.s32.totalorder %s8180_s21, 2  ;;  %s6233_s8 = sand.u32 1, %s8168_s18  }
 0x8ab   : > { %s6234_s28 = scalar_lea.sflag [#allocation3], %s6233_s8 }
 0x8ac   : > { %p7436_p4 = pnand %p7439_p3, %p8263_p6 }
 0x8ae   : > { %8163 = dma.done.wait (!%p7436_p4), %s6234_s28, 4096  }
 0x8af   : > { %8165 = vsyncadd (!%p7436_p4), %s6234_s28, 4294963200  ;;  %p15_p5 = scmp.ge.s32.totalorder %s8246_s24, 4   ;;  %s11722_s18 = smov %s8172_s19 }
 0x8b0   : > { %s11723_s19 = smov %s8176_s20  ;;  %s11724_s20 = smov %s8257_s27 }
 0x8b1   : > { %s11725_s21 = smov %s8246_s24  ;;  %17 = sbr.rel (!%p15_p5) target bundleno = 3 (0x3), region = 84 }
 0x8b8   :  { %6239 = vsyncpa [#allocation3], 1 }
 0x8b9   :  { %6241 = vsyncpa [#allocation3 + $0x1], 1 }

</bundles_post_ra>
